<compile_context>
chip_gen: v5e
topology: v5e:2x2
jax: 0.10.0
libtpu: 0.0.40
codegen_flags: <defaults>
</compile_context>

<pallas_src>
import jax
import jax.numpy as jnp
import numpy as np
from jax import lax
from jax.experimental import pallas as pl
from jax.experimental.pallas import tpu as pltpu


def _conv_layer_kernel(x_ref, pre_ref, wtap_ref, b1_ref, w2_ref, bout_ref,
                       o_ref, slab_ref):
    """One batch-block per grid step.

    x_ref    : (nb, H, W, Cin)        bf16  raw input block
    pre_ref  : (2, Cin)               f32   rows = [BN1 scale, BN1 bias]
    wtap_ref : (9*2*Cin, 2*Cout)      bf16  rows ordered (dy, dx, [h-chans ; x-chans]),
                                            block-diagonal cols = [BN2-folded block | BN3-folded skip]
    b1_ref   : (1, Cout)              f32   pre-ReLU bias of the block branch (cb1*s2 + b2)
    w2_ref   : (Cout, Cout)           bf16  1x1 conv weights
    bout_ref : (1, Cout)              f32   cb2 + cb3*s3 + b3 (all trailing biases merged)
    o_ref    : (nb, H, W, Cout)       f32   UNCROPPED output block (wrapper crops halo rows/cols)
    slab_ref : (nb*H*W + 2*W, 6*Cin)  bf16  persistent dx-im2col scratch slab
    """
    nb, H, W, Cin = x_ref.shape
    Cout = o_ref.shape[-1]
    K2 = 2 * Cin
    K3 = 3 * K2
    M = nb * H * W

    # --- BN1 + ReLU on the fly; build the [h, x] 2*Cin channel slab in-kernel (f32 VPU; v5e-safe)
    pre = pre_ref[...]                                     # (2, Cin)
    xf = x_ref[...].astype(jnp.float32)                    # (nb, H, W, Cin)
    h = jnp.maximum(xf * pre[0] + pre[1], 0.0)
    hx = jnp.concatenate([h, xf], axis=-1).astype(jnp.bfloat16).reshape(M, K2)

    # --- dx-im2col: fold the 3 dx taps into lanes once (tiny 8-row halo pad for the shifts);
    #     padded / wrapped rows only ever feed output rows that the wrapper crops away.
    hx_p = jnp.concatenate([hx, jnp.zeros((8, K2), jnp.bfloat16)], axis=0)
    slab_ref[0:M, :] = jnp.concatenate(
        [hx_p[0:M, :], hx_p[1:M + 1, :], hx_p[2:M + 2, :]], axis=1)
    slab_ref[M:, :] = jnp.zeros((slab_ref.shape[0] - M, K3), jnp.bfloat16)

    # --- 3 dy taps from sublane-aligned scratch ref slices (row offsets 0, W, 2W are multiples
    #     of 8); one accumulation chain so the reduction stays at the MXU (MRB on v7x).
    acc = (
        jnp.dot(slab_ref[0:M, :], wtap_ref[0:K3, :],
                preferred_element_type=jnp.float32)
        + jnp.dot(slab_ref[W:W + M, :], wtap_ref[K3:2 * K3, :],
                  preferred_element_type=jnp.float32)
        + jnp.dot(slab_ref[2 * W:2 * W + M, :], wtap_ref[2 * K3:, :],
                  preferred_element_type=jnp.float32)
    )                                                      # (M, 2*Cout) f32

    # --- block branch: bias + ReLU + 1x1 conv (bf16 MXU).  Skip / residual branch stays in f32.
    y = jnp.maximum(acc[:, :Cout] + b1_ref[...], 0.0).astype(jnp.bfloat16)
    out = (jnp.dot(y, w2_ref[...], preferred_element_type=jnp.float32)
           + acc[:, Cout:] + bout_ref[...])

    # --- store the full (uncropped) block; crop + NCHW transpose happen in the wrapper on HBM.
    o_ref[...] = out.reshape(nb, H, W, Cout).astype(o_ref.dtype)


def _fold_bn(gamma, beta, mean, var, eps=1e-5):
    scale = gamma / jnp.sqrt(var + eps)
    return scale, beta - mean * scale


def _tpu_vmem_bytes():
    try:
        return int(pltpu.get_tpu_info().vmem_capacity_bytes)
    except Exception:
        return 64 * 1024 * 1024          # conservative (v7x-sized) fallback


def _num_tensorcores():
    try:
        kind = jax.devices()[0].device_kind.lower()
    except Exception:
        return 2                          # unknown -> assume 2 TCs (safe, only a mild perf cost)
    # v4 / v5p (megacore) and v7x have 2 TensorCores per device; v5e / v6e have 1.
    return 2 if any(tag in kind for tag in ("v4", "v5p", "v7")) else 1


def _pick_batch_block(N, H, W, Cin, Cout, budget):
    """Images per grid step, sized against what actually lives in VMEM per step."""
    hw = H * W
    per_img = hw * (
        2 * (2 * Cin)            # input block, bf16, double-buffered
        + 2 * (4 * Cout)         # output block, f32, double-buffered
        + 2 * (6 * Cin)          # dx-im2col scratch slab, bf16
        + 4 * (2 * Cout)         # f32 accumulator
        + 4 * (3 * Cin)          # f32 prologue temporaries (x, h)
        + 4 * Cout               # f32 output value before the store
    )
    nb = max(1, min(N, budget // max(per_img, 1)))
    if _num_tensorcores() >= 2 and N >= 2:
        nb = min(nb, max(1, N // 2))      # keep >=2 "parallel" grid steps for 2-TC parts only
    while N % nb:
        nb -= 1
    return nb


def conv_layer_forward(x_nchw, params, *, nb=None):
    """Wrapper: NCHW in / NCHW out (PyTorch convention).  Hot path runs in one Pallas kernel."""
    x = jnp.transpose(x_nchw, (0, 2, 3, 1)).astype(jnp.float32)      # -> NHWC
    N, H, W, Cin = x.shape
    Cout = params["w1"].shape[-1]
    Ho, Wo = H - 2, W - 2
    K2, Co2 = 2 * Cin, 2 * Cout

    s1, b1 = _fold_bn(params["bn1_g"], params["bn1_b"], params["bn1_m"], params["bn1_v"])
    s2, b2 = _fold_bn(params["bn2_g"], params["bn2_b"], params["bn2_m"], params["bn2_v"])
    s3, b3 = _fold_bn(params["bn3_g"], params["bn3_b"], params["bn3_m"], params["bn3_v"])

    # Fold the post-conv affines (BN2, BN3) into the conv weights / biases (host side, f32).
    w1f = params["w1"] * s2                                           # (3,3,Cin,Cout)
    w3f = params["w3"] * s3
    bias1p = (params["cb1"] * s2 + b2).reshape(1, Cout).astype(jnp.float32)
    bout = (params["cb2"] + params["cb3"] * s3 + b3).reshape(1, Cout).astype(jnp.float32)

    # Block-diagonal per-tap slab: rows ordered (dy, dx, [h-chans ; x-chans]), cols [block|skip].
    z = jnp.zeros((3, 3, Cin, Cout), jnp.float32)
    w_bd = jnp.concatenate([jnp.concatenate([w1f, z], axis=-1),
                            jnp.concatenate([z, w3f], axis=-1)], axis=2)   # (3,3,2Cin,2Cout)
    wtap = w_bd.reshape(9 * K2, Co2).astype(jnp.bfloat16)

    w2 = params["w2"].astype(jnp.bfloat16)                            # (Cout, Cout), 1x1 conv
    pre = jnp.stack([s1, b1]).astype(jnp.float32)                     # (2, Cin)

    x_bf16 = x.astype(jnp.bfloat16)          # only the raw (N,H,W,Cin) block crosses HBM

    vmem_phys = _tpu_vmem_bytes()
    vmem_limit = min(96 * 1024 * 1024, vmem_phys // 2)                # 64 MiB on v5e/v6e, 32 on v7x
    if nb is None:
        nb = _pick_batch_block(N, H, W, Cin, Cout, int(0.6 * vmem_limit))
    assert N % nb == 0, "batch block size must divide N"
    grid = (N // nb,)
    M = nb * H * W

    flops = 2 * N * H * W * (9 * K2 * Co2 + Cout * Cout)
    bytes_accessed = (x_bf16.size * 2 + N * H * W * Cout * 4
                      + wtap.size * 2 + w2.size * 2
                      + (pre.size + bias1p.size + bout.size) * 4)

    out = pl.pallas_call(
        _conv_layer_kernel,
        out_shape=jax.ShapeDtypeStruct((N, H, W, Cout), jnp.float32),
        grid=grid,
        in_specs=[
            pl.BlockSpec((nb, H, W, Cin), lambda n: (n, 0, 0, 0)),
            pl.BlockSpec(pre.shape, lambda n: (0, 0)),
            pl.BlockSpec(wtap.shape, lambda n: (0, 0)),
            pl.BlockSpec(bias1p.shape, lambda n: (0, 0)),
            pl.BlockSpec(w2.shape, lambda n: (0, 0)),
            pl.BlockSpec(bout.shape, lambda n: (0, 0)),
        ],
        # Uncropped block store; at Cout=8 a lane-dense flattened output would need an in-kernel
        # relayout that costs more than the masked stores it removes; at Cout>=128 this spec is
        # already lane-dense.
        out_specs=pl.BlockSpec((nb, H, W, Cout), lambda n: (n, 0, 0, 0)),
        scratch_shapes=[
            pltpu.VMEM((M + 2 * W, 3 * K2), jnp.bfloat16),   # dx-im2col slab (+2W-row dy halo)
        ],
        compiler_params=pltpu.CompilerParams(
            dimension_semantics=("parallel",),
            vmem_limit_bytes=vmem_limit,
        ),
        cost_estimate=pl.CostEstimate(flops=flops, transcendentals=0,
                                      bytes_accessed=bytes_accessed),
    )(x_bf16, pre, wtap, bias1p, w2, bout)

    # Crop the 3x3-valid halo and return NCHW (cheap XLA slicing/transpose on HBM).
    return jnp.transpose(out[:, :Ho, :Wo, :], (0, 3, 1, 2))


def reference_forward(x_nchw, params):
    """Pure-JAX reference (same math, XLA convs, f32) for correctness checking."""
    x = jnp.transpose(x_nchw, (0, 2, 3, 1)).astype(jnp.float32)
    dn = ("NHWC", "HWIO", "NHWC")

    def bn(v, g, b, m, var, eps=1e-5):
        return (v - m) / jnp.sqrt(var + eps) * g + b

    h = jax.nn.relu(bn(x, params["bn1_g"], params["bn1_b"], params["bn1_m"], params["bn1_v"]))
    h = lax.conv_general_dilated(h, params["w1"], (1, 1), "VALID",
                                 dimension_numbers=dn) + params["cb1"]
    h = jax.nn.relu(bn(h, params["bn2_g"], params["bn2_b"], params["bn2_m"], params["bn2_v"]))
    h = jnp.einsum("nhwc,co->nhwo", h, params["w2"]) + params["cb2"]

    s = lax.conv_general_dilated(x, params["w3"], (1, 1), "VALID",
                                 dimension_numbers=dn) + params["cb3"]
    s = bn(s, params["bn3_g"], params["bn3_b"], params["bn3_m"], params["bn3_v"])

    return jnp.transpose(h + s, (0, 3, 1, 2))


def init_params(key, c_in, c_out):
    ks = jax.random.split(key, 12)
    p = {
        # conv weights in HWIO layout
        "w1": jax.random.normal(ks[0], (3, 3, c_in, c_out), jnp.float32) * 0.1,
        "cb1": jax.random.normal(ks[1], (c_out,), jnp.float32) * 0.1,
        "w2": jax.random.normal(ks[2], (c_out, c_out), jnp.float32) * 0.1,   # 1x1 conv
        "cb2": jax.random.normal(ks[3], (c_out,), jnp.float32) * 0.1,
        "w3": jax.random.normal(ks[4], (3, 3, c_in, c_out), jnp.float32) * 0.1,
        "cb3": jax.random.normal(ks[5], (c_out,), jnp.float32) * 0.1,
        # BatchNorm params (eval mode: gamma, beta, running_mean, running_var)
        "bn1_g": jax.random.uniform(ks[6], (c_in,), jnp.float32, 0.5, 1.5),
        "bn1_b": jax.random.normal(ks[7], (c_in,), jnp.float32) * 0.1,
        "bn1_m": jax.random.normal(ks[8], (c_in,), jnp.float32) * 0.1,
        "bn1_v": jax.random.uniform(ks[9], (c_in,), jnp.float32, 0.5, 1.5),
        "bn2_g": jax.random.uniform(ks[10], (c_out,), jnp.float32, 0.5, 1.5),
        "bn2_b": jax.random.normal(ks[11], (c_out,), jnp.float32) * 0.1,
        "bn2_m": jnp.linspace(-0.1, 0.1, c_out, dtype=jnp.float32),
        "bn2_v": jnp.linspace(0.8, 1.2, c_out, dtype=jnp.float32),
        "bn3_g": jnp.linspace(0.7, 1.3, c_out, dtype=jnp.float32),
        "bn3_b": jnp.linspace(-0.2, 0.2, c_out, dtype=jnp.float32),
        "bn3_m": jnp.linspace(-0.05, 0.05, c_out, dtype=jnp.float32),
        "bn3_v": jnp.linspace(0.9, 1.1, c_out, dtype=jnp.float32),
    }
    return p


if __name__ == "__main__":
    key = jax.random.PRNGKey(0)
    k_x, k_p = jax.random.split(key)

    N, C_IN, C_OUT, H, W = 2, 4, 8, 16, 16
    x = jax.random.normal(k_x, (N, C_IN, H, W), jnp.float32)   # NCHW like PyTorch
    params = init_params(k_p, C_IN, C_OUT)

    fwd = jax.jit(conv_layer_forward)
    out = jax.block_until_ready(fwd(x, params))

    ref = reference_forward(x, params)
    # bf16 MXU operands (f32 accumulation) => looser tolerance than an f32-only version.
    np.testing.assert_allclose(np.asarray(out), np.asarray(ref), rtol=3e-2, atol=3e-2)
    assert out.shape == (N, C_OUT, H - 2, W - 2)

    print("KERNEL_OK")
</pallas_src>

<mosaic_0001>
module attributes {stable_mosaic.version = 11 : i64} {
  func.func @_conv_layer_kernel(%arg0: i32, %arg1: memref<2x16x16x4xbf16, #tpu.memory_space<vmem>>, %arg2: memref<2x4xf32, #tpu.memory_space<vmem>>, %arg3: memref<72x16xbf16, #tpu.memory_space<vmem>>, %arg4: memref<1x8xf32, #tpu.memory_space<vmem>>, %arg5: memref<8x8xbf16, #tpu.memory_space<vmem>>, %arg6: memref<1x8xf32, #tpu.memory_space<vmem>>, %arg7: memref<2x16x16x8xf32, #tpu.memory_space<vmem>>, %arg8: memref<544x24xbf16, #tpu.memory_space<vmem>>) attributes {dimension_semantics = [#tpu.dimension_semantics<parallel>], iteration_bounds = array<i64: 1>, scalar_prefetch = 0 : i64, scratch_operands = 1 : i64, tpu.core_type = #tpu.core_type<tc>, window_params = [{transform_indices = @transform_0, window_bounds = array<i64: 2, 16, 16, 4>}, {pipeline_mode = #tpu.pipeline_mode<synchronous>, transform_indices = @transform_1, window_bounds = array<i64: 2, 4>}, {pipeline_mode = #tpu.pipeline_mode<synchronous>, transform_indices = @transform_2, window_bounds = array<i64: 72, 16>}, {pipeline_mode = #tpu.pipeline_mode<synchronous>, transform_indices = @transform_3, window_bounds = array<i64: 1, 8>}, {pipeline_mode = #tpu.pipeline_mode<synchronous>, transform_indices = @transform_4, window_bounds = array<i64: 8, 8>}, {pipeline_mode = #tpu.pipeline_mode<synchronous>, transform_indices = @transform_5, window_bounds = array<i64: 1, 8>}, {transform_indices = @transform_6, window_bounds = array<i64: 2, 16, 16, 8>}]} {
    %c0 = arith.constant 0 : index
    %c0_0 = arith.constant 0 : index
    %0 = vector.load %arg2[%c0, %c0_0] : memref<2x4xf32, #tpu.memory_space<vmem>>, vector<2x4xf32>
    %c0_1 = arith.constant 0 : index
    %c0_2 = arith.constant 0 : index
    %c0_3 = arith.constant 0 : index
    %c0_4 = arith.constant 0 : index
    %1 = vector.load %arg1[%c0_1, %c0_2, %c0_3, %c0_4] : memref<2x16x16x4xbf16, #tpu.memory_space<vmem>>, vector<2x16x16x4xbf16>
    %2 = arith.extf %1 : vector<2x16x16x4xbf16> to vector<2x16x16x4xf32>
    %3 = vector.extract_strided_slice %0 {offsets = [0, 0], sizes = [1, 4], strides = [1, 1]} : vector<2x4xf32> to vector<1x4xf32>
    %4 = vector.shape_cast %3 : vector<1x4xf32> to vector<4xf32>
    %5 = vector.shape_cast %4 : vector<4xf32> to vector<1x1x1x4xf32>
    %6 = vector.broadcast %5 : vector<1x1x1x4xf32> to vector<2x16x16x4xf32>
    %7 = arith.mulf %2, %6 : vector<2x16x16x4xf32>
    %8 = vector.extract_strided_slice %0 {offsets = [1, 0], sizes = [1, 4], strides = [1, 1]} : vector<2x4xf32> to vector<1x4xf32>
    %9 = vector.shape_cast %8 : vector<1x4xf32> to vector<4xf32>
    %10 = vector.shape_cast %9 : vector<4xf32> to vector<1x1x1x4xf32>
    %11 = vector.broadcast %10 : vector<1x1x1x4xf32> to vector<2x16x16x4xf32>
    %12 = arith.addf %7, %11 : vector<2x16x16x4xf32>
    %cst = arith.constant 0.000000e+00 : f32
    %13 = vector.broadcast %cst : f32 to vector<2x16x16x4xf32>
    %14 = arith.maximumf %12, %13 : vector<2x16x16x4xf32>
    %15 = tpu.concatenate %14, %2 in 3 : vector<2x16x16x4xf32>, vector<2x16x16x4xf32> -> vector<2x16x16x8xf32>
    %16 = arith.truncf %15 : vector<2x16x16x8xf32> to vector<2x16x16x8xbf16>
    %17 = vector.shape_cast %16 : vector<2x16x16x8xbf16> to vector<512x8xbf16>
    %cst_5 = arith.constant 0.000000e+00 : bf16
    %18 = vector.broadcast %cst_5 : bf16 to vector<8x8xbf16>
    %19 = tpu.concatenate %17, %18 in 0 : vector<512x8xbf16>, vector<8x8xbf16> -> vector<520x8xbf16>
    %20 = vector.extract_strided_slice %19 {offsets = [0, 0], sizes = [512, 8], strides = [1, 1]} : vector<520x8xbf16> to vector<512x8xbf16>
    %21 = vector.extract_strided_slice %19 {offsets = [1, 0], sizes = [512, 8], strides = [1, 1]} : vector<520x8xbf16> to vector<512x8xbf16>
    %22 = vector.extract_strided_slice %19 {offsets = [2, 0], sizes = [512, 8], strides = [1, 1]} : vector<520x8xbf16> to vector<512x8xbf16>
    %23 = tpu.concatenate %20, %21, %22 in 1 : vector<512x8xbf16>, vector<512x8xbf16>, vector<512x8xbf16> -> vector<512x24xbf16>
    %c0_6 = arith.constant 0 : index
    %c0_7 = arith.constant 0 : index
    %24 = vector.load %arg8[%c0_6, %c0_7] : memref<544x24xbf16, #tpu.memory_space<vmem>>, vector<512x24xbf16>
    tpu.vector_store %arg8[%c0_6, %c0_7], %23 {strides = array<i32>} : memref<544x24xbf16, #tpu.memory_space<vmem>>, vector<512x24xbf16>,
    %cst_8 = arith.constant 0.000000e+00 : bf16
    %25 = vector.broadcast %cst_8 : bf16 to vector<32x24xbf16>
    %c512 = arith.constant 512 : index
    %c0_9 = arith.constant 0 : index
    %26 = vector.load %arg8[%c512, %c0_9] : memref<544x24xbf16, #tpu.memory_space<vmem>>, vector<32x24xbf16>
    tpu.vector_store %arg8[%c512, %c0_9], %25 {strides = array<i32>} : memref<544x24xbf16, #tpu.memory_space<vmem>>, vector<32x24xbf16>,
    %c0_10 = arith.constant 0 : index
    %c0_11 = arith.constant 0 : index
    %27 = vector.load %arg8[%c0_10, %c0_11] : memref<544x24xbf16, #tpu.memory_space<vmem>>, vector<512x24xbf16>
    %c0_12 = arith.constant 0 : index
    %c0_13 = arith.constant 0 : index
    %28 = vector.load %arg3[%c0_12, %c0_13] : memref<72x16xbf16, #tpu.memory_space<vmem>>, vector<24x16xbf16>
    %cst_14 = arith.constant dense<0.000000e+00> : vector<512x16xf32>
    %29 = tpu.matmul %27, %28, %cst_14 {dimension_numbers = #tpu.dot_dimension_numbers<[1], [0], [0], [1], [0, 0, 1, 1], [], []>} : vector<512x24xbf16>, vector<24x16xbf16>, vector<512x16xf32> -> vector<512x16xf32>
    %c16 = arith.constant 16 : index
    %c0_15 = arith.constant 0 : index
    %30 = vector.load %arg8[%c16, %c0_15] : memref<544x24xbf16, #tpu.memory_space<vmem>>, vector<512x24xbf16>
    %c24 = arith.constant 24 : index
    %c0_16 = arith.constant 0 : index
    %31 = vector.load %arg3[%c24, %c0_16] : memref<72x16xbf16, #tpu.memory_space<vmem>>, vector<24x16xbf16>
    %cst_17 = arith.constant dense<0.000000e+00> : vector<512x16xf32>
    %32 = tpu.matmul %30, %31, %cst_17 {dimension_numbers = #tpu.dot_dimension_numbers<[1], [0], [0], [1], [0, 0, 1, 1], [], []>} : vector<512x24xbf16>, vector<24x16xbf16>, vector<512x16xf32> -> vector<512x16xf32>
    %33 = arith.addf %29, %32 : vector<512x16xf32>
    %c32 = arith.constant 32 : index
    %c0_18 = arith.constant 0 : index
    %34 = vector.load %arg8[%c32, %c0_18] : memref<544x24xbf16, #tpu.memory_space<vmem>>, vector<512x24xbf16>
    %c48 = arith.constant 48 : index
    %c0_19 = arith.constant 0 : index
    %35 = vector.load %arg3[%c48, %c0_19] : memref<72x16xbf16, #tpu.memory_space<vmem>>, vector<24x16xbf16>
    %cst_20 = arith.constant dense<0.000000e+00> : vector<512x16xf32>
    %36 = tpu.matmul %34, %35, %cst_20 {dimension_numbers = #tpu.dot_dimension_numbers<[1], [0], [0], [1], [0, 0, 1, 1], [], []>} : vector<512x24xbf16>, vector<24x16xbf16>, vector<512x16xf32> -> vector<512x16xf32>
    %37 = arith.addf %33, %36 : vector<512x16xf32>
    %38 = vector.extract_strided_slice %37 {offsets = [0, 0], sizes = [512, 8], strides = [1, 1]} : vector<512x16xf32> to vector<512x8xf32>
    %c0_21 = arith.constant 0 : index
    %c0_22 = arith.constant 0 : index
    %39 = vector.load %arg4[%c0_21, %c0_22] : memref<1x8xf32, #tpu.memory_space<vmem>>, vector<1x8xf32>
    %40 = vector.broadcast %39 : vector<1x8xf32> to vector<512x8xf32>
    %41 = arith.addf %38, %40 : vector<512x8xf32>
    %cst_23 = arith.constant 0.000000e+00 : f32
    %42 = vector.broadcast %cst_23 : f32 to vector<512x8xf32>
    %43 = arith.maximumf %41, %42 : vector<512x8xf32>
    %44 = arith.truncf %43 : vector<512x8xf32> to vector<512x8xbf16>
    %c0_24 = arith.constant 0 : index
    %c0_25 = arith.constant 0 : index
    %45 = vector.load %arg5[%c0_24, %c0_25] : memref<8x8xbf16, #tpu.memory_space<vmem>>, vector<8x8xbf16>
    %cst_26 = arith.constant dense<0.000000e+00> : vector<512x8xf32>
    %46 = tpu.matmul %44, %45, %cst_26 {dimension_numbers = #tpu.dot_dimension_numbers<[1], [0], [0], [1], [0, 0, 1, 1], [], []>} : vector<512x8xbf16>, vector<8x8xbf16>, vector<512x8xf32> -> vector<512x8xf32>
    %47 = vector.extract_strided_slice %37 {offsets = [0, 8], sizes = [512, 8], strides = [1, 1]} : vector<512x16xf32> to vector<512x8xf32>
    %48 = arith.addf %46, %47 : vector<512x8xf32>
    %c0_27 = arith.constant 0 : index
    %c0_28 = arith.constant 0 : index
    %49 = vector.load %arg6[%c0_27, %c0_28] : memref<1x8xf32, #tpu.memory_space<vmem>>, vector<1x8xf32>
    %50 = vector.broadcast %49 : vector<1x8xf32> to vector<512x8xf32>
    %51 = arith.addf %48, %50 : vector<512x8xf32>
    %52 = vector.shape_cast %51 : vector<512x8xf32> to vector<2x16x16x8xf32>
    %c0_29 = arith.constant 0 : index
    %c0_30 = arith.constant 0 : index
    %c0_31 = arith.constant 0 : index
    %c0_32 = arith.constant 0 : index
    %53 = vector.load %arg7[%c0_29, %c0_30, %c0_31, %c0_32] : memref<2x16x16x8xf32, #tpu.memory_space<vmem>>, vector<2x16x16x8xf32>
    tpu.vector_store %arg7[%c0_29, %c0_30, %c0_31, %c0_32], %52 {strides = array<i32>} : memref<2x16x16x8xf32, #tpu.memory_space<vmem>>, vector<2x16x16x8xf32>,
    return
  }
  func.func @transform_0(%arg0: i32) -> (i32, i32, i32, i32) {
    %c0_i32 = arith.constant 0 : i32
    %c0_i32_0 = arith.constant 0 : i32
    %c0_i32_1 = arith.constant 0 : i32
    %c0_i32_2 = arith.constant 0 : i32
    return %arg0, %c0_i32, %c0_i32_0, %c0_i32_1 : i32, i32, i32, i32
  }
  func.func @transform_1(%arg0: i32) -> (i32, i32) {
    %c0_i32 = arith.constant 0 : i32
    %c0_i32_0 = arith.constant 0 : i32
    %c0_i32_1 = arith.constant 0 : i32
    return %c0_i32, %c0_i32_0 : i32, i32
  }
  func.func @transform_2(%arg0: i32) -> (i32, i32) {
    %c0_i32 = arith.constant 0 : i32
    %c0_i32_0 = arith.constant 0 : i32
    %c0_i32_1 = arith.constant 0 : i32
    return %c0_i32, %c0_i32_0 : i32, i32
  }
  func.func @transform_3(%arg0: i32) -> (i32, i32) {
    %c0_i32 = arith.constant 0 : i32
    %c0_i32_0 = arith.constant 0 : i32
    %c0_i32_1 = arith.constant 0 : i32
    return %c0_i32, %c0_i32_0 : i32, i32
  }
  func.func @transform_4(%arg0: i32) -> (i32, i32) {
    %c0_i32 = arith.constant 0 : i32
    %c0_i32_0 = arith.constant 0 : i32
    %c0_i32_1 = arith.constant 0 : i32
    return %c0_i32, %c0_i32_0 : i32, i32
  }
  func.func @transform_5(%arg0: i32) -> (i32, i32) {
    %c0_i32 = arith.constant 0 : i32
    %c0_i32_0 = arith.constant 0 : i32
    %c0_i32_1 = arith.constant 0 : i32
    return %c0_i32, %c0_i32_0 : i32, i32
  }
  func.func @transform_6(%arg0: i32) -> (i32, i32, i32, i32) {
    %c0_i32 = arith.constant 0 : i32
    %c0_i32_0 = arith.constant 0 : i32
    %c0_i32_1 = arith.constant 0 : i32
    %c0_i32_2 = arith.constant 0 : i32
    return %arg0, %c0_i32, %c0_i32_0, %c0_i32_1 : i32, i32, i32, i32
  }
}

</mosaic_0001>

<bundles_post_ra>
// kernel: conv_layer_forward.1
= control target key start
LH: loop header
LB: loop body
LE: loop exit
PB: predicated region body
PF: predicated region fallthrough
CT: control target
= control target key end

     0   :  { %s4661_s29 = smov 4   ;;  %vm603_vm0 = vcmask 31744   ;;  %vm1218_vm1 = vcmask 1046528   ;;  %vm892_vm2 = vsmask.f32 7424  ;;  %s4663_s14 = smov 8   ;;  %s6685_s0 = inlined_call_operand.vmem [shape: bf16[2,16,16,4], index: 0, kind: input, shape index: {}]   ;;  %s6686_s1 = inlined_call_operand.vmem [shape: f32[2,4], index: 1, kind: input, shape index: {}]   ;;  %s6687_s2 = inlined_call_operand.vmem [shape: bf16[72,16], index: 2, kind: input, shape index: {}]   ;;  %s6688_s3 = inlined_call_operand.vmem [shape: f32[1,8], index: 3, kind: input, shape index: {}]   ;;  %s6689_s4 = inlined_call_operand.vmem [shape: bf16[8,8], index: 4, kind: input, shape index: {}]   ;;  %s6690_s5 = inlined_call_operand.vmem [shape: f32[1,8], index: 5, kind: input, shape index: {}]   ;;  %s6691_s6 = inlined_call_operand.vmem [shape: f32[2,16,16,8], index: 6, kind: output, shape index: {}]  }
   0x1   :  { %v4461_v0 = vld [vmem:[%s6685_s0 + $0x10] sm:$0xff]   ;;  %v4333_v1 = vld [vmem:[%s6685_s0] sm:$0xff]   ;;  %v4710_v6 = vld [vmem:[%s6685_s0 + $0x18] sm:$0xff]   ;;  %vm2109_vm3 = vcmask 1043456   ;;  %vm1413_vm4 = vcmask 130048   ;;  %vm1348_vm5 = vcmask 64512  }
   0x2   :  { %v4342_v2 = vunpack.c.l.bf16 %v4461_v0  ;;  %v4343_v3 = vunpack.c.h.bf16 %v4461_v0  ;;  %v4334_v4 = vunpack.c.l.bf16 %v4333_v1  ;;  %v4335_v5 = vunpack.c.h.bf16 %v4333_v1  ;;  %v4715_v8 = vld [vmem:[%s6685_s0 + $0x8] sm:$0xff]   ;;  %v4463_v14 = vld [vmem:[%s6685_s0 + $0x20] sm:$0xff]   ;;  %v4729_v19 = vld [vmem:[%s6685_s0 + $0x30] sm:$0xff]  }
   0x3   :  { %v4346_v10 = vunpack.c.l.bf16 %v4710_v6  ;;  %v4347_v11 = vunpack.c.h.bf16 %v4710_v6  ;;  %v4338_v12 = vunpack.c.l.bf16 %v4715_v8  ;;  %v4339_v13 = vunpack.c.h.bf16 %v4715_v8  ;;  %v4464_v20 = vld [vmem:[%s6685_s0 + $0x28] sm:$0xff]   ;;  %v24_v28 = vld [vmem:[%s6686_s1] sm:$0x3]  ;;  %s4662_s1 = smov 16  }
   0x4   :  { %v4496_v7 = vpack.i.bf16 %v4343_v3, %v4342_v2  ;;  %v4506_v9 = vpack.i.bf16 %v4335_v5, %v4334_v4  ;;  %v4350_v16 = vunpack.c.l.bf16 %v4463_v14  ;;  %v4351_v18 = vunpack.c.h.bf16 %v4463_v14 }
   0x5   :  { %v4501_v15 = vpack.i.bf16 %v4347_v11, %v4346_v10  ;;  %v4511_v17 = vpack.i.bf16 %v4339_v13, %v4338_v12  ;;  %v4358_v22 = vunpack.c.l.bf16 %v4729_v19  ;;  %v4359_v23 = vunpack.c.h.bf16 %v4729_v19 }
   0x6   :  { %4497 = vrot.lane.b32.xlu0 %v4496_v7, %s4661_s29  ;;  %4507 = vrot.lane.b32.xlu1 %v4506_v9, %s4661_s29  ;;  %v4516_v21 = vpack.i.bf16 %v4351_v18, %v4350_v16  ;;  %v4354_v24 = vunpack.c.l.bf16 %v4464_v20  ;;  %v4355_v25 = vunpack.c.h.bf16 %v4464_v20  ;;  %v4748_v29 = vperm.slane %v24_v28, 0 }
   0x7   :  { %v4526_v26 = vpack.i.bf16 %v4359_v23, %v4358_v22  ;;  %v4752_v32 = vperm.slane %v24_v28, 1  ;;  %vm1702_vm6 = vcmask 191488   ;;  %vm2012_vm7 = vcmask 195584  }
   0x8   :  { %4517 = vrot.lane.b32.xlu2 %v4516_v21, %s4661_s29  ;;  %v4521_v27 = vpack.i.bf16 %v4355_v25, %v4354_v24  ;;  %v163_v30 = vmul.f32 %v4351_v18, %v4748_v29  ;;  %v162_v31 = vmul.f32 %v4350_v16, %v4748_v29  ;;  %v165_v40 = vmul.f32 %v4355_v25, %v4748_v29 }
   0x9   :  { %v164_v41 = vmul.f32 %v4354_v24, %v4748_v29  ;;  %v159_v46 = vmul.f32 %v4343_v3, %v4748_v29  ;;  %v158_v47 = vmul.f32 %v4342_v2, %v4748_v29  ;;  %v155_v50 = vmul.f32 %v4335_v5, %v4748_v29 }
   0xa   :  { %v228_v33 = vadd.f32 %v4752_v32, %v163_v30  ;;  %v227_v34 = vadd.f32 %v4752_v32, %v162_v31  ;;  %v154_v51 = vmul.f32 %v4334_v4, %v4748_v29  ;;  %v230_v52 = vadd.f32 %v4752_v32, %v165_v40 }
   0xb   :  { %v229_v53 = vadd.f32 %v4752_v32, %v164_v41  ;;  %v224_v55 = vadd.f32 %v4752_v32, %v159_v46  ;;  %v223_v56 = vadd.f32 %v4752_v32, %v158_v47  ;;  %v161_v57 = vmul.f32 %v4347_v11, %v4748_v29 }
   0xc   :  { %v292_v35 = vmax.f32 %v228_v33, 0.0  ;;  %v291_v36 = vmax.f32 %v227_v34, 0.0  ;;  %v160_v58 = vmul.f32 %v4346_v10, %v4748_v29  ;;  %v220_v59 = vadd.f32 %v4752_v32, %v155_v50 }
   0xd   :  { %v219_v60 = vadd.f32 %v4752_v32, %v154_v51  ;;  %v294_v61 = vmax.f32 %v230_v52, 0.0  ;;  %v293_v62 = vmax.f32 %v229_v53, 0.0  ;;  %v157_v0 = vmul.f32 %v4339_v13, %v4748_v29 }
   0xe   :  { %4502 = vrot.lane.b32.xlu0 %v4501_v15, %s4661_s29  ;;  %4512 = vrot.lane.b32.xlu1 %v4511_v17, %s4661_s29  ;;  %v156_v1 = vmul.f32 %v4338_v12, %v4748_v29  ;;  %v288_v4 = vmax.f32 %v224_v55, 0.0  ;;  %v287_v5 = vmax.f32 %v223_v56, 0.0  ;;  %v226_v6 = vadd.f32 %v4752_v32, %v161_v57 }
   0xf   :  { %v225_v7 = vadd.f32 %v4752_v32, %v160_v58  ;;  %v284_v8 = vmax.f32 %v220_v59, 0.0  ;;  %v283_v9 = vmax.f32 %v219_v60, 0.0  ;;  %v222_v18 = vadd.f32 %v4752_v32, %v157_v0 }
  0x10   :  { %4522 = vrot.lane.b32.xlu2 %v4521_v27, %s4661_s29  ;;  %v221_v20 = vadd.f32 %v4752_v32, %v156_v1 }
  0x11   :  { %v286_v46 = vmax.f32 %v222_v18, 0.0 }
  0x12   :  { %v285_v47 = vmax.f32 %v221_v20, 0.0 }
  0x16   :  { %4527 = vrot.lane.b32.xlu0 %v4526_v26, %s4661_s29 }
  0x62   :  { %v4518_v37 = vpop.permute.xlu2 %4517 }
  0x63   :  { %v4520_v38 = vunpack.i.h.bf16 %v4518_v37  ;;  %v4519_v39 = vunpack.i.l.bf16 %v4518_v37 }
  0x65   :  { %v613_v42 = vsel %vm603_vm0, %v292_v35, %v4520_v38  ;;  %v612_v43 = vsel %vm603_vm0, %v291_v36, %v4519_v39  ;;  %v290_v38 = vmax.f32 %v226_v6, 0.0  ;;  %v167_v39 = vmul.f32 %v4359_v23, %v4748_v29 }
  0x66   :  { %v677_v44 = vpack.c.bf16 %v613_v42, %v613_v42  ;;  %v676_v45 = vpack.c.bf16 %v612_v43, %v612_v43  ;;  %v289_v42 = vmax.f32 %v225_v7, 0.0  ;;  %v166_v43 = vmul.f32 %v4358_v22, %v4748_v29 }
  0x67   :  { %v232_v23 = vadd.f32 %v4752_v32, %v167_v39 }
  0x68   :  { %v805_v48 = vunpack.c.l.b16 %v677_v44  ;;  %v804_v49 = vunpack.c.l.b16 %v676_v45  ;;  %v231_v57 = vadd.f32 %v4752_v32, %v166_v43 }
  0x6a   :  { %v4766_v54 = vpack.c.b16 %v805_v48, %v804_v49  ;;  %v4523_v63 = vpop.permute.xlu2 %4522 }
  0x6b   :  { %v4525_v2 = vunpack.i.h.bf16 %v4523_v63  ;;  %v4524_v3 = vunpack.i.l.bf16 %v4523_v63 }
  0x6d   :  { %v615_v11 = vsel %vm603_vm0, %v294_v61, %v4525_v2  ;;  %v614_v14 = vsel %vm603_vm0, %v293_v62, %v4524_v3  ;;  %v296_v2 = vmax.f32 %v232_v23, 0.0 }
  0x6e   :  { %v679_v17 = vpack.c.bf16 %v615_v11, %v615_v11  ;;  %v678_v12 = vpack.c.bf16 %v614_v14, %v614_v14 }
  0x70   :  { %v807_v27 = vunpack.c.l.b16 %v679_v17  ;;  %v806_v28 = vunpack.c.l.b16 %v678_v12 }
  0x72   :  { %v4786_v37 = vpack.c.b16 %v807_v27, %v806_v28 }
  0x78   :  { %v4498_v10 = vpop.permute.xlu0 %4497  ;;  %v4508_v13 = vpop.permute.xlu1 %4507 }
  0x79   :  { %v4500_v15 = vunpack.i.h.bf16 %v4498_v10  ;;  %v4499_v16 = vunpack.i.l.bf16 %v4498_v10  ;;  %v4510_v21 = vunpack.i.h.bf16 %v4508_v13  ;;  %v4509_v24 = vunpack.i.l.bf16 %v4508_v13 }
  0x7b   :  { %v609_v25 = vsel %vm603_vm0, %v288_v4, %v4500_v15  ;;  %v608_v26 = vsel %vm603_vm0, %v287_v5, %v4499_v16  ;;  %v605_v33 = vsel %vm603_vm0, %v284_v8, %v4510_v21  ;;  %v604_v34 = vsel %vm603_vm0, %v283_v9, %v4509_v24 }
  0x7c   :  { %v673_v30 = vpack.c.bf16 %v609_v25, %v609_v25  ;;  %v672_v31 = vpack.c.bf16 %v608_v26, %v608_v26  ;;  %v669_v35 = vpack.c.bf16 %v605_v33, %v605_v33  ;;  %v668_v36 = vpack.c.bf16 %v604_v34, %v604_v34 }
  0x7d   :  { %v295_v5 = vmax.f32 %v231_v57, 0.0  ;;  %v929_v57 = vshrl.u32 %v4766_v54, 16 }
  0x7e   :  { %v801_v40 = vunpack.c.l.b16 %v673_v30  ;;  %v800_v41 = vunpack.c.l.b16 %v672_v31  ;;  %v797_v44 = vunpack.c.l.b16 %v669_v35  ;;  %v796_v45 = vunpack.c.l.b16 %v668_v36 }
  0x80   :  { %v4794_v48 = vpack.c.b16 %v801_v40, %v800_v41  ;;  %v4503_v49 = vpop.permute.xlu0 %4502  ;;  %v4796_v50 = vpack.c.b16 %v797_v44, %v796_v45  ;;  %v4513_v53 = vpop.permute.xlu1 %4512 }
  0x81   :  { %v4505_v51 = vunpack.i.h.bf16 %v4503_v49  ;;  %v4504_v52 = vunpack.i.l.bf16 %v4503_v49  ;;  %v4515_v55 = vunpack.i.h.bf16 %v4513_v53  ;;  %v4514_v56 = vunpack.i.l.bf16 %v4513_v53 }
  0x82   :  { %v909_v58 = vshll.u32 %v4794_v48, 16  ;;  %v896_v1 = vshll.u32 %v4796_v50, 16  ;;  %v913_v10 = vshrl.u32 %v4794_v48, 16  ;;  %v894_v11 = vshrl.u32 %v4796_v50, 16 }
  0x83   :  { %v611_v19 = vsel %vm603_vm0, %v290_v38, %v4505_v51  ;;  %v610_v22 = vsel %vm603_vm0, %v289_v42, %v4504_v52  ;;  %v607_v61 = vsel %vm603_vm0, %v286_v46, %v4515_v55  ;;  %v606_v62 = vsel %vm603_vm0, %v285_v47, %v4514_v56  ;;  %v4834_v47 = vld [vmem:[%s6685_s0 + $0x38] sm:$0xff]  }
  0x84   :  { %v675_v59 = vpack.c.bf16 %v611_v19, %v611_v19  ;;  %v674_v60 = vpack.c.bf16 %v610_v22, %v610_v22  ;;  %v671_v63 = vpack.c.bf16 %v607_v61, %v607_v61  ;;  %v670_v0 = vpack.c.bf16 %v606_v62, %v606_v62 }
  0x85   :  { %v911_v8 = vrot.slane %v909_v58, 1  ;;  %v898_v16 = vrot.slane %v896_v1, 1  ;;  %v1222_v12 = vrot.slane %v4794_v48, 1  ;;  %v1219_v43 = vrot.slane %v4796_v50, 1 }
  0x86   :  { %v803_v3 = vunpack.c.l.b16 %v675_v59  ;;  %v802_v4 = vunpack.c.l.b16 %v674_v60  ;;  %v799_v6 = vunpack.c.l.b16 %v671_v63  ;;  %v798_v7 = vunpack.c.l.b16 %v670_v0  ;;  %v4855_v60 = vld [vmem:[%s6685_s0 + $0x40] sm:$0xff]  }
  0x87   :  { %v915_v21 = vor.u32 %v913_v10, %v911_v8  ;;  %v899_v31 = vor.u32 %v898_v16, %v894_v11  ;;  %v925_v46 = vshll.u32 %v4766_v54, 16  ;;  %v4362_v53 = vunpack.c.l.bf16 %v4834_v47 }
  0x88   :  { %v4806_v9 = vpack.c.b16 %v803_v3, %v802_v4  ;;  %v4528_v14 = vpop.permute.xlu0 %4527  ;;  %v4810_v15 = vpack.c.b16 %v799_v6, %v798_v7  ;;  %v4363_v23 = vunpack.c.h.bf16 %v4834_v47  ;;  %v933_v19 = vshll.u32 %v4786_v37, 16  ;;  %v4874_v7 = vld [vmem:[%s6685_s0 + $0x48] sm:$0xff]  }
  0x89   :  { %v4530_v13 = vunpack.i.h.bf16 %v4528_v14  ;;  %v4529_v17 = vunpack.i.l.bf16 %v4528_v14  ;;  %v927_v56 = vrot.slane %v925_v46, 1  ;;  %v1226_v58 = vrot.slane %v4766_v54, 1  ;;  %v4959_v46 = vld [vmem:[%s6685_s0 + $0x78] sm:$0xff]  }
  0x8a   :  { %v1224_v18 = vrot.slane %v4806_v9, 1  ;;  %v917_v20 = vshll.u32 %v4806_v9, 16  ;;  %v901_v24 = vshll.u32 %v4810_v15, 16  ;;  %v905_v36 = vshrl.u32 %v4810_v15, 16 }
  0x8b   :  { %v617_v25 = vsel %vm603_vm0, %v296_v2, %v4530_v13  ;;  %v616_v30 = vsel %vm603_vm0, %v295_v5, %v4529_v17  ;;  %v1220_v41 = vrot.slane %v4810_v15, 1  ;;  %v921_v51 = vshrl.u32 %v4806_v9, 16 }
  0x8c   :  { %v1225_v26 = vsel %vm1218_vm1, %v1222_v12, %v1224_v18  ;;  %v919_v27 = vrot.slane %v917_v20, 1  ;;  %v681_v28 = vpack.c.bf16 %v617_v25, %v617_v25  ;;  %v903_v33 = vrot.slane %v901_v24, 1 }
  0x8d   :  { %1288 = vrot.lane.b32.xlu2 %v1225_v26, %s4662_s1  ;;  %v680_v34 = vpack.c.bf16 %v616_v30, %v616_v30  ;;  %v1221_v45 = vsel %vm1218_vm1, %v1219_v43, %v1220_v41  ;;  %v1223_v52 = vsel %vm1218_vm1, %v1220_v41, %v1222_v12  ;;  %v4531_v22 = vpack.i.bf16 %v4363_v23, %v4362_v53  ;;  %v4911_v26 = vld [vmem:[%s6685_s0 + $0x58] sm:$0xff]   ;;  %v4947_v41 = vld [vmem:[%s6685_s0 + $0x70] sm:$0xff]  }
  0x8e   :  { %v920_v35 = vsel %vm892_vm2, %v915_v21, %v919_v27  ;;  %v809_v38 = vunpack.c.l.b16 %v681_v28  ;;  %v904_v39 = vsel %vm892_vm2, %v899_v31, %v903_v33  ;;  %v907_v44 = vor.u32 %v905_v36, %v903_v33  ;;  %v4923_v31 = vld [vmem:[%s6685_s0 + $0x60] sm:$0xff]   ;;  %v4935_v36 = vld [vmem:[%s6685_s0 + $0x68] sm:$0xff]  }
  0x8f   :  { %1157 = vrot.lane.b32.xlu1 %v920_v35, %s4663_s14  ;;  %v808_v40 = vunpack.c.l.b16 %v680_v34  ;;  %1153 = vrot.lane.b32.xlu0 %v904_v39, %s4663_s14  ;;  %v923_v55 = vor.u32 %v921_v51, %v919_v27  ;;  %v931_v61 = vor.u32 %v929_v57, %v927_v56  ;;  %v935_v62 = vrot.slane %v933_v19, 1 }
  0x90   :  { %v912_v49 = vsel %vm892_vm2, %v907_v44, %v911_v8  ;;  %v1227_v63 = vsel %vm1218_vm1, %v1224_v18, %v1226_v58  ;;  %v4366_v0 = vunpack.c.l.bf16 %v4855_v60  ;;  %v4367_v1 = vunpack.c.h.bf16 %v4855_v60  ;;  %v4894_v18 = vld [vmem:[%s6685_s0 + $0x50] sm:$0xff]  }
  0x91   :  { %v4826_v42 = vpack.c.b16 %v809_v38, %v808_v40  ;;  %v928_v59 = vsel %vm892_vm2, %v923_v55, %v927_v56  ;;  %v1228_v2 = vrot.slane %v4786_v37, 1  ;;  %v936_v3 = vsel %vm892_vm2, %v931_v61, %v935_v62  ;;  %v4971_v55 = vld [vmem:[%s6685_s0 + $0x80] sm:$0xff]   ;;  %v1837_v61 = vld [vmem:[%s6687_s2 + $0x8] sm:$0xf] }
  0x92   :  { %v937_v4 = vshrl.u32 %v4786_v37, 16  ;;  %v4536_v6 = vpack.i.bf16 %v4367_v1, %v4366_v0  ;;  %v4370_v14 = vunpack.c.l.bf16 %v4874_v7  ;;  %v4371_v16 = vunpack.c.h.bf16 %v4874_v7 }
  0x93   :  { %v941_v5 = vshll.u32 %v4826_v42, 16  ;;  %v1229_v8 = vsel %vm1218_vm1, %v1226_v58, %v1228_v2  ;;  %v1230_v13 = vrot.slane %v4826_v42, 1  ;;  %v4374_v21 = vunpack.c.l.bf16 %v4894_v18 }
  0x94   :  { %v939_v10 = vor.u32 %v937_v4, %v935_v62  ;;  %v4541_v12 = vpack.i.bf16 %v4371_v16, %v4370_v14  ;;  %v4375_v24 = vunpack.c.h.bf16 %v4894_v18  ;;  %v4378_v27 = vunpack.c.l.bf16 %v4911_v26  ;;  %v2537_v62 = vld [vmem:[%s6687_s2 + $0x20] sm:$0xf] }
  0x95   :  { %1284 = vrot.lane.b32.xlu2 %v1221_v45, %s4662_s1  ;;  %v4878_v11 = vrot.slane %v941_v5, 1  ;;  %v1231_v20 = vsel %vm1218_vm1, %v1228_v2, %v1230_v13  ;;  %v4379_v28 = vunpack.c.h.bf16 %v4911_v26  ;;  %v4382_v33 = vunpack.c.l.bf16 %v4923_v31 }
  0x96   :  { %v4546_v25 = vpack.i.bf16 %v4375_v24, %v4374_v21  ;;  %v4383_v34 = vunpack.c.h.bf16 %v4923_v31  ;;  %v4386_v38 = vunpack.c.l.bf16 %v4935_v36  ;;  %v4387_v39 = vunpack.c.h.bf16 %v4935_v36 }
  0x97   :  { %1155 = vrot.lane.b32.xlu1 %v912_v49, %s4663_s14  ;;  %1286 = vrot.lane.b32.xlu0 %v1223_v52, %s4662_s1  ;;  %v944_v17 = vsel %vm892_vm2, %v939_v10, %v4878_v11  ;;  %v4551_v30 = vpack.i.bf16 %v4379_v28, %v4378_v27  ;;  %v4390_v43 = vunpack.c.l.bf16 %v4947_v41  ;;  %v4391_v44 = vunpack.c.h.bf16 %v4947_v41 }
  0x98   :  { %v4556_v35 = vpack.i.bf16 %v4383_v34, %v4382_v33  ;;  %v4561_v40 = vpack.i.bf16 %v4387_v39, %v4386_v38  ;;  %v4394_v49 = vunpack.c.l.bf16 %v4959_v46  ;;  %v4395_v51 = vunpack.c.h.bf16 %v4959_v46 }
  0x99   :  { %v4566_v45 = vpack.i.bf16 %v4391_v44, %v4390_v43  ;;  %v4398_v56 = vunpack.c.l.bf16 %v4971_v55  ;;  %v4399_v57 = vunpack.c.h.bf16 %v4971_v55  ;;  %v2703_v2 = vunpack.c.l.b16 %v2537_v62  ;;  %v5386_v55 = vld [vmem:[%s6685_s0 + $0xf8] sm:$0xff]  }
  0x9a   :  { %v4571_v52 = vpack.i.bf16 %v4395_v51, %v4394_v49 }
  0x9b   :  { %v4576_v19 = vpack.i.bf16 %v4399_v57, %v4398_v56  ;;  %v2705_v4 = vpack.c.b16 %v2703_v2, %v2703_v2  ;;  %v4298_v2 = vld [vmem:[%s6687_s2 + $0xc] sm:$0xff] }
  0x9d   :  { %1159 = vrot.lane.b32.xlu2 %v928_v59, %s4663_s14  ;;  %v2804_v10 = vsel %vm2109_vm3, %v2705_v4, 0  ;;  %v5040_v4 = vld [vmem:[%s6685_s0 + $0xa0] sm:$0xff]  }
  0x9e   :  { %2812 = vmatpush.bf16.msra.mxu2 %v2804_v10 }
  0x9f   :  { %4532 = vrot.lane.b32.xlu1 %v4531_v22, %s4661_s29  ;;  %1290 = vrot.lane.b32.xlu0 %v1227_v63, %s4662_s1  ;;  %v4983_v22 = vld [vmem:[%s6685_s0 + $0x88] sm:$0xff]   ;;  %v2292_v63 = vunpack.c.l.b16 %v1837_v61 }
  0xa0   :  { %v4402_v58 = vunpack.c.l.bf16 %v4983_v22  ;;  %v4403_v59 = vunpack.c.h.bf16 %v4983_v22 }
  0xa2   :  { %v4581_v5 = vpack.i.bf16 %v4403_v59, %v4402_v58 }
  0xa5   :  { %1161 = vrot.lane.b32.xlu2 %v936_v3, %s4663_s14  ;;  %v2294_v3 = vpack.c.b16 %v2292_v63, %v2292_v63 }
  0xa7   :  { %4537 = vrot.lane.b32.xlu1 %v4536_v6, %s4661_s29  ;;  %1292 = vrot.lane.b32.xlu0 %v1229_v8, %s4662_s1  ;;  %v5001_v6 = vld [vmem:[%s6685_s0 + $0x90] sm:$0xff]   ;;  %v2300_v8 = vsel %vm2109_vm3, %v2294_v3, 0 }
  0xa8   :  { %2308 = vmatpush.bf16.msra.mxu1 %v2300_v8  ;;  %v4415_v8 = vunpack.c.h.bf16 %v5040_v4 }
  0xad   :  { %1163 = vrot.lane.b32.xlu2 %v944_v17, %s4663_s14  ;;  %v4406_v17 = vunpack.c.l.bf16 %v5001_v6 }
  0xaf   :  { %4542 = vrot.lane.b32.xlu1 %v4541_v12, %s4661_s29  ;;  %1294 = vrot.lane.b32.xlu0 %v1231_v20, %s4662_s1  ;;  %v4407_v12 = vunpack.c.h.bf16 %v5001_v6  ;;  %v4296_v20 = vld [vmem:[%s6687_s2] sm:$0xff] }
  0xb0   :  { %2309 = vmatpush.bf16.msra.mxu1 %v4296_v20 }
  0xb7   :  { %4547 = vrot.lane.b32.xlu1 %v4546_v25, %s4661_s29  ;;  %v4331_v25 = vld [vmem:[%s6687_s2 + $0x18] sm:$0xff] }
  0xb8   :  { %2813 = vmatpush.bf16.msra.mxu2 %v4331_v25 }
  0xbf   :  { %4552 = vrot.lane.b32.xlu1 %v4551_v30, %s4661_s29  ;;  %v1842_v30 = vld [vmem:[%s6687_s2 + $0x14] sm:$0xf]  ;;  %s4665_s2 = smov 120  }
  0xc7   :  { %4557 = vrot.lane.b32.xlu1 %v4556_v35, %s4661_s29  ;;  %v2008_v35 = vunpack.c.l.b16 %v1842_v30 }
  0xcf   :  { %4562 = vrot.lane.b32.xlu1 %v4561_v40, %s4661_s29  ;;  %v2010_v40 = vpack.c.b16 %v2008_v35, %v2008_v35 }
  0xd7   :  { %4567 = vrot.lane.b32.xlu1 %v4566_v45, %s4661_s29  ;;  %v4586_v45 = vpack.i.bf16 %v4407_v12, %v4406_v17 }
  0xdf   :  { %4572 = vrot.lane.b32.xlu1 %v4571_v52, %s4661_s29  ;;  %v5024_v52 = vld [vmem:[%s6685_s0 + $0x98] sm:$0xff]  }
  0xe0   :  { %v6692_v62 = vunpack.c.l.bf16 %v5024_v52  ;;  %v4411_v63 = vunpack.c.h.bf16 %v5024_v52 }
  0xe2   :  { %v4591_v3 = vpack.i.bf16 %v4411_v63, %v6692_v62  ;;  %v5058_v62 = vld [vmem:[%s6685_s0 + $0xa8] sm:$0xff]  }
  0xe7   :  { %4577 = vrot.lane.b32.xlu1 %v4576_v19, %s4661_s29  ;;  %v2111_v19 = vsel %vm2109_vm3, %v2010_v40, 0  ;;  %v1289_v61 = vpop.permute.xlu2 %1288 }
  0xe8   :  { %2119 = vmatpush.bf16.msra.mxu0 %v2111_v19 }
  0xec   :  { %2120 = vmatpush.bf16.msra.mxu0 %v4298_v2 }
  0xef   :  { %4582 = vrot.lane.b32.xlu1 %v4581_v5, %s4661_s29  ;;  %v6693_v5 = vunpack.c.l.bf16 %v5040_v4  ;;  %v1285_v10 = vpop.permute.xlu2 %1284 }
  0xf7   :  { %4587 = vrot.lane.b32.xlu1 %v4586_v45, %s4661_s29  ;;  %v4596_v45 = vpack.i.bf16 %v4415_v8, %v6693_v5  ;;  %v6694_v5 = vunpack.c.l.bf16 %v5058_v62 }
  0xff   :  { %4592 = vrot.lane.b32.xlu1 %v4591_v3, %s4661_s29 }
 0x101   :  { %v1158_v20 = vpop.permute.xlu1 %1157  ;;  %v1154_v30 = vpop.permute.xlu0 %1153 }
 0x102   :  { %v1354_v25 = vsel %vm1348_vm5, %v4794_v48, %v1158_v20  ;;  %v1350_v40 = vsel %vm1348_vm5, %v4796_v50, %v1154_v30 }
 0x103   :  { %v1419_v35 = vsel %vm1413_vm4, %v1354_v25, %v1289_v61  ;;  %v1415_v3 = vsel %vm1413_vm4, %v1350_v40, %v1285_v10  ;;  %v169_v10 = vmul.f32 %v4363_v23, %v4748_v29  ;;  %v168_v40 = vmul.f32 %v4362_v53, %v4748_v29 }
 0x104   :  { %v1514_v19 = vunpack.c.l.b16 %v1419_v35  ;;  %v1515_v2 = vunpack.c.h.b16 %v1419_v35  ;;  %v1510_v48 = vunpack.c.l.b16 %v1415_v3  ;;  %v1511_v61 = vunpack.c.h.b16 %v1415_v3  ;;  %v1160_v3 = vpop.permute.xlu2 %1159 }
 0x105   :  { %v6697_v35 = vunpack.c.h.bf16 %v5058_v62  ;;  %v234_v53 = vadd.f32 %v4752_v32, %v169_v10  ;;  %v1356_v60 = vsel %vm1348_vm5, %v4806_v9, %v1160_v3 }
 0x106   :  { %v1578_v20 = vpack.c.b16 %v1514_v19, %v1514_v19  ;;  %v1579_v25 = vpack.c.b16 %v1515_v2, %v1515_v2  ;;  %v1574_v50 = vpack.c.b16 %v1510_v48, %v1510_v48  ;;  %v1575_v30 = vpack.c.b16 %v1511_v61, %v1511_v61 }
 0x107   :  { %4597 = vrot.lane.b32.xlu1 %v4596_v45, %s4661_s29  ;;  %v4601_v47 = vpack.i.bf16 %v6697_v35, %v6694_v5  ;;  %v233_v48 = vadd.f32 %v4752_v32, %v168_v40 }
 0x108   :  { %1707 = vst.msk [vmem:[#allocation2 + $0x10] sm:$0xf] %vm1702_vm6, %v1578_v20 }
 0x109   :  { %1708 = vst.msk [vmem:[#allocation2 + $0x14] sm:$0xf] %vm1702_vm6, %v1579_v25  ;;  %v1156_v19 = vpop.permute.xlu1 %1155  ;;  %v1287_v2 = vpop.permute.xlu0 %1286  ;;  %v171_v25 = vmul.f32 %v4367_v1, %v4748_v29 }
 0x10a   :  { %1703 = vst.msk [vmem:[#allocation2] sm:$0xf] %vm1702_vm6, %v1574_v50  ;;  %v1352_v45 = vsel %vm1348_vm5, %v4810_v15, %v1156_v19  ;;  %v5085_v15 = vld [vmem:[%s6685_s0 + $0xb0] sm:$0xff]   ;;  %v170_v19 = vmul.f32 %v4366_v0, %v4748_v29 }
 0x10b   :  { %1704 = vst.msk [vmem:[#allocation2 + $0x4] sm:$0xf] %vm1702_vm6, %v1575_v30  ;;  %v1417_v23 = vsel %vm1413_vm4, %v1352_v45, %v1287_v2  ;;  %v6695_v10 = vunpack.c.l.bf16 %v5085_v15  ;;  %v6696_v40 = vunpack.c.h.bf16 %v5085_v15  ;;  %v298_v45 = vmax.f32 %v234_v53, 0.0 }
 0x10c   :  { %v1512_v61 = vunpack.c.l.b16 %v1417_v23  ;;  %v1513_v20 = vunpack.c.h.b16 %v1417_v23  ;;  %v297_v2 = vmax.f32 %v233_v48, 0.0  ;;  %v235_v53 = vadd.f32 %v4752_v32, %v170_v19  ;;  %v5117_v19 = vld [vmem:[%s6685_s0 + $0xb8] sm:$0xff]  }
 0x10d   :  { %v173_v48 = vmul.f32 %v4371_v16, %v4748_v29  ;;  %v172_v16 = vmul.f32 %v4370_v14, %v4748_v29 }
 0x10e   :  { %v1576_v50 = vpack.c.b16 %v1512_v61, %v1512_v61  ;;  %v1577_v30 = vpack.c.b16 %v1513_v20, %v1513_v20  ;;  %v236_v61 = vadd.f32 %v4752_v32, %v171_v25  ;;  %v4606_v25 = vpack.i.bf16 %v6696_v40, %v6695_v10 }
 0x10f   :  { %4602 = vrot.lane.b32.xlu1 %v4601_v47, %s4661_s29  ;;  %v299_v35 = vmax.f32 %v235_v53, 0.0  ;;  %v5127_v7 = vadd.f32 %v4752_v32, %v173_v48 }
 0x110   :  { %1705 = vst.msk [vmem:[#allocation2 + $0x8] sm:$0xf] %vm1702_vm6, %v1576_v50  ;;  %v4299_v23 = vld [vmem:[#allocation2 + $0x10] sm:$0xff]  ;;  %v300_v40 = vmax.f32 %v236_v61, 0.0 }
 0x111   :  { %1706 = vst.msk [vmem:[#allocation2 + $0xc] sm:$0xf] %vm1702_vm6, %v1577_v30  ;;  %v4533_v1 = vpop.permute.xlu1 %4532  ;;  %v1291_v20 = vpop.permute.xlu0 %1290  ;;  %4200 = vmatmul.msk.bf16.vlgmr.msra.gmra.mxu2 %vm2012_vm7, %v4299_v23 }
 0x112   :  { %v4535_v0 = vunpack.i.h.bf16 %v4533_v1  ;;  %v4534_v47 = vunpack.i.l.bf16 %v4533_v1  ;;  %v4264_v5 = vld [vmem:[#allocation2] sm:$0xff]  ;;  %v1421_v50 = vsel %vm1413_vm4, %v1356_v60, %v1291_v20  ;;  %v1162_v23 = vpop.permute.xlu2 %1161 }
 0x113   :  { %v1516_v30 = vunpack.c.l.b16 %v1421_v50  ;;  %v1517_v1 = vunpack.c.h.b16 %v1421_v50  ;;  %4036 = vmatmul.msk.bf16.vlgmr.msra.gmra.mxu1 %vm2012_vm7, %v4264_v5  ;;  %v6698_v5 = vunpack.c.l.bf16 %v5117_v19  ;;  %v6699_v50 = vunpack.c.h.bf16 %v5117_v19 }
 0x114   :  { %v619_v9 = vsel %vm603_vm0, %v298_v45, %v4535_v0  ;;  %v618_v3 = vsel %vm603_vm0, %v297_v2, %v4534_v47  ;;  %v945_v2 = vshrl.u32 %v4826_v42, 16 }
 0x115   :  { %v683_v60 = vpack.c.bf16 %v619_v9, %v619_v9  ;;  %v682_v20 = vpack.c.bf16 %v618_v3, %v618_v3  ;;  %v1580_v10 = vpack.c.b16 %v1516_v30, %v1516_v30  ;;  %v1581_v45 = vpack.c.b16 %v1517_v1, %v1517_v1 }
 0x116   :  { %v237_v9 = vadd.f32 %v4752_v32, %v172_v16  ;;  %v175_v3 = vmul.f32 %v4375_v24, %v4748_v29  ;;  %v947_v24 = vor.u32 %v945_v2, %v4878_v11 }
 0x117   :  { %v811_v0 = vunpack.c.l.b16 %v683_v60  ;;  %v810_v47 = vunpack.c.l.b16 %v682_v20  ;;  %4607 = vrot.lane.b32.xlu1 %v4606_v25, %s4661_s29  ;;  %1709 = vst.msk [vmem:[#allocation2 + $0x18] sm:$0xf] %vm1702_vm6, %v1580_v10  ;;  %v174_v25 = vmul.f32 %v4374_v21, %v4748_v29  ;;  %v1358_v10 = vsel %vm1348_vm5, %v4766_v54, %v1162_v23  ;;  %v5157_v54 = vld [vmem:[%s6685_s0 + $0xc0] sm:$0xff]  }
 0x118   :  { %v5130_v14 = vld [vmem:[#allocation2 + $0x8] sm:$0xff]  ;;  %1710 = vst.msk [vmem:[#allocation2 + $0x1c] sm:$0xf] %vm1702_vm6, %v1581_v45  ;;  %v4611_v21 = vpack.i.bf16 %v6699_v50, %v6698_v5  ;;  %v4430_v5 = vunpack.c.l.bf16 %v5157_v54  ;;  %v4431_v50 = vunpack.c.h.bf16 %v5157_v54 }
 0x119   :  { %v5139_v30 = vpack.c.b16 %v811_v0, %v810_v47  ;;  %v4538_v61 = vpop.permute.xlu1 %4537  ;;  %v1293_v1 = vpop.permute.xlu0 %1292  ;;  %3996 = vmatmul.msk.bf16.vlgmr.msra.gmra.mxu0 %vm2012_vm7, %v5130_v14 }
 0x11a   :  { %v4540_v53 = vunpack.i.h.bf16 %v4538_v61  ;;  %v4539_v48 = vunpack.i.l.bf16 %v4538_v61  ;;  %v1423_v16 = vsel %vm1413_vm4, %v1358_v10, %v1293_v1 }
 0x11b   :  { %v1232_v18 = vrot.slane %v5139_v30, 1  ;;  %v949_v60 = vshll.u32 %v5139_v30, 16  ;;  %v1518_v20 = vunpack.c.l.b16 %v1423_v16  ;;  %v1519_v45 = vunpack.c.h.b16 %v1423_v16 }
 0x11c   :  { %v621_v23 = vsel %vm603_vm0, %v300_v40, %v4540_v53  ;;  %v620_v11 = vsel %vm603_vm0, %v299_v35, %v4539_v48  ;;  %v1164_v40 = vpop.permute.xlu2 %1163  ;;  %v302_v16 = vmax.f32 %v5127_v7, 0.0 }
 0x11d   :  { %v685_v2 = vpack.c.bf16 %v621_v23, %v621_v23  ;;  %v684_v0 = vpack.c.bf16 %v620_v11, %v620_v11  ;;  %v1233_v47 = vsel %vm1218_vm1, %v1230_v13, %v1232_v18  ;;  %v951_v61 = vrot.slane %v949_v60, 1 }
 0x11e   :  { %v1582_v10 = vpack.c.b16 %v1518_v20, %v1518_v20  ;;  %v1583_v1 = vpack.c.b16 %v1519_v45, %v1519_v45  ;;  %1296 = vrot.lane.b32.xlu0 %v1233_v47, %s4662_s1  ;;  %v301_v23 = vmax.f32 %v237_v9, 0.0  ;;  %v240_v60 = vadd.f32 %v4752_v32, %v175_v3 }
 0x11f   :  { %v813_v53 = vunpack.c.l.b16 %v685_v2  ;;  %v812_v35 = vunpack.c.l.b16 %v684_v0  ;;  %4612 = vrot.lane.b32.xlu1 %v4611_v21, %s4661_s29  ;;  %v952_v48 = vsel %vm892_vm2, %v947_v24, %v951_v61  ;;  %v4300_v13 = vld [vmem:[#allocation2 + $0x18] sm:$0xff]  ;;  %v239_v11 = vadd.f32 %v4752_v32, %v174_v25 }
 0x120   :  { %1711 = vst.msk [vmem:[#allocation2 + $0x20] sm:$0xf] %vm1702_vm6, %v1582_v10  ;;  %1165 = vrot.lane.b32.xlu2 %v952_v48, %s4663_s14  ;;  %v953_v21 = vshrl.u32 %v5139_v30, 16  ;;  %v1360_v7 = vsel %vm1348_vm5, %v4786_v37, %v1164_v40  ;;  %v4616_v3 = vpack.i.bf16 %v4431_v50, %v4430_v5  ;;  %v5191_v37 = vld [vmem:[%s6685_s0 + $0xc8] sm:$0xff]  }
 0x121   :  { %v5174_v20 = vpack.c.b16 %v813_v53, %v812_v35  ;;  %1712 = vst.msk [vmem:[#allocation2 + $0x24] sm:$0xf] %vm1702_vm6, %v1583_v1  ;;  %v4543_v45 = vpop.permute.xlu1 %4542  ;;  %v1295_v2 = vpop.permute.xlu0 %1294  ;;  %4201 = vmatmul.msk.bf16.gmra.mxu2 %vm2012_vm7, %v4300_v13 }
 0x122   :  { %v4545_v9 = vunpack.i.h.bf16 %v4543_v45  ;;  %v4544_v24 = vunpack.i.l.bf16 %v4543_v45  ;;  %v1425_v25 = vsel %vm1413_vm4, %v1360_v7, %v1295_v2  ;;  %v955_v47 = vor.u32 %v953_v21, %v951_v61 }
 0x123   :  { %v1234_v0 = vrot.slane %v5174_v20, 1  ;;  %v957_v10 = vshll.u32 %v5174_v20, 16  ;;  %v1520_v53 = vunpack.c.l.b16 %v1425_v25  ;;  %v1521_v35 = vunpack.c.h.b16 %v1425_v25  ;;  %4037 = vmatmul.msk.bf16.gmra.mxu1 %vm2012_vm7, %v5130_v14 }
 0x124   :  { %v623_v1 = vsel %vm603_vm0, %v302_v16, %v4545_v9  ;;  %v622_v40 = vsel %vm603_vm0, %v301_v23, %v4544_v24  ;;  %v6700_v2 = vunpack.c.l.bf16 %v5191_v37  ;;  %v4435_v16 = vunpack.c.h.bf16 %v5191_v37 }
 0x125   :  { %v687_v48 = vpack.c.bf16 %v623_v1, %v623_v1  ;;  %v686_v13 = vpack.c.bf16 %v622_v40, %v622_v40  ;;  %v1235_v61 = vsel %vm1218_vm1, %v1232_v18, %v1234_v0  ;;  %v959_v45 = vrot.slane %v957_v10, 1  ;;  %v4266_v40 = vld [vmem:[#allocation2 + $0x10] sm:$0xff] }
 0x126   :  { %v1584_v21 = vpack.c.b16 %v1520_v53, %v1520_v53  ;;  %v1585_v7 = vpack.c.b16 %v1521_v35, %v1521_v35  ;;  %1298 = vrot.lane.b32.xlu0 %v1235_v61, %s4662_s1  ;;  %v961_v14 = vshrl.u32 %v5174_v20, 16  ;;  %v304_v25 = vmax.f32 %v240_v60, 0.0  ;;  %v5225_v35 = vld [vmem:[%s6685_s0 + $0xd0] sm:$0xff]  }
 0x127   :  { %v815_v9 = vunpack.c.l.b16 %v687_v48  ;;  %v814_v23 = vunpack.c.l.b16 %v686_v13  ;;  %4617 = vrot.lane.b32.xlu1 %v4616_v3, %s4661_s29  ;;  %v960_v24 = vsel %vm892_vm2, %v955_v47, %v959_v45  ;;  %v303_v1 = vmax.f32 %v239_v11, 0.0 }
 0x128   :  { %v177_v18 = vmul.f32 %v4379_v28, %v4748_v29  ;;  %v176_v10 = vmul.f32 %v4378_v27, %v4748_v29  ;;  %1713 = vst.msk [vmem:[#allocation2 + $0x28] sm:$0xf] %vm1702_vm6, %v1584_v21  ;;  %1167 = vrot.lane.b32.xlu2 %v960_v24, %s4663_s14  ;;  %v4621_v26 = vpack.i.bf16 %v4435_v16, %v6700_v2  ;;  %v4438_v24 = vunpack.c.l.bf16 %v5225_v35 }
 0x129   :  { %v5212_v3 = vpack.c.b16 %v815_v9, %v814_v23  ;;  %1714 = vst.msk [vmem:[#allocation2 + $0x2c] sm:$0xf] %vm1702_vm6, %v1585_v7  ;;  %v4548_v47 = vpop.permute.xlu1 %4547  ;;  %3997 = vmatmul.msk.bf16.gmra.mxu0 %vm2012_vm7, %v4266_v40  ;;  %v963_v27 = vor.u32 %v961_v14, %v959_v45  ;;  %v4439_v14 = vunpack.c.h.bf16 %v5225_v35 }
 0x12a   :  { %v4550_v60 = vunpack.i.h.bf16 %v4548_v47  ;;  %v4549_v11 = vunpack.i.l.bf16 %v4548_v47  ;;  %v242_v48 = vadd.f32 %v4752_v32, %v177_v18  ;;  %v241_v13 = vadd.f32 %v4752_v32, %v176_v10 }
 0x12b   :  { %v1236_v28 = vrot.slane %v5212_v3, 1  ;;  %v965_v53 = vshll.u32 %v5212_v3, 16 }
 0x12c   :  { %v625_v61 = vsel %vm603_vm0, %v304_v25, %v4550_v60  ;;  %v624_v21 = vsel %vm603_vm0, %v303_v1, %v4549_v11  ;;  %v969_v25 = vshrl.u32 %v5212_v3, 16  ;;  %v306_v1 = vmax.f32 %v242_v48, 0.0  ;;  %v4301_v11 = vld [vmem:[#allocation2 + $0x20] sm:$0xff] }
 0x12d   :  { %v689_v7 = vpack.c.bf16 %v625_v61, %v625_v61  ;;  %v688_v9 = vpack.c.bf16 %v624_v21, %v624_v21  ;;  %v1237_v23 = vsel %vm1218_vm1, %v1234_v0, %v1236_v28  ;;  %v967_v45 = vrot.slane %v965_v53, 1 }
 0x12e   :  { %1300 = vrot.lane.b32.xlu0 %v1237_v23, %s4662_s1  ;;  %v305_v10 = vmax.f32 %v241_v13, 0.0  ;;  %v179_v0 = vmul.f32 %v4383_v34, %v4748_v29  ;;  %v178_v60 = vmul.f32 %v4382_v33, %v4748_v29  ;;  %v4626_v34 = vpack.i.bf16 %v4439_v14, %v4438_v24  ;;  %v5257_v33 = vld [vmem:[%s6685_s0 + $0xd8] sm:$0xff]  }
 0x12f   :  { %v817_v47 = vunpack.c.l.b16 %v689_v7  ;;  %v816_v2 = vunpack.c.l.b16 %v688_v9  ;;  %4622 = vrot.lane.b32.xlu1 %v4621_v26, %s4661_s29  ;;  %v968_v18 = vsel %vm892_vm2, %v963_v27, %v967_v45  ;;  %v971_v13 = vor.u32 %v969_v25, %v967_v45 }
 0x130   :  { %1169 = vrot.lane.b32.xlu2 %v968_v18, %s4663_s14  ;;  %v243_v21 = vadd.f32 %v4752_v32, %v178_v60  ;;  %v6701_v25 = vunpack.c.l.bf16 %v5257_v33 }
 0x131   :  { %v5245_v53 = vpack.c.b16 %v817_v47, %v816_v2  ;;  %v4553_v26 = vpop.permute.xlu1 %4552  ;;  %4202 = vmatmul.msk.bf16.gmra.mxu2 %vm2012_vm7, %v4301_v11  ;;  %v244_v2 = vadd.f32 %v4752_v32, %v179_v0  ;;  %v6702_v11 = vunpack.c.h.bf16 %v5257_v33 }
 0x132   :  { %v4555_v61 = vunpack.i.h.bf16 %v4553_v26  ;;  %v4554_v27 = vunpack.i.l.bf16 %v4553_v26  ;;  %v307_v60 = vmax.f32 %v243_v21, 0.0 }
 0x133   :  { %v1238_v48 = vrot.slane %v5245_v53, 1  ;;  %v973_v31 = vshll.u32 %v5245_v53, 16  ;;  %4038 = vmatmul.msk.bf16.gmra.mxu1 %vm2012_vm7, %v4266_v40  ;;  %v308_v40 = vmax.f32 %v244_v2, 0.0 }
 0x134   :  { %v627_v7 = vsel %vm603_vm0, %v306_v1, %v4555_v61  ;;  %v626_v9 = vsel %vm603_vm0, %v305_v10, %v4554_v27  ;;  %v977_v10 = vshrl.u32 %v5245_v53, 16  ;;  %v180_v61 = vmul.f32 %v4386_v38, %v4748_v29  ;;  %v4267_v27 = vld [vmem:[#allocation2 + $0x18] sm:$0xff]  ;;  %v5290_v38 = vld [vmem:[%s6685_s0 + $0xe0] sm:$0xff]  }
 0x135   :  { %v691_v23 = vpack.c.bf16 %v627_v7, %v627_v7  ;;  %v690_v47 = vpack.c.bf16 %v626_v9, %v626_v9  ;;  %v1239_v45 = vsel %vm1218_vm1, %v1236_v28, %v1238_v48  ;;  %v975_v18 = vrot.slane %v973_v31, 1 }
 0x136   :  { %1302 = vrot.lane.b32.xlu0 %v1239_v45, %s4662_s1  ;;  %v181_v28 = vmul.f32 %v4387_v39, %v4748_v29  ;;  %v4631_v39 = vpack.i.bf16 %v6702_v11, %v6701_v25 }
 0x137   :  { %v819_v0 = vunpack.c.l.b16 %v691_v23  ;;  %v818_v26 = vunpack.c.l.b16 %v690_v47  ;;  %4627 = vrot.lane.b32.xlu1 %v4626_v34, %s4661_s29  ;;  %v976_v1 = vsel %vm892_vm2, %v971_v13, %v975_v18  ;;  %v979_v21 = vor.u32 %v977_v10, %v975_v18 }
 0x138   :  { %1171 = vrot.lane.b32.xlu2 %v976_v1, %s4663_s14  ;;  %v246_v9 = vadd.f32 %v4752_v32, %v181_v28  ;;  %v245_v23 = vadd.f32 %v4752_v32, %v180_v61  ;;  %v4446_v10 = vunpack.c.l.bf16 %v5290_v38 }
 0x139   :  { %v5278_v31 = vpack.c.b16 %v819_v0, %v818_v26  ;;  %v4558_v34 = vpop.permute.xlu1 %4557  ;;  %3998 = vmatmul.msk.bf16.gmra.mxu0 %vm2012_vm7, %v4267_v27 }
 0x13a   :  { %v4560_v7 = vunpack.i.h.bf16 %v4558_v34  ;;  %v4559_v13 = vunpack.i.l.bf16 %v4558_v34  ;;  %v4447_v34 = vunpack.c.h.bf16 %v5290_v38  ;;  %v309_v61 = vmax.f32 %v245_v23, 0.0 }
 0x13b   :  { %v1240_v2 = vrot.slane %v5278_v31, 1  ;;  %v981_v36 = vshll.u32 %v5278_v31, 16 }
 0x13c   :  { %v629_v47 = vsel %vm603_vm0, %v308_v40, %v4560_v7  ;;  %v628_v45 = vsel %vm603_vm0, %v307_v60, %v4559_v13  ;;  %v985_v40 = vshrl.u32 %v5278_v31, 16  ;;  %v310_v60 = vmax.f32 %v246_v9, 0.0  ;;  %v4302_v13 = vld [vmem:[#allocation2 + $0x28] sm:$0xff] }
 0x13d   :  { %v693_v0 = vpack.c.bf16 %v629_v47, %v629_v47  ;;  %v692_v26 = vpack.c.bf16 %v628_v45, %v628_v45  ;;  %v1241_v1 = vsel %vm1218_vm1, %v1238_v48, %v1240_v2  ;;  %v983_v18 = vrot.slane %v981_v36, 1 }
 0x13e   :  { %1304 = vrot.lane.b32.xlu0 %v1241_v1, %s4662_s1  ;;  %v183_v48 = vmul.f32 %v4391_v44, %v4748_v29  ;;  %v182_v7 = vmul.f32 %v4390_v43, %v4748_v29  ;;  %v4636_v44 = vpack.i.bf16 %v4447_v34, %v4446_v10  ;;  %v5322_v43 = vld [vmem:[%s6685_s0 + $0xe8] sm:$0xff]  }
 0x13f   :  { %v821_v25 = vunpack.c.l.b16 %v693_v0  ;;  %v820_v11 = vunpack.c.l.b16 %v692_v26  ;;  %4632 = vrot.lane.b32.xlu1 %v4631_v39, %s4661_s29  ;;  %v984_v28 = vsel %vm892_vm2, %v979_v21, %v983_v18  ;;  %v987_v23 = vor.u32 %v985_v40, %v983_v18 }
 0x140   :  { %1173 = vrot.lane.b32.xlu2 %v984_v28, %s4663_s14  ;;  %v6703_v40 = vunpack.c.l.bf16 %v5322_v43 }
 0x141   :  { %v5310_v36 = vpack.c.b16 %v821_v25, %v820_v11  ;;  %v4563_v39 = vpop.permute.xlu1 %4562  ;;  %4203 = vmatmul.msk.bf16.gmra.mxu2 %vm2012_vm7, %v4302_v13  ;;  %v248_v25 = vadd.f32 %v4752_v32, %v183_v48  ;;  %v247_v11 = vadd.f32 %v4752_v32, %v182_v7  ;;  %v6704_v13 = vunpack.c.h.bf16 %v5322_v43 }
 0x142   :  { %v4565_v47 = vunpack.i.h.bf16 %v4563_v39  ;;  %v4564_v21 = vunpack.i.l.bf16 %v4563_v39 }
 0x143   :  { %v1242_v9 = vrot.slane %v5310_v36, 1  ;;  %v989_v41 = vshll.u32 %v5310_v36, 16  ;;  %4039 = vmatmul.msk.bf16.gmra.mxu1 %vm2012_vm7, %v4267_v27  ;;  %v312_v27 = vmax.f32 %v248_v25, 0.0  ;;  %v311_v7 = vmax.f32 %v247_v11, 0.0 }
 0x144   :  { %v631_v45 = vsel %vm603_vm0, %v310_v60, %v4565_v47  ;;  %v630_v0 = vsel %vm603_vm0, %v309_v61, %v4564_v21  ;;  %v993_v61 = vshrl.u32 %v5310_v36, 16  ;;  %v184_v47 = vmul.f32 %v4394_v49, %v4748_v29  ;;  %v4268_v21 = vld [vmem:[#allocation2 + $0x20] sm:$0xff]  ;;  %v5355_v49 = vld [vmem:[%s6685_s0 + $0xf0] sm:$0xff]  }
 0x145   :  { %v695_v26 = vpack.c.bf16 %v631_v45, %v631_v45  ;;  %v694_v1 = vpack.c.bf16 %v630_v0, %v630_v0  ;;  %v1243_v18 = vsel %vm1218_vm1, %v1240_v2, %v1242_v9  ;;  %v991_v28 = vrot.slane %v989_v41, 1 }
 0x146   :  { %1306 = vrot.lane.b32.xlu0 %v1243_v18, %s4662_s1  ;;  %v185_v2 = vmul.f32 %v4395_v51, %v4748_v29  ;;  %v4641_v51 = vpack.i.bf16 %v6704_v13, %v6703_v40 }
 0x147   :  { %v823_v48 = vunpack.c.l.b16 %v695_v26  ;;  %v822_v39 = vunpack.c.l.b16 %v694_v1  ;;  %4637 = vrot.lane.b32.xlu1 %v4636_v44, %s4661_s29  ;;  %v992_v60 = vsel %vm892_vm2, %v987_v23, %v991_v28  ;;  %v995_v11 = vor.u32 %v993_v61, %v991_v28 }
 0x148   :  { %1175 = vrot.lane.b32.xlu2 %v992_v60, %s4663_s14  ;;  %v250_v0 = vadd.f32 %v4752_v32, %v185_v2  ;;  %v249_v26 = vadd.f32 %v4752_v32, %v184_v47  ;;  %v4454_v61 = vunpack.c.l.bf16 %v5355_v49 }
 0x149   :  { %v5343_v41 = vpack.c.b16 %v823_v48, %v822_v39  ;;  %v4568_v44 = vpop.permute.xlu1 %4567  ;;  %3999 = vmatmul.msk.bf16.gmra.mxu0 %vm2012_vm7, %v4268_v21 }
 0x14a   :  { %v4570_v45 = vunpack.i.h.bf16 %v4568_v44  ;;  %v4569_v23 = vunpack.i.l.bf16 %v4568_v44  ;;  %v4455_v44 = vunpack.c.h.bf16 %v5355_v49  ;;  %v313_v47 = vmax.f32 %v249_v26, 0.0 }
 0x14b   :  { %v1244_v25 = vrot.slane %v5343_v41, 1  ;;  %v997_v46 = vshll.u32 %v5343_v41, 16 }
 0x14c   :  { %v633_v1 = vsel %vm603_vm0, %v312_v27, %v4570_v45  ;;  %v632_v18 = vsel %vm603_vm0, %v311_v7, %v4569_v23  ;;  %v1001_v27 = vshrl.u32 %v5343_v41, 16  ;;  %v314_v7 = vmax.f32 %v250_v0, 0.0 }
 0x14d   :  { %v697_v48 = vpack.c.bf16 %v633_v1, %v633_v1  ;;  %v696_v39 = vpack.c.bf16 %v632_v18, %v632_v18  ;;  %v1245_v60 = vsel %vm1218_vm1, %v1242_v9, %v1244_v25  ;;  %v999_v28 = vrot.slane %v997_v46, 1 }
 0x14e   :  { %1308 = vrot.lane.b32.xlu0 %v1245_v60, %s4662_s1  ;;  %v187_v9 = vmul.f32 %v4399_v57, %v4748_v29  ;;  %v186_v45 = vmul.f32 %v4398_v56, %v4748_v29  ;;  %v4646_v0 = vpack.i.bf16 %v4455_v44, %v4454_v61 }
 0x14f   :  { %v825_v40 = vunpack.c.l.b16 %v697_v48  ;;  %v824_v13 = vunpack.c.l.b16 %v696_v39  ;;  %4642 = vrot.lane.b32.xlu1 %v4641_v51, %s4661_s29  ;;  %v1000_v2 = vsel %vm892_vm2, %v995_v11, %v999_v28  ;;  %v1003_v26 = vor.u32 %v1001_v27, %v999_v28 }
 0x150   :  { %1177 = vrot.lane.b32.xlu2 %v1000_v2, %s4663_s14  ;;  %v252_v56 = vadd.f32 %v4752_v32, %v187_v9  ;;  %v6705_v2 = vunpack.c.l.bf16 %v5386_v55  ;;  %v4459_v27 = vunpack.c.h.bf16 %v5386_v55 }
 0x151   :  { %v5375_v23 = vpack.c.b16 %v825_v40, %v824_v13  ;;  %v4573_v46 = vpop.permute.xlu1 %4572  ;;  %v251_v40 = vadd.f32 %v4752_v32, %v186_v45 }
 0x152   :  { %v4575_v51 = vunpack.i.h.bf16 %v4573_v46  ;;  %v4574_v1 = vunpack.i.l.bf16 %v4573_v46 }
 0x153   :  { %v1246_v11 = vrot.slane %v5375_v23, 1  ;;  %v1005_v57 = vshll.u32 %v5375_v23, 16  ;;  %4040 = vmatmul.msk.bf16.gmra.mxu1 %vm2012_vm7, %v4268_v21  ;;  %v316_v21 = vmax.f32 %v252_v56, 0.0  ;;  %v315_v45 = vmax.f32 %v251_v40, 0.0 }
 0x154   :  { %v635_v13 = vsel %vm603_vm0, %v314_v7, %v4575_v51  ;;  %v634_v18 = vsel %vm603_vm0, %v313_v47, %v4574_v1  ;;  %v1009_v47 = vshrl.u32 %v5375_v23, 16  ;;  %v188_v51 = vmul.f32 %v4402_v58, %v4748_v29  ;;  %v4269_v1 = vld [vmem:[#allocation2 + $0x28] sm:$0xff] }
 0x155   :  { %v699_v48 = vpack.c.bf16 %v635_v13, %v635_v13  ;;  %v698_v39 = vpack.c.bf16 %v634_v18, %v634_v18  ;;  %v1247_v60 = vsel %vm1218_vm1, %v1244_v25, %v1246_v11  ;;  %v1007_v28 = vrot.slane %v1005_v57, 1 }
 0x156   :  { %1310 = vrot.lane.b32.xlu0 %v1247_v60, %s4662_s1  ;;  %v189_v25 = vmul.f32 %v4403_v59, %v4748_v29  ;;  %v4651_v59 = vpack.i.bf16 %v4459_v27, %v6705_v2  ;;  %v253_v18 = vadd.f32 %v4752_v32, %v188_v51 }
 0x157   :  { %v827_v9 = vunpack.c.l.b16 %v699_v48  ;;  %v826_v46 = vunpack.c.l.b16 %v698_v39  ;;  %4647 = vrot.lane.b32.xlu1 %v4646_v0, %s4661_s29  ;;  %v1008_v7 = vsel %vm892_vm2, %v1003_v26, %v1007_v28  ;;  %v1011_v40 = vor.u32 %v1009_v47, %v1007_v28 }
 0x158   :  { %1179 = vrot.lane.b32.xlu2 %v1008_v7, %s4663_s14  ;;  %v254_v58 = vadd.f32 %v4752_v32, %v189_v25  ;;  %v317_v51 = vmax.f32 %v253_v18, 0.0 }
 0x159   :  { %v5407_v57 = vpack.c.b16 %v827_v9, %v826_v46  ;;  %v4578_v0 = vpop.permute.xlu1 %4577  ;;  %4000 = vmatmul.msk.bf16.gmra.mxu0 %vm2012_vm7, %v4269_v1 }
 0x15a   :  { %v4580_v13 = vunpack.i.h.bf16 %v4578_v0  ;;  %v4579_v26 = vunpack.i.l.bf16 %v4578_v0  ;;  %v318_v25 = vmax.f32 %v254_v58, 0.0 }
 0x15b   :  { %v1248_v56 = vrot.slane %v5407_v57, 1  ;;  %v1013_v22 = vshll.u32 %v5407_v57, 16  ;;  %v1017_v47 = vshrl.u32 %v5407_v57, 16 }
 0x15c   :  { %v637_v48 = vsel %vm603_vm0, %v316_v21, %v4580_v13  ;;  %v636_v39 = vsel %vm603_vm0, %v315_v45, %v4579_v26  ;;  %v191_v21 = vmul.f32 %v4407_v12, %v4748_v29 }
 0x15d   :  { %v701_v60 = vpack.c.bf16 %v637_v48, %v637_v48  ;;  %v700_v9 = vpack.c.bf16 %v636_v39, %v636_v39  ;;  %v1249_v46 = vsel %vm1218_vm1, %v1246_v11, %v1248_v56  ;;  %v1015_v7 = vrot.slane %v1013_v22, 1 }
 0x15e   :  { %1312 = vrot.lane.b32.xlu0 %v1249_v46, %s4662_s1  ;;  %v190_v11 = vmul.f32 %v4406_v17, %v4748_v29  ;;  %v256_v18 = vadd.f32 %v4752_v32, %v191_v21 }
 0x15f   :  { %v829_v0 = vunpack.c.l.b16 %v701_v60  ;;  %v828_v2 = vunpack.c.l.b16 %v700_v9  ;;  %4652 = vrot.lane.b32.xlu1 %v4651_v59, %s4661_s29  ;;  %v1016_v28 = vsel %vm892_vm2, %v1011_v40, %v1015_v7  ;;  %v1019_v22 = vor.u32 %v1017_v47, %v1015_v7 }
 0x160   :  { %1181 = vrot.lane.b32.xlu2 %v1016_v28, %s4663_s14  ;;  %v255_v12 = vadd.f32 %v4752_v32, %v190_v11  ;;  %v320_v28 = vmax.f32 %v256_v18, 0.0 }
 0x161   :  { %v5432_v45 = vpack.c.b16 %v829_v0, %v828_v2  ;;  %v4583_v13 = vpop.permute.xlu1 %4582 }
 0x162   :  { %v4585_v26 = vunpack.i.h.bf16 %v4583_v13  ;;  %v4584_v59 = vunpack.i.l.bf16 %v4583_v13  ;;  %v319_v47 = vmax.f32 %v255_v12, 0.0 }
 0x163   :  { %v1250_v40 = vrot.slane %v5432_v45, 1  ;;  %v1021_v58 = vshll.u32 %v5432_v45, 16  ;;  %4041 = vmatmul.msk.bf16.gmra.mxu1 %vm2012_vm7, %v4269_v1  ;;  %v1025_v0 = vshrl.u32 %v5432_v45, 16  ;;  %v6706_v1 = vunpack.c.l.bf16 %v5024_v52 }
 0x164   :  { %v639_v48 = vsel %vm603_vm0, %v318_v25, %v4585_v26  ;;  %v638_v6 = vsel %vm603_vm0, %v317_v51, %v4584_v59  ;;  %v193_v25 = vmul.f32 %v4411_v63, %v4748_v29 }
 0x165   :  { %v703_v17 = vpack.c.bf16 %v639_v48, %v639_v48  ;;  %v702_v2 = vpack.c.bf16 %v638_v6, %v638_v6  ;;  %v1251_v39 = vsel %vm1218_vm1, %v1248_v56, %v1250_v40  ;;  %v1023_v60 = vrot.slane %v1021_v58, 1 }
 0x166   :  { %1314 = vrot.lane.b32.xlu0 %v1251_v39, %s4662_s1  ;;  %v192_v51 = vmul.f32 %v6706_v1, %v4748_v29  ;;  %v258_v58 = vadd.f32 %v4752_v32, %v193_v25 }
 0x167   :  { %v831_v9 = vunpack.c.l.b16 %v703_v17  ;;  %v830_v46 = vunpack.c.l.b16 %v702_v2  ;;  %v1024_v7 = vsel %vm892_vm2, %v1019_v22, %v1023_v60  ;;  %v1027_v59 = vor.u32 %v1025_v0, %v1023_v60 }
 0x168   :  { %1183 = vrot.lane.b32.xlu2 %v1024_v7, %s4663_s14  ;;  %v257_v63 = vadd.f32 %v4752_v32, %v192_v51  ;;  %v195_v0 = vmul.f32 %v4415_v8, %v4748_v29 }
 0x169   :  { %v5452_v56 = vpack.c.b16 %v831_v9, %v830_v46  ;;  %v4588_v21 = vpop.permute.xlu1 %4587  ;;  %v322_v46 = vmax.f32 %v258_v58, 0.0 }
 0x16a   :  { %v4590_v11 = vunpack.i.h.bf16 %v4588_v21  ;;  %v4589_v13 = vunpack.i.l.bf16 %v4588_v21  ;;  %v321_v7 = vmax.f32 %v257_v63, 0.0 }
 0x16b   :  { %v1252_v26 = vrot.slane %v5452_v56, 1  ;;  %v1029_v22 = vshll.u32 %v5452_v56, 16  ;;  %v1033_v9 = vshrl.u32 %v5452_v56, 16 }
 0x16c   :  { %v641_v18 = vsel %vm603_vm0, %v320_v28, %v4590_v11  ;;  %v640_v52 = vsel %vm603_vm0, %v319_v47, %v4589_v13  ;;  %v6707_v28 = vunpack.c.l.bf16 %v5040_v4 }
 0x16d   :  { %v705_v12 = vpack.c.bf16 %v641_v18, %v641_v18  ;;  %v704_v48 = vpack.c.bf16 %v640_v52, %v640_v52  ;;  %v1253_v6 = vsel %vm1218_vm1, %v1250_v40, %v1252_v26  ;;  %v1031_v17 = vrot.slane %v1029_v22, 1 }
 0x16e   :  { %1316 = vrot.lane.b32.xlu0 %v1253_v6, %s4662_s1  ;;  %v194_v47 = vmul.f32 %v6707_v28, %v4748_v29 }
 0x16f   :  { %v833_v2 = vunpack.c.l.b16 %v705_v12  ;;  %v832_v39 = vunpack.c.l.b16 %v704_v48  ;;  %v1032_v60 = vsel %vm892_vm2, %v1027_v59, %v1031_v17  ;;  %v1035_v11 = vor.u32 %v1033_v9, %v1031_v17 }
 0x170   :  { %1185 = vrot.lane.b32.xlu2 %v1032_v60, %s4663_s14  ;;  %v260_v59 = vadd.f32 %v4752_v32, %v195_v0  ;;  %v259_v8 = vadd.f32 %v4752_v32, %v194_v47  ;;  %v6708_v60 = vunpack.c.h.bf16 %v5058_v62 }
 0x171   :  { %v5471_v40 = vpack.c.b16 %v833_v2, %v832_v39  ;;  %v4593_v25 = vpop.permute.xlu1 %4592 }
 0x172   :  { %v4595_v1 = vunpack.i.h.bf16 %v4593_v25  ;;  %v4594_v51 = vunpack.i.l.bf16 %v4593_v25  ;;  %v324_v2 = vmax.f32 %v260_v59, 0.0  ;;  %v323_v39 = vmax.f32 %v259_v8, 0.0 }
 0x173   :  { %v1254_v21 = vrot.slane %v5471_v40, 1  ;;  %v1037_v13 = vshll.u32 %v5471_v40, 16  ;;  %v1041_v17 = vshrl.u32 %v5471_v40, 16  ;;  %v197_v9 = vmul.f32 %v6708_v60, %v4748_v29 }
 0x174   :  { %v643_v22 = vsel %vm603_vm0, %v322_v46, %v4595_v1  ;;  %v642_v4 = vsel %vm603_vm0, %v321_v7, %v4594_v51  ;;  %v6709_v46 = vunpack.c.l.bf16 %v5058_v62 }
 0x175   :  { %v707_v58 = vpack.c.bf16 %v643_v22, %v643_v22  ;;  %v706_v63 = vpack.c.bf16 %v642_v4, %v642_v4  ;;  %v1255_v18 = vsel %vm1218_vm1, %v1252_v26, %v1254_v21  ;;  %v1039_v52 = vrot.slane %v1037_v13, 1 }
 0x176   :  { %1318 = vrot.lane.b32.xlu0 %v1255_v18, %s4662_s1  ;;  %v196_v7 = vmul.f32 %v6709_v46, %v4748_v29  ;;  %v262_v13 = vadd.f32 %v4752_v32, %v197_v9 }
 0x177   :  { %v835_v12 = vunpack.c.l.b16 %v707_v58  ;;  %v834_v48 = vunpack.c.l.b16 %v706_v63  ;;  %v1040_v6 = vsel %vm892_vm2, %v1035_v11, %v1039_v52  ;;  %v1043_v51 = vor.u32 %v1041_v17, %v1039_v52 }
 0x178   :  { %1187 = vrot.lane.b32.xlu2 %v1040_v6, %s4663_s14  ;;  %v261_v59 = vadd.f32 %v4752_v32, %v196_v7  ;;  %v326_v6 = vmax.f32 %v262_v13, 0.0 }
 0x179   :  { %v5490_v26 = vpack.c.b16 %v835_v12, %v834_v48  ;;  %v4598_v0 = vpop.permute.xlu1 %4597 }
 0x17a   :  { %v4600_v28 = vunpack.i.h.bf16 %v4598_v0  ;;  %v4599_v47 = vunpack.i.l.bf16 %v4598_v0  ;;  %v5492_v25 = vpop.permute.xlu2 %1165  ;;  %v325_v17 = vmax.f32 %v261_v59, 0.0 }
 0x17b   :  { %v1256_v1 = vrot.slane %v5490_v26, 1  ;;  %v1045_v11 = vshll.u32 %v5490_v26, 16  ;;  %v1049_v48 = vshrl.u32 %v5490_v26, 16 }
 0x17c   :  { %v645_v62 = vsel %vm603_vm0, %v324_v2, %v4600_v28  ;;  %v644_v8 = vsel %vm603_vm0, %v323_v39, %v4599_v47  ;;  %v6710_v2 = vunpack.c.h.bf16 %v5085_v15  ;;  %v6711_v39 = vunpack.c.l.bf16 %v5085_v15 }
 0x17d   :  { %v709_v22 = vpack.c.bf16 %v645_v62, %v645_v62  ;;  %v708_v4 = vpack.c.bf16 %v644_v8, %v644_v8  ;;  %v1257_v58 = vsel %vm1218_vm1, %v1254_v21, %v1256_v1  ;;  %v1047_v63 = vrot.slane %v1045_v11, 1 }
 0x17e   :  { %1320 = vrot.lane.b32.xlu0 %v1257_v58, %s4662_s1  ;;  %v199_v60 = vmul.f32 %v6710_v2, %v4748_v29  ;;  %v198_v9 = vmul.f32 %v6711_v39, %v4748_v29 }
 0x17f   :  { %v837_v18 = vunpack.c.l.b16 %v709_v22  ;;  %v836_v12 = vunpack.c.l.b16 %v708_v4  ;;  %v1048_v52 = vsel %vm892_vm2, %v1043_v51, %v1047_v63  ;;  %v1051_v51 = vor.u32 %v1049_v48, %v1047_v63 }
 0x180   :  { %1189 = vrot.lane.b32.xlu2 %v1048_v52, %s4663_s14  ;;  %v264_v13 = vadd.f32 %v4752_v32, %v199_v60  ;;  %v263_v59 = vadd.f32 %v4752_v32, %v198_v9  ;;  %v6713_v63 = vunpack.c.l.bf16 %v5117_v19 }
 0x181   :  { %v5511_v21 = vpack.c.b16 %v837_v18, %v836_v12  ;;  %v4603_v46 = vpop.permute.xlu1 %4602  ;;  %v6712_v18 = vunpack.c.h.bf16 %v5117_v19 }
 0x182   :  { %v4605_v7 = vunpack.i.h.bf16 %v4603_v46  ;;  %v4604_v0 = vunpack.i.l.bf16 %v4603_v46  ;;  %v5513_v28 = vpop.permute.xlu2 %1167  ;;  %v200_v52 = vmul.f32 %v6713_v63, %v4748_v29  ;;  %v328_v60 = vmax.f32 %v264_v13, 0.0 }
 0x183   :  { %v1258_v47 = vrot.slane %v5511_v21, 1  ;;  %v1053_v11 = vshll.u32 %v5511_v21, 16  ;;  %v201_v12 = vmul.f32 %v6712_v18, %v4748_v29  ;;  %v327_v39 = vmax.f32 %v263_v59, 0.0 }
 0x184   :  { %v647_v15 = vsel %vm603_vm0, %v326_v6, %v4605_v7  ;;  %v646_v62 = vsel %vm603_vm0, %v325_v17, %v4604_v0  ;;  %v1057_v17 = vshrl.u32 %v5511_v21, 16 }
 0x185   :  { %v711_v8 = vpack.c.bf16 %v647_v15, %v647_v15  ;;  %v710_v22 = vpack.c.bf16 %v646_v62, %v646_v62  ;;  %v1259_v4 = vsel %vm1218_vm1, %v1256_v1, %v1258_v47  ;;  %v1055_v58 = vrot.slane %v1053_v11, 1  ;;  %v3203_v1 = vld [vmem:[%s6689_s4] sm:$0xf] }
 0x186   :  { %1322 = vrot.lane.b32.xlu0 %v1259_v4, %s4662_s1  ;;  %v3557_v9 = vsel %vm2109_vm3, %v3203_v1, 0  ;;  %v266_v7 = vadd.f32 %v4752_v32, %v201_v12  ;;  %v265_v15 = vadd.f32 %v4752_v32, %v200_v52  ;;  %v1362_v1 = vsel %vm1348_vm5, %v4826_v42, %v5492_v25 }
 0x187   :  { %v839_v48 = vunpack.c.l.b16 %v711_v8  ;;  %v838_v2 = vunpack.c.l.b16 %v710_v22  ;;  %v1056_v6 = vsel %vm892_vm2, %v1051_v51, %v1055_v58  ;;  %3566 = vmatpush.bf16.msra.mxu3 %v3557_v9  ;;  %v1059_v13 = vor.u32 %v1057_v17, %v1055_v58 }
 0x188   :  { %1191 = vrot.lane.b32.xlu2 %v1056_v6, %s4663_s14  ;;  %v203_v8 = vmul.f32 %v4431_v50, %v4748_v29  ;;  %v202_v22 = vmul.f32 %v4430_v5, %v4748_v29  ;;  %v330_v17 = vmax.f32 %v266_v7, 0.0  ;;  %v329_v54 = vmax.f32 %v265_v15, 0.0 }
 0x189   :  { %v5536_v19 = vpack.c.b16 %v839_v48, %v838_v2  ;;  %v4608_v46 = vpop.permute.xlu1 %4607 }
 0x18a   :  { %v4610_v0 = vunpack.i.h.bf16 %v4608_v46  ;;  %v4609_v51 = vunpack.i.l.bf16 %v4608_v46  ;;  %v5539_v11 = vpop.permute.xlu2 %1169  ;;  %v5557_v5 = vadd.f32 %v4752_v32, %v203_v8 }
 0x18b   :  { %v1260_v62 = vrot.slane %v5536_v19, 1  ;;  %v1061_v59 = vshll.u32 %v5536_v19, 16  ;;  %v1065_v50 = vshrl.u32 %v5536_v19, 16 }
 0x18c   :  { %v649_v4 = vsel %vm603_vm0, %v328_v60, %v4610_v0  ;;  %v648_v18 = vsel %vm603_vm0, %v327_v39, %v4609_v51  ;;  %v5564_v60 = vadd.f32 %v4752_v32, %v202_v22  ;;  %v205_v39 = vmul.f32 %v4435_v16, %v4748_v29 }
 0x18d   :  { %v713_v12 = vpack.c.bf16 %v649_v4, %v649_v4  ;;  %v712_v63 = vpack.c.bf16 %v648_v18, %v648_v18  ;;  %v1261_v52 = vsel %vm1218_vm1, %v1258_v47, %v1260_v62  ;;  %v1063_v48 = vrot.slane %v1061_v59, 1 }
 0x18e   :  { %1324 = vrot.lane.b32.xlu0 %v1261_v52, %s4662_s1  ;;  %v6714_v59 = vunpack.c.l.bf16 %v5191_v37  ;;  %v332_v37 = vmax.f32 %v5557_v5, 0.0 }
 0x18f   :  { %v841_v58 = vunpack.c.l.b16 %v713_v12  ;;  %v840_v2 = vunpack.c.l.b16 %v712_v63  ;;  %v1064_v6 = vsel %vm892_vm2, %v1059_v13, %v1063_v48  ;;  %v1067_v4 = vor.u32 %v1065_v50, %v1063_v48 }
 0x190   :  { %1193 = vrot.lane.b32.xlu2 %v1064_v6, %s4663_s14  ;;  %v1297_v47 = vpop.permute.xlu0 %1296  ;;  %v2311_v46 = vpop.f32.mrf.mxu1  ;;  %v204_v8 = vmul.f32 %v6714_v59, %v4748_v29  ;;  %v331_v50 = vmax.f32 %v5564_v60, 0.0  ;;  %v207_v60 = vmul.f32 %v4439_v14, %v4748_v29  ;;  %v5615_v14 = vld [vmem:[%s6688_s3] ss:$0 sm:$0xff] }
 0x191   :  { %v5569_v9 = vpack.c.b16 %v841_v58, %v840_v2  ;;  %v1427_v7 = vsel %vm1413_vm4, %v1362_v1, %v1297_v47  ;;  %v4613_v0 = vpop.permute.xlu1 %4612 }
 0x192   :  { %v1522_v51 = vunpack.c.l.b16 %v1427_v7  ;;  %v1523_v15 = vunpack.c.h.b16 %v1427_v7  ;;  %v4615_v13 = vunpack.i.h.bf16 %v4613_v0  ;;  %v4614_v42 = vunpack.i.l.bf16 %v4613_v0  ;;  %v5572_v25 = vpop.permute.xlu2 %1171 }
 0x193   :  { %v1262_v22 = vrot.slane %v5569_v9, 1  ;;  %v1069_v16 = vshll.u32 %v5569_v9, 16  ;;  %v1073_v48 = vshrl.u32 %v5569_v9, 16  ;;  %v5593_v5 = vadd.f32 %v4752_v32, %v204_v8 }
 0x194   :  { %v1586_v18 = vpack.c.b16 %v1522_v51, %v1522_v51  ;;  %v1587_v12 = vpack.c.b16 %v1523_v15, %v1523_v15  ;;  %v651_v63 = vsel %vm603_vm0, %v330_v17, %v4615_v13  ;;  %v650_v52 = vsel %vm603_vm0, %v329_v54, %v4614_v42  ;;  %v2815_v6 = vpop.f32.mrf.mxu2 }
 0x195   :  { %v715_v58 = vpack.c.bf16 %v651_v63, %v651_v63  ;;  %v714_v2 = vpack.c.bf16 %v650_v52, %v650_v52  ;;  %v1263_v1 = vsel %vm1218_vm1, %v1260_v62, %v1262_v22  ;;  %v1071_v47 = vrot.slane %v1069_v16, 1 }
 0x196   :  { %1715 = vst.msk [vmem:[#allocation2 + $0x30] sm:$0xf] %vm1702_vm6, %v1586_v18  ;;  %1326 = vrot.lane.b32.xlu0 %v1263_v1, %s4662_s1  ;;  %v2122_v7 = vpop.f32.mrf.mxu0  ;;  %v5590_v62 = vadd.f32 %v4752_v32, %v205_v39  ;;  %v1364_v51 = vsel %vm1348_vm5, %v5139_v30, %v5513_v28  ;;  %v206_v39 = vmul.f32 %v4438_v24, %v4748_v29  ;;  %v6715_v52 = vunpack.c.h.bf16 %v5257_v33 }
 0x197   :  { %1716 = vst.msk [vmem:[#allocation2 + $0x34] sm:$0xf] %vm1702_vm6, %v1587_v12  ;;  %v843_v17 = vunpack.c.l.b16 %v715_v58  ;;  %v842_v54 = vunpack.c.l.b16 %v714_v2  ;;  %v1072_v0 = vsel %vm892_vm2, %v1067_v4, %v1071_v47  ;;  %v2312_v15 = vadd.f32 %v2311_v46, %v2122_v7 }
 0x198   :  { %v1299_v13 = vpop.permute.xlu0 %1298  ;;  %1195 = vrot.lane.b32.xlu2 %v1072_v0, %s4663_s14  ;;  %v2313_v59 = vpop.f32.mrf.mxu1  ;;  %v1075_v18 = vor.u32 %v1073_v48, %v1071_v47  ;;  %v209_v58 = vmul.f32 %v6715_v52, %v4748_v29  ;;  %v334_v0 = vmax.f32 %v5590_v62, 0.0  ;;  %v5634_v62 = vadd.f32 %v4752_v32, %v207_v60 }
 0x199   :  { %v5605_v42 = vpack.c.b16 %v843_v17, %v842_v54  ;;  %v1429_v8 = vsel %vm1413_vm4, %v1364_v51, %v1299_v13  ;;  %v4618_v4 = vpop.permute.xlu1 %4617  ;;  %v5610_v12 = vadd.f32 %v2815_v6, %v2312_v15 }
 0x19a   :  { %v1524_v16 = vunpack.c.l.b16 %v1429_v8  ;;  %v1525_v30 = vunpack.c.h.b16 %v1429_v8  ;;  %v4620_v28 = vunpack.i.h.bf16 %v4618_v4  ;;  %v5608_v46 = vpop.permute.xlu2 %1173  ;;  %v4619_v35 = vunpack.i.l.bf16 %v4618_v4 }
 0x19b   :  { %v1264_v24 = vrot.slane %v5605_v42, 1  ;;  %v1077_v63 = vshll.u32 %v5605_v42, 16  ;;  %v333_v8 = vmax.f32 %v5593_v5, 0.0  ;;  %v1370_v38 = vsel %vm1348_vm5, %v5245_v53, %v5608_v46 }
 0x19c   :  { %v1588_v2 = vpack.c.b16 %v1524_v16, %v1524_v16  ;;  %v1589_v1 = vpack.c.b16 %v1525_v30, %v1525_v30  ;;  %v653_v47 = vsel %vm603_vm0, %v332_v37, %v4620_v28  ;;  %v652_v48 = vsel %vm603_vm0, %v331_v50, %v4619_v35  ;;  %v2817_v17 = vpop.f32.mrf.mxu2 }
 0x19d   :  { %v717_v6 = vpack.c.bf16 %v653_v47, %v653_v47  ;;  %v1265_v54 = vsel %vm1218_vm1, %v1262_v22, %v1264_v24  ;;  %v1079_v7 = vrot.slane %v1077_v63, 1  ;;  %v716_v51 = vpack.c.bf16 %v652_v48, %v652_v48 }
 0x19e   :  { %1717 = vst.msk [vmem:[#allocation2 + $0x38] sm:$0xf] %vm1702_vm6, %v1588_v2  ;;  %1328 = vrot.lane.b32.xlu0 %v1265_v54, %s4662_s1  ;;  %v4270_v15 = vld [vmem:[#allocation2 + $0x30] sm:$0xff]  ;;  %v3043_v37 = vadd.f32 %v5615_v14, %v5610_v12  ;;  %v2124_v4 = vpop.f32.mrf.mxu0  ;;  %v1366_v16 = vsel %vm1348_vm5, %v5174_v20, %v5539_v11  ;;  %v5642_v35 = vadd.f32 %v4752_v32, %v206_v39  ;;  %v1081_v20 = vshrl.u32 %v5605_v42, 16 }
 0x19f   :  { %v4303_v13 = vld [vmem:[#allocation2 + $0x30] sm:$0xff]  ;;  %1718 = vst.msk [vmem:[#allocation2 + $0x3c] sm:$0xf] %vm1702_vm6, %v1589_v1  ;;  %v845_v50 = vunpack.c.l.b16 %v717_v6  ;;  %v1080_v22 = vsel %vm892_vm2, %v1075_v18, %v1079_v7  ;;  %v844_v30 = vunpack.c.l.b16 %v716_v51  ;;  %v2314_v28 = vadd.f32 %v2313_v59, %v2124_v4  ;;  %4001 = vmatmul.msk.bf16.gmra.mxu0 %vm2012_vm7, %v4270_v15  ;;  %4042 = vmatmul.msk.bf16.gmra.mxu1 %vm2012_vm7, %v4270_v15 }
 0x1a0   :  { %v1301_v5 = vpop.permute.xlu0 %1300  ;;  %v5645_v63 = vadd.f32 %v4752_v32, %v209_v58  ;;  %v2316_v18 = vpop.f32.mrf.mxu1  ;;  %4204 = vmatmul.msk.bf16.gmra.mxu2 %vm2012_vm7, %v4303_v13  ;;  %1197 = vrot.lane.b32.xlu2 %v1080_v22, %s4663_s14  ;;  %v6716_v58 = vunpack.c.l.bf16 %v5257_v33  ;;  %v3107_v6 = vmax.f32 %v3043_v37, 0.0  ;;  %v6717_v46 = vunpack.c.h.bf16 %v5322_v43 }
 0x1a1   :  { %v1431_v60 = vsel %vm1413_vm4, %v1366_v16, %v1301_v5  ;;  %v4623_v52 = vpop.permute.xlu1 %4622  ;;  %v5651_v11 = vpack.c.b16 %v845_v50, %v844_v30  ;;  %v5653_v59 = vadd.f32 %v2817_v17, %v2314_v28  ;;  %v1083_v16 = vor.u32 %v1081_v20, %v1079_v7 }
 0x1a2   :  { %v1526_v2 = vunpack.c.l.b16 %v1431_v60  ;;  %v1527_v39 = vunpack.c.h.b16 %v1431_v60  ;;  %v5655_v1 = vpop.permute.xlu2 %1175  ;;  %v208_v47 = vmul.f32 %v6716_v58, %v4748_v29  ;;  %v4625_v48 = vunpack.i.h.bf16 %v4623_v52 }
 0x1a3   :  { %v4624_v54 = vunpack.i.l.bf16 %v4623_v52  ;;  %v3044_v51 = vadd.f32 %v5615_v14, %v5653_v59  ;;  %v1266_v50 = vrot.slane %v5651_v11, 1  ;;  %v1085_v30 = vshll.u32 %v5651_v11, 16 }
 0x1a4   :  { %v1590_v15 = vpack.c.b16 %v1526_v2, %v1526_v2  ;;  %v1591_v13 = vpack.c.b16 %v1527_v39, %v1527_v39  ;;  %v655_v17 = vsel %vm603_vm0, %v334_v0, %v4625_v48  ;;  %v2820_v22 = vpop.f32.mrf.mxu2  ;;  %v336_v60 = vmax.f32 %v5634_v62, 0.0 }
 0x1a5   :  { %v654_v4 = vsel %vm603_vm0, %v333_v8, %v4624_v54  ;;  %v719_v33 = vpack.c.bf16 %v655_v17, %v655_v17  ;;  %v1267_v28 = vsel %vm1218_vm1, %v1264_v24, %v1266_v50  ;;  %v3108_v5 = vmax.f32 %v3044_v51, 0.0 }
 0x1a6   :  { %1719 = vst.msk [vmem:[#allocation2 + $0x40] sm:$0xf] %vm1702_vm6, %v1590_v15  ;;  %v718_v37 = vpack.c.bf16 %v654_v4, %v654_v4  ;;  %v1368_v52 = vsel %vm1348_vm5, %v5212_v3, %v5572_v25  ;;  %v2127_v0 = vpop.f32.mrf.mxu0  ;;  %1330 = vrot.lane.b32.xlu0 %v1267_v28, %s4662_s1  ;;  %v1087_v7 = vrot.slane %v1085_v30, 1  ;;  %v1089_v8 = vshrl.u32 %v5651_v11, 16 }
 0x1a7   :  { %1720 = vst.msk [vmem:[#allocation2 + $0x44] sm:$0xf] %vm1702_vm6, %v1591_v13  ;;  %v847_v20 = vunpack.c.l.b16 %v719_v33  ;;  %v2317_v39 = vadd.f32 %v2316_v18, %v2127_v0  ;;  %v3171_v24 = vpack.c.bf16 %v3108_v5, %v3107_v6  ;;  %v335_v48 = vmax.f32 %v5642_v35, 0.0 }
 0x1a8   :  { %v846_v2 = vunpack.c.l.b16 %v718_v37  ;;  %v1303_v58 = vpop.permute.xlu0 %1302  ;;  %v338_v62 = vmax.f32 %v5645_v63, 0.0  ;;  %v2318_v54 = vpop.f32.mrf.mxu1  ;;  %v1088_v51 = vsel %vm892_vm2, %v1083_v16, %v1087_v7  ;;  %v5680_v15 = vadd.f32 %v4752_v32, %v208_v47 }
 0x1a9   :  { %v1433_v3 = vsel %vm1413_vm4, %v1368_v52, %v1303_v58  ;;  %v4628_v25 = vpop.permute.xlu1 %4627  ;;  %4232 = vmatmul.msk.bf16.vlgmr.msra.gmra.mxu3 %vm1348_vm5, %v3171_v24  ;;  %1199 = vrot.lane.b32.xlu2 %v1088_v51, %s4663_s14  ;;  %v211_v35 = vmul.f32 %v4447_v34, %v4748_v29  ;;  %v5691_v6 = vadd.f32 %v2820_v22, %v2317_v39  ;;  %v4304_v24 = vld [vmem:[#allocation2 + $0x38] sm:$0xff] }
 0x1aa   :  { %v5682_v13 = vpack.c.b16 %v847_v20, %v846_v2  ;;  %v1528_v17 = vunpack.c.l.b16 %v1433_v3  ;;  %v1529_v4 = vunpack.c.h.b16 %v1433_v3  ;;  %v5684_v18 = vpop.permute.xlu2 %1177  ;;  %v4630_v16 = vunpack.i.h.bf16 %v4628_v25 }
 0x1ab   :  { %v4629_v30 = vunpack.i.l.bf16 %v4628_v25  ;;  %v1091_v37 = vor.u32 %v1089_v8, %v1087_v7  ;;  %v210_v5 = vmul.f32 %v4446_v10, %v4748_v29  ;;  %v337_v22 = vmax.f32 %v5680_v15, 0.0  ;;  %v4271_v7 = vld [vmem:[#allocation2 + $0x38] sm:$0xff] }
 0x1ac   :  { %v1592_v47 = vpack.c.b16 %v1528_v17, %v1528_v17  ;;  %v1593_v33 = vpack.c.b16 %v1529_v4, %v1529_v4  ;;  %v1093_v28 = vshll.u32 %v5682_v13, 16  ;;  %v657_v52 = vsel %vm603_vm0, %v336_v60, %v4630_v16  ;;  %v2822_v20 = vpop.f32.mrf.mxu2 }
 0x1ad   :  { %v656_v0 = vsel %vm603_vm0, %v335_v48, %v4629_v30  ;;  %v1268_v34 = vrot.slane %v5682_v13, 1  ;;  %v721_v2 = vpack.c.bf16 %v657_v52, %v657_v52  ;;  %v5703_v58 = vadd.f32 %v4752_v32, %v211_v35 }
 0x1ae   :  { %1721 = vst.msk [vmem:[#allocation2 + $0x48] sm:$0xf] %vm1702_vm6, %v1592_v47  ;;  %v720_v39 = vpack.c.bf16 %v656_v0, %v656_v0  ;;  %v1095_v8 = vrot.slane %v1093_v28, 1  ;;  %v3045_v10 = vadd.f32 %v5615_v14, %v5691_v6  ;;  %v2129_v60 = vpop.f32.mrf.mxu0  ;;  %v5716_v53 = vadd.f32 %v4752_v32, %v210_v5 }
 0x1af   :  { %1722 = vst.msk [vmem:[#allocation2 + $0x4c] sm:$0xf] %vm1702_vm6, %v1593_v33  ;;  %v1269_v48 = vsel %vm1218_vm1, %v1266_v50, %v1268_v34  ;;  %v849_v3 = vunpack.c.l.b16 %v721_v2  ;;  %v2319_v51 = vadd.f32 %v2318_v54, %v2129_v60  ;;  %4002 = vmatmul.msk.bf16.gmra.mxu0 %vm2012_vm7, %v4271_v7  ;;  %4043 = vmatmul.msk.bf16.gmra.mxu1 %vm2012_vm7, %v4271_v7  ;;  %v1097_v16 = vshrl.u32 %v5682_v13, 16 }
 0x1b0   :  { %v848_v25 = vunpack.c.l.b16 %v720_v39  ;;  %v1305_v15 = vpop.permute.xlu0 %1304  ;;  %v1096_v17 = vsel %vm892_vm2, %v1091_v37, %v1095_v8  ;;  %v213_v4 = vmul.f32 %v6717_v46, %v4748_v29  ;;  %v2321_v35 = vpop.f32.mrf.mxu1  ;;  %4205 = vmatmul.msk.bf16.gmra.mxu2 %vm2012_vm7, %v4304_v24  ;;  %1332 = vrot.lane.b32.xlu0 %v1269_v48, %s4662_s1  ;;  %v6718_v5 = vunpack.c.l.bf16 %v5322_v43 }
 0x1b1   :  { %v1435_v50 = vsel %vm1413_vm4, %v1370_v38, %v1305_v15  ;;  %v4633_v54 = vpop.permute.xlu1 %4632  ;;  %v5727_v47 = vadd.f32 %v2822_v20, %v2319_v51  ;;  %1201 = vrot.lane.b32.xlu2 %v1096_v17, %s4663_s14  ;;  %v3109_v0 = vmax.f32 %v3045_v10, 0.0  ;;  %v1372_v63 = vsel %vm1348_vm5, %v5278_v31, %v5655_v1 }
 0x1b2   :  { %v5725_v30 = vpack.c.b16 %v849_v3, %v848_v25  ;;  %v1530_v33 = vunpack.c.l.b16 %v1435_v50  ;;  %v1531_v37 = vunpack.c.h.b16 %v1435_v50  ;;  %v5729_v28 = vpop.permute.xlu2 %1179  ;;  %v212_v52 = vmul.f32 %v6718_v5, %v4748_v29 }
 0x1b3   :  { %v4635_v2 = vunpack.i.h.bf16 %v4633_v54  ;;  %v4634_v39 = vunpack.i.l.bf16 %v4633_v54  ;;  %v3046_v7 = vadd.f32 %v5615_v14, %v5727_v47  ;;  %v1099_v25 = vor.u32 %v1097_v16, %v1095_v8 }
 0x1b4   :  { %v1594_v38 = vpack.c.b16 %v1530_v33, %v1530_v33  ;;  %v1595_v60 = vpack.c.b16 %v1531_v37, %v1531_v37  ;;  %v1101_v20 = vshll.u32 %v5725_v30, 16  ;;  %v2825_v3 = vpop.f32.mrf.mxu2  ;;  %v1270_v43 = vrot.slane %v5725_v30, 1 }
 0x1b5   :  { %v659_v24 = vsel %vm603_vm0, %v338_v62, %v4635_v2  ;;  %v658_v48 = vsel %vm603_vm0, %v337_v22, %v4634_v39  ;;  %v3110_v15 = vmax.f32 %v3046_v7, 0.0  ;;  %v5745_v46 = vadd.f32 %v4752_v32, %v213_v4 }
 0x1b6   :  { %1723 = vst.msk [vmem:[#allocation2 + $0x50] sm:$0xf] %vm1702_vm6, %v1594_v38  ;;  %v723_v10 = vpack.c.bf16 %v659_v24, %v659_v24  ;;  %v722_v51 = vpack.c.bf16 %v658_v48, %v658_v48  ;;  %v1103_v17 = vrot.slane %v1101_v20, 1  ;;  %v2132_v62 = vpop.f32.mrf.mxu0  ;;  %v1271_v22 = vsel %vm1218_vm1, %v1268_v34, %v1270_v43 }
 0x1b7   :  { %1724 = vst.msk [vmem:[#allocation2 + $0x54] sm:$0xf] %vm1702_vm6, %v1595_v60  ;;  %v1105_v8 = vshrl.u32 %v5725_v30, 16  ;;  %v2322_v16 = vadd.f32 %v2321_v35, %v2132_v62  ;;  %v3172_v37 = vpack.c.bf16 %v3110_v15, %v3109_v0  ;;  %v340_v5 = vmax.f32 %v5703_v58, 0.0 }
 0x1b8   :  { %v851_v50 = vunpack.c.l.b16 %v723_v10  ;;  %v850_v54 = vunpack.c.l.b16 %v722_v51  ;;  %v1307_v33 = vpop.permute.xlu0 %1306  ;;  %v339_v4 = vmax.f32 %v5716_v53, 0.0  ;;  %v1104_v31 = vsel %vm892_vm2, %v1099_v25, %v1103_v17  ;;  %1334 = vrot.lane.b32.xlu0 %v1271_v22, %s4662_s1  ;;  %v2323_v0 = vpop.f32.mrf.mxu1 }
 0x1b9   :  { %v1437_v2 = vsel %vm1413_vm4, %v1372_v63, %v1307_v33  ;;  %v4638_v39 = vpop.permute.xlu1 %4637  ;;  %v5759_v1 = vadd.f32 %v4752_v32, %v212_v52  ;;  %4233 = vmatmul.msk.bf16.gmra.mxu3 %vm1348_vm5, %v3172_v37  ;;  %1203 = vrot.lane.b32.xlu2 %v1104_v31, %s4663_s14  ;;  %v342_v58 = vmax.f32 %v5745_v46, 0.0  ;;  %v5768_v53 = vadd.f32 %v2825_v3, %v2322_v16  ;;  %v4305_v33 = vld [vmem:[#allocation2 + $0x40] sm:$0xff] }
 0x1ba   :  { %v5761_v34 = vpack.c.b16 %v851_v50, %v850_v54  ;;  %v1532_v7 = vunpack.c.l.b16 %v1437_v2  ;;  %v1533_v35 = vunpack.c.h.b16 %v1437_v2  ;;  %v5763_v38 = vpop.permute.xlu2 %1181  ;;  %v4640_v60 = vunpack.i.h.bf16 %v4638_v39 }
 0x1bb   :  { %v4639_v20 = vunpack.i.l.bf16 %v4638_v39  ;;  %v1107_v48 = vor.u32 %v1105_v8, %v1103_v17  ;;  %v215_v10 = vmul.f32 %v4455_v44, %v4748_v29  ;;  %v341_v46 = vmax.f32 %v5759_v1, 0.0  ;;  %v4272_v17 = vld [vmem:[#allocation2 + $0x40] sm:$0xff] }
 0x1bc   :  { %v1596_v24 = vpack.c.b16 %v1532_v7, %v1532_v7  ;;  %v1597_v52 = vpack.c.b16 %v1533_v35, %v1533_v35  ;;  %v1109_v25 = vshll.u32 %v5761_v34, 16  ;;  %v661_v51 = vsel %vm603_vm0, %v340_v5, %v4640_v60  ;;  %v2827_v63 = vpop.f32.mrf.mxu2 }
 0x1bd   :  { %v660_v15 = vsel %vm603_vm0, %v339_v4, %v4639_v20  ;;  %v1272_v3 = vrot.slane %v5761_v34, 1  ;;  %v725_v62 = vpack.c.bf16 %v661_v51, %v661_v51  ;;  %v214_v50 = vmul.f32 %v4454_v61, %v4748_v29 }
 0x1be   :  { %1725 = vst.msk [vmem:[#allocation2 + $0x58] sm:$0xf] %vm1702_vm6, %v1596_v24  ;;  %v724_v22 = vpack.c.bf16 %v660_v15, %v660_v15  ;;  %v1111_v8 = vrot.slane %v1109_v25, 1  ;;  %v1374_v44 = vsel %vm1348_vm5, %v5310_v36, %v5684_v18  ;;  %v3047_v54 = vadd.f32 %v5615_v14, %v5768_v53  ;;  %v2134_v16 = vpop.f32.mrf.mxu0 }
 0x1bf   :  { %1726 = vst.msk [vmem:[#allocation2 + $0x5c] sm:$0xf] %vm1702_vm6, %v1597_v52  ;;  %v1273_v37 = vsel %vm1218_vm1, %v1270_v43, %v1272_v3  ;;  %v853_v5 = vunpack.c.l.b16 %v725_v62  ;;  %v2324_v2 = vadd.f32 %v2323_v0, %v2134_v16  ;;  %4003 = vmatmul.msk.bf16.gmra.mxu0 %vm2012_vm7, %v4272_v17  ;;  %4044 = vmatmul.msk.bf16.gmra.mxu1 %vm2012_vm7, %v4272_v17  ;;  %v1113_v43 = vshrl.u32 %v5761_v34, 16 }
 0x1c0   :  { %v852_v4 = vunpack.c.l.b16 %v724_v22  ;;  %v1309_v49 = vpop.permute.xlu0 %1308  ;;  %v1112_v36 = vsel %vm892_vm2, %v1107_v48, %v1111_v8  ;;  %v5795_v61 = vadd.f32 %v4752_v32, %v215_v10  ;;  %4206 = vmatmul.msk.bf16.gmra.mxu2 %vm2012_vm7, %v4305_v33  ;;  %1336 = vrot.lane.b32.xlu0 %v1273_v37, %s4662_s1  ;;  %v4664_v60 = vmov 0  }
 0x1c1   :  { %v1439_v18 = vsel %vm1413_vm4, %v1374_v44, %v1309_v49  ;;  %v4643_v39 = vpop.permute.xlu1 %4642  ;;  %v5803_v1 = vadd.f32 %v2827_v63, %v2324_v2  ;;  %1205 = vrot.lane.b32.xlu2 %v1112_v36, %s4663_s14  ;;  %1767 = vst.msk [vmem:[#allocation2 + $0x100] sm:$0xf] %vm1702_vm6, %v4664_v60  ;;  %v279_v20 = vadd.f32 %v4752_v32, %v214_v50  ;;  %v3111_v24 = vmax.f32 %v3047_v54, 0.0  ;;  %v2326_v63 = vpop.f32.mrf.mxu1 }
 0x1c2   :  { %v5801_v31 = vpack.c.b16 %v853_v5, %v852_v4  ;;  %v1534_v7 = vunpack.c.l.b16 %v1439_v18  ;;  %v1535_v35 = vunpack.c.h.b16 %v1439_v18  ;;  %v5805_v0 = vpop.permute.xlu2 %1183  ;;  %v4645_v52 = vunpack.i.h.bf16 %v4643_v39  ;;  %1768 = vst.msk [vmem:[#allocation2 + $0x104] sm:$0xf] %vm1702_vm6, %v4664_v60 }
 0x1c3   :  { %v4644_v48 = vunpack.i.l.bf16 %v4643_v39  ;;  %v3048_v25 = vadd.f32 %v5615_v14, %v5803_v1  ;;  %1769 = vst.msk [vmem:[#allocation2 + $0x108] sm:$0xf] %vm1702_vm6, %v4664_v60  ;;  %v1115_v17 = vor.u32 %v1113_v43, %v1111_v8  ;;  %v344_v37 = vmax.f32 %v5795_v61, 0.0 }
 0x1c4   :  { %v1598_v10 = vpack.c.b16 %v1534_v7, %v1534_v7  ;;  %v1599_v51 = vpack.c.b16 %v1535_v35, %v1535_v35  ;;  %v1117_v15 = vshll.u32 %v5801_v31, 16  ;;  %v663_v62 = vsel %vm603_vm0, %v342_v58, %v4645_v52  ;;  %1770 = vst.msk [vmem:[#allocation2 + $0x10c] sm:$0xf] %vm1702_vm6, %v4664_v60  ;;  %v2830_v8 = vpop.f32.mrf.mxu2 }
 0x1c5   :  { %v662_v22 = vsel %vm603_vm0, %v341_v46, %v4644_v48  ;;  %v1274_v50 = vrot.slane %v5801_v31, 1  ;;  %v727_v44 = vpack.c.bf16 %v663_v62, %v663_v62  ;;  %v3112_v16 = vmax.f32 %v3048_v25, 0.0 }
 0x1c6   :  { %1727 = vst.msk [vmem:[#allocation2 + $0x60] sm:$0xf] %vm1702_vm6, %v1598_v10  ;;  %v726_v54 = vpack.c.bf16 %v662_v22, %v662_v22  ;;  %v1119_v33 = vrot.slane %v1117_v15, 1  ;;  %v217_v58 = vmul.f32 %v4459_v27, %v4748_v29  ;;  %v1376_v46 = vsel %vm1348_vm5, %v5343_v41, %v5729_v28  ;;  %v2137_v5 = vpop.f32.mrf.mxu0 }
 0x1c7   :  { %1728 = vst.msk [vmem:[#allocation2 + $0x64] sm:$0xf] %vm1702_vm6, %v1599_v51  ;;  %v1275_v4 = vsel %vm1218_vm1, %v1272_v3, %v1274_v50  ;;  %v855_v2 = vunpack.c.l.b16 %v727_v44  ;;  %v3173_v61 = vpack.c.bf16 %v3112_v16, %v3111_v24  ;;  %v1121_v18 = vshrl.u32 %v5801_v31, 16 }
 0x1c8   :  { %v854_v49 = vunpack.c.l.b16 %v726_v54  ;;  %v1311_v36 = vpop.permute.xlu0 %1310  ;;  %v343_v39 = vmax.f32 %v279_v20, 0.0  ;;  %v6719_v27 = vunpack.c.l.bf16 %v5386_v55  ;;  %v1120_v7 = vsel %vm892_vm2, %v1115_v17, %v1119_v33  ;;  %1338 = vrot.lane.b32.xlu0 %v1275_v4, %s4662_s1 }
 0x1c9   :  { %v1441_v41 = vsel %vm1413_vm4, %v1376_v46, %v1311_v36  ;;  %v4648_v28 = vpop.permute.xlu1 %4647  ;;  %4234 = vmatmul.msk.bf16.gmra.mxu3 %vm1348_vm5, %v3173_v61  ;;  %1207 = vrot.lane.b32.xlu2 %v1120_v7, %s4663_s14  ;;  %v282_v55 = vadd.f32 %v4752_v32, %v217_v58  ;;  %v1123_v51 = vor.u32 %v1121_v18, %v1119_v33 }
 0x1ca   :  { %v216_v43 = vmul.f32 %v6719_v27, %v4748_v29  ;;  %v5842_v35 = vpack.c.b16 %v855_v2, %v854_v49  ;;  %v1536_v3 = vunpack.c.l.b16 %v1441_v41  ;;  %v1537_v52 = vunpack.c.h.b16 %v1441_v41  ;;  %v5844_v48 = vpop.permute.xlu2 %1185 }
 0x1cb   :  { %v2327_v29 = vadd.f32 %v2326_v63, %v2137_v5  ;;  %v4650_v20 = vunpack.i.h.bf16 %v4648_v28  ;;  %v4649_v24 = vunpack.i.l.bf16 %v4648_v28  ;;  %v4273_v63 = vld [vmem:[#allocation2 + $0x48] sm:$0xff]  ;;  %v1378_v33 = vsel %vm1348_vm5, %v5375_v23, %v5763_v38  ;;  %v2328_v5 = vpop.f32.mrf.mxu1 }
 0x1cc   :  { %v1600_v25 = vpack.c.b16 %v1536_v3, %v1536_v3  ;;  %v1601_v10 = vpack.c.b16 %v1537_v52, %v1537_v52  ;;  %v1125_v15 = vshll.u32 %v5842_v35, 16  ;;  %v281_v62 = vadd.f32 %v4752_v32, %v216_v43 }
 0x1cd   :  { %v665_v22 = vsel %vm603_vm0, %v344_v37, %v4650_v20  ;;  %v664_v17 = vsel %vm603_vm0, %v343_v39, %v4649_v24  ;;  %v1276_v44 = vrot.slane %v5842_v35, 1  ;;  %v5858_v46 = vadd.f32 %v2830_v8, %v2327_v29  ;;  %v4306_v37 = vld [vmem:[#allocation2 + $0x48] sm:$0xff]  ;;  %v2832_v39 = vpop.f32.mrf.mxu2 }
 0x1ce   :  { %1729 = vst.msk [vmem:[#allocation2 + $0x68] sm:$0xf] %vm1702_vm6, %v1600_v25  ;;  %v729_v54 = vpack.c.bf16 %v665_v22, %v665_v22  ;;  %v728_v16 = vpack.c.bf16 %v664_v17, %v664_v17  ;;  %v1127_v58 = vrot.slane %v1125_v15, 1  ;;  %v2139_v32 = vpop.f32.mrf.mxu0  ;;  %v1129_v2 = vshrl.u32 %v5842_v35, 16 }
 0x1cf   :  { %1730 = vst.msk [vmem:[#allocation2 + $0x6c] sm:$0xf] %vm1702_vm6, %v1601_v10  ;;  %v1277_v4 = vsel %vm1218_vm1, %v1274_v50, %v1276_v44  ;;  %v2329_v61 = vadd.f32 %v2328_v5, %v2139_v32  ;;  %4004 = vmatmul.msk.bf16.gmra.mxu0 %vm2012_vm7, %v4273_v63  ;;  %4045 = vmatmul.msk.bf16.gmra.mxu1 %vm2012_vm7, %v4273_v63  ;;  %v346_v38 = vmax.f32 %v282_v55, 0.0  ;;  %v345_v8 = vmax.f32 %v281_v62, 0.0 }
 0x1d0   :  { %v857_v49 = vunpack.c.l.b16 %v729_v54  ;;  %v856_v36 = vunpack.c.l.b16 %v728_v16  ;;  %v1313_v18 = vpop.permute.xlu0 %1312  ;;  %v1128_v23 = vsel %vm892_vm2, %v1123_v51, %v1127_v58  ;;  %4207 = vmatmul.msk.bf16.gmra.mxu2 %vm2012_vm7, %v4306_v37  ;;  %v3049_v52 = vadd.f32 %v5615_v14, %v5858_v46 }
 0x1d1   :  { %v1443_v27 = vsel %vm1413_vm4, %v1378_v33, %v1313_v18  ;;  %v4653_v50 = vpop.permute.xlu1 %4652  ;;  %1209 = vrot.lane.b32.xlu1 %v1128_v23, %s4663_s14  ;;  %v5871_v41 = vadd.f32 %v2832_v39, %v2329_v61  ;;  %1340 = vrot.lane.b32.xlu2 %v1277_v4, %s4662_s1  ;;  %v1131_v20 = vor.u32 %v1129_v2, %v1127_v58 }
 0x1d2   :  { %v5869_v43 = vpack.c.b16 %v857_v49, %v856_v36  ;;  %v1538_v28 = vunpack.c.l.b16 %v1443_v27  ;;  %v1539_v7 = vunpack.c.h.b16 %v1443_v27  ;;  %v5873_v3 = vpop.permute.xlu2 %1187  ;;  %v4655_v55 = vunpack.i.h.bf16 %v4653_v50 }
 0x1d3   :  { %v4654_v29 = vunpack.i.l.bf16 %v4653_v50  ;;  %v3050_v24 = vadd.f32 %v5615_v14, %v5871_v41  ;;  %v3113_v58 = vmax.f32 %v3049_v52, 0.0  ;;  %v1380_v5 = vsel %vm1348_vm5, %v5407_v57, %v5805_v0 }
 0x1d4   :  { %v1602_v25 = vpack.c.b16 %v1538_v28, %v1538_v28  ;;  %v1603_v10 = vpack.c.b16 %v1539_v7, %v1539_v7  ;;  %v1133_v51 = vshll.u32 %v5869_v43, 16  ;;  %v667_v15 = vsel %vm603_vm0, %v346_v38, %v4655_v55  ;;  %v4274_v7 = vld [vmem:[#allocation2 + $0x50] sm:$0xff] }
 0x1d5   :  { %v666_v62 = vsel %vm603_vm0, %v345_v8, %v4654_v29  ;;  %v1278_v22 = vrot.slane %v5869_v43, 1  ;;  %v731_v17 = vpack.c.bf16 %v667_v15, %v667_v15  ;;  %v3114_v63 = vmax.f32 %v3050_v24, 0.0 }
 0x1d6   :  { %1731 = vst.msk [vmem:[#allocation2 + $0x70] sm:$0xf] %vm1702_vm6, %v1602_v25  ;;  %v730_v54 = vpack.c.bf16 %v666_v62, %v666_v62  ;;  %v1135_v16 = vrot.slane %v1133_v51, 1  ;;  %v1137_v33 = vshrl.u32 %v5869_v43, 16  ;;  %v1151_v52 = vrot.slane %v4664_v60, 1 }
 0x1d7   :  { %1732 = vst.msk [vmem:[#allocation2 + $0x74] sm:$0xf] %vm1702_vm6, %v1603_v10  ;;  %v1279_v14 = vsel %vm1218_vm1, %v1276_v44, %v1278_v22  ;;  %v859_v32 = vunpack.c.l.b16 %v731_v17  ;;  %v3174_v36 = vpack.c.bf16 %v3114_v63, %v3113_v58  ;;  %v1382_v55 = vsel %vm1348_vm5, %v5432_v45, %v5844_v48 }
 0x1d8   :  { %v858_v37 = vunpack.c.l.b16 %v730_v54  ;;  %v1136_v4 = vsel %vm892_vm2, %v1131_v20, %v1135_v16  ;;  %v1315_v2 = vpop.permute.xlu0 %1314  ;;  %v1139_v57 = vor.u32 %v1137_v33, %v1135_v16  ;;  %v4307_v20 = vld [vmem:[#allocation2 + $0x50] sm:$0xff]  ;;  %v1384_v17 = vsel %vm1348_vm5, %v5452_v56, %v5873_v3  ;;  %v4275_v56 = vld [vmem:[#allocation2 + $0x58] sm:$0xff] }
 0x1d9   :  { %1211 = vrot.lane.b32.xlu0 %v1136_v4, %s4663_s14  ;;  %v1445_v49 = vsel %vm1413_vm4, %v1380_v5, %v1315_v2  ;;  %1342 = vrot.lane.b32.xlu1 %v1279_v14, %s4662_s1 }
 0x1da   :  { %v5895_v61 = vpack.c.b16 %v859_v32, %v858_v37  ;;  %v1540_v44 = vunpack.c.l.b16 %v1445_v49  ;;  %v1541_v18 = vunpack.c.h.b16 %v1445_v49  ;;  %v1190_v23 = vpop.permute.xlu2 %1189  ;;  %4235 = vmatmul.msk.bf16.gmra.mxu3 %vm1348_vm5, %v3174_v36  ;;  %v5944_v36 = vpop.f32.mrf.mxu1 }
 0x1db   :  { %v1386_v3 = vsel %vm1348_vm5, %v5471_v40, %v1190_v23 }
 0x1dc   :  { %v1604_v0 = vpack.c.b16 %v1540_v44, %v1540_v44  ;;  %v1605_v38 = vpack.c.b16 %v1541_v18, %v1541_v18  ;;  %v1141_v8 = vshll.u32 %v5895_v61, 16  ;;  %v1280_v39 = vrot.slane %v5895_v61, 1 }
 0x1dd   :  { %v1145_v27 = vshrl.u32 %v5895_v61, 16 }
 0x1de   :  { %1733 = vst.msk [vmem:[#allocation2 + $0x78] sm:$0xf] %vm1702_vm6, %v1604_v0  ;;  %v1143_v50 = vrot.slane %v1141_v8, 1  ;;  %v1281_v28 = vsel %vm1218_vm1, %v1278_v22, %v1280_v39  ;;  %v1283_v22 = vsel %vm1218_vm1, %v1280_v39, %v1151_v52 }
 0x1df   :  { %1734 = vst.msk [vmem:[#allocation2 + $0x7c] sm:$0xf] %vm1702_vm6, %v1605_v38  ;;  %4005 = vmatmul.msk.bf16.gmra.mxu0 %vm2012_vm7, %v4274_v7  ;;  %4046 = vmatmul.msk.bf16.gmra.mxu1 %vm2012_vm7, %v4274_v7 }
 0x1e0   :  { %v1144_v29 = vsel %vm892_vm2, %v1139_v57, %v1143_v50  ;;  %v1317_v24 = vpop.permute.xlu0 %1316  ;;  %v1147_v25 = vor.u32 %v1145_v27, %v1143_v50  ;;  %4208 = vmatmul.msk.bf16.gmra.mxu2 %vm2012_vm7, %v4307_v20 }
 0x1e1   :  { %1213 = vrot.lane.b32.xlu2 %v1144_v29, %s4663_s14  ;;  %1344 = vrot.lane.b32.xlu0 %v1281_v28, %s4662_s1  ;;  %v1447_v60 = vsel %vm1413_vm4, %v1382_v55, %v1317_v24  ;;  %v2142_v24 = vpop.f32.mrf.mxu0 }
 0x1e2   :  { %v1542_v10 = vunpack.c.l.b16 %v1447_v60  ;;  %v1543_v51 = vunpack.c.h.b16 %v1447_v60  ;;  %v1152_v45 = vsel %vm892_vm2, %v1147_v25, %v1151_v52  ;;  %v1192_v48 = vpop.permute.xlu2 %1191  ;;  %v5962_v8 = vpop.f32.mrf.mxu1 }
 0x1e3   :  { %1215 = vrot.lane.b32.xlu1 %v1152_v45, %s4663_s14  ;;  %v4277_v45 = vld [vmem:[#allocation2 + $0x68] sm:$0xff] }
 0x1e4   :  { %v1606_v15 = vpack.c.b16 %v1542_v10, %v1542_v10  ;;  %v1607_v62 = vpack.c.b16 %v1543_v51, %v1543_v51 }
 0x1e6   :  { %1735 = vst.msk [vmem:[#allocation2 + $0x80] sm:$0xf] %vm1702_vm6, %v1606_v15 }
 0x1e7   :  { %1736 = vst.msk [vmem:[#allocation2 + $0x84] sm:$0xf] %vm1702_vm6, %v1607_v62 }
 0x1e8   :  { %v1319_v54 = vpop.permute.xlu0 %1318 }
 0x1e9   :  { %1346 = vrot.lane.b32.xlu2 %v1283_v22, %s4662_s1  ;;  %3268 = vrot.lane.b32.xlu0 %v5610_v12, %s4665_s2  ;;  %v1449_v16 = vsel %vm1413_vm4, %v1384_v17, %v1319_v54  ;;  %v4308_v12 = vld [vmem:[#allocation2 + $0x58] sm:$0xff] }
 0x1ea   :  { %v1544_v63 = vunpack.c.l.b16 %v1449_v16  ;;  %v1545_v58 = vunpack.c.h.b16 %v1449_v16  ;;  %v1194_v14 = vpop.permute.xlu2 %1193  ;;  %v5971_v25 = vpop.f32.mrf.mxu1 }
 0x1eb   :  { %3270 = vrot.lane.b32.xlu1 %v5653_v59, %s4665_s2 }
 0x1ec   :  { %v1608_v33 = vpack.c.b16 %v1544_v63, %v1544_v63  ;;  %v1609_v5 = vpack.c.b16 %v1545_v58, %v1545_v58  ;;  %v2144_v58 = vpop.f32.mrf.mxu0 }
 0x1ee   :  { %1737 = vst.msk [vmem:[#allocation2 + $0x88] sm:$0xf] %vm1702_vm6, %v1608_v33 }
 0x1ef   :  { %1738 = vst.msk [vmem:[#allocation2 + $0x8c] sm:$0xf] %vm1702_vm6, %v1609_v5  ;;  %4006 = vmatmul.msk.bf16.gmra.mxu0 %vm2012_vm7, %v4275_v56  ;;  %4047 = vmatmul.msk.bf16.gmra.mxu1 %vm2012_vm7, %v4275_v56 }
 0x1f0   :  { %v1321_v32 = vpop.permute.xlu0 %1320  ;;  %4209 = vmatmul.msk.bf16.gmra.mxu2 %vm2012_vm7, %v4308_v12 }
 0x1f1   :  { %3272 = vrot.lane.b32.xlu2 %v5691_v6, %s4665_s2  ;;  %3274 = vrot.lane.b32.xlu0 %v5727_v47, %s4665_s2  ;;  %v1451_v59 = vsel %vm1413_vm4, %v1386_v3, %v1321_v32  ;;  %v1388_v6 = vsel %vm1348_vm5, %v5490_v26, %v1192_v48  ;;  %v4276_v26 = vld [vmem:[#allocation2 + $0x60] sm:$0xff] }
 0x1f2   :  { %v1546_v37 = vunpack.c.l.b16 %v1451_v59  ;;  %v1547_v4 = vunpack.c.h.b16 %v1451_v59  ;;  %v1196_v2 = vpop.permute.xlu2 %1195 }
 0x1f3   :  { %3276 = vrot.lane.b32.xlu1 %v5768_v53, %s4665_s2 }
 0x1f4   :  { %v1610_v40 = vpack.c.b16 %v1546_v37, %v1546_v37  ;;  %v1611_v49 = vpack.c.b16 %v1547_v4, %v1547_v4 }
 0x1f6   :  { %1739 = vst.msk [vmem:[#allocation2 + $0x90] sm:$0xf] %vm1702_vm6, %v1610_v40 }
 0x1f7   :  { %1740 = vst.msk [vmem:[#allocation2 + $0x94] sm:$0xf] %vm1702_vm6, %v1611_v49  ;;  %v2332_v49 = vadd.f32 %v5944_v36, %v2142_v24  ;;  %v2334_v36 = vadd.f32 %v5962_v8, %v2144_v58  ;;  %v4279_v8 = vld [vmem:[#allocation2 + $0x78] sm:$0xff] }
 0x1f8   :  { %v1323_v47 = vpop.permute.xlu0 %1322 }
 0x1f9   :  { %3278 = vrot.lane.b32.xlu2 %v5803_v1, %s4665_s2  ;;  %3280 = vrot.lane.b32.xlu0 %v5858_v46, %s4665_s2  ;;  %v1453_v53 = vsel %vm1413_vm4, %v1388_v6, %v1323_v47  ;;  %v1390_v1 = vsel %vm1348_vm5, %v5511_v21, %v1194_v14  ;;  %v4309_v46 = vld [vmem:[#allocation2 + $0x60] sm:$0xff]  ;;  %v1392_v21 = vsel %vm1348_vm5, %v5536_v19, %v1196_v2  ;;  %v4310_v19 = vld [vmem:[#allocation2 + $0x68] sm:$0xff]  ;;  %v5981_v14 = vpop.f32.mrf.mxu1  ;;  %v4278_v2 = vld [vmem:[#allocation2 + $0x70] sm:$0xff] }
 0x1fa   :  { %v1548_v44 = vunpack.c.l.b16 %v1453_v53  ;;  %v1549_v18 = vunpack.c.h.b16 %v1453_v53  ;;  %v1198_v23 = vpop.permute.xlu2 %1197 }
 0x1fb   :  { %3282 = vrot.lane.b32.xlu1 %v5871_v41, %s4665_s2  ;;  %v1394_v48 = vsel %vm1348_vm5, %v5569_v9, %v1198_v23 }
 0x1fc   :  { %v1612_v57 = vpack.c.b16 %v1548_v44, %v1548_v44  ;;  %v1613_v0 = vpack.c.b16 %v1549_v18, %v1549_v18 }
 0x1fe   :  { %1741 = vst.msk [vmem:[#allocation2 + $0x98] sm:$0xf] %vm1702_vm6, %v1612_v57 }
 0x1ff   :  { %1742 = vst.msk [vmem:[#allocation2 + $0x9c] sm:$0xf] %vm1702_vm6, %v1613_v0  ;;  %4007 = vmatmul.msk.bf16.gmra.mxu0 %vm2012_vm7, %v4276_v26  ;;  %4048 = vmatmul.msk.bf16.gmra.mxu1 %vm2012_vm7, %v4276_v26 }
 0x200   :  { %v1325_v38 = vpop.permute.xlu0 %1324  ;;  %4210 = vmatmul.msk.bf16.gmra.mxu2 %vm2012_vm7, %v4309_v46 }
 0x201   :  { %v1455_v41 = vsel %vm1413_vm4, %v1390_v1, %v1325_v38 }
 0x202   :  { %v1550_v39 = vunpack.c.l.b16 %v1455_v41  ;;  %v1551_v27 = vunpack.c.h.b16 %v1455_v41 }
 0x203   :  { %v1200_v7 = vpop.permute.xlu2 %1199 }
 0x204   :  { %v1614_v50 = vpack.c.b16 %v1550_v39, %v1550_v39  ;;  %v1615_v28 = vpack.c.b16 %v1551_v27, %v1551_v27  ;;  %v1396_v9 = vsel %vm1348_vm5, %v5605_v42, %v1200_v7  ;;  %v4311_v42 = vld [vmem:[#allocation2 + $0x70] sm:$0xff]  ;;  %v6011_v27 = vld [vmem:[%s6688_s3] ss:$0 sm:$0xff] }
 0x206   :  { %1743 = vst.msk [vmem:[#allocation2 + $0xa0] sm:$0xf] %vm1702_vm6, %v1614_v50 }
 0x207   :  { %1744 = vst.msk [vmem:[#allocation2 + $0xa4] sm:$0xf] %vm1702_vm6, %v1615_v28 }
 0x208   :  { %v1327_v52 = vpop.permute.xlu0 %1326 }
 0x209   :  { %v1457_v55 = vsel %vm1413_vm4, %v1392_v21, %v1327_v52 }
 0x20a   :  { %v1552_v29 = vunpack.c.l.b16 %v1457_v55  ;;  %v1553_v20 = vunpack.c.h.b16 %v1457_v55 }
 0x20b   :  { %v1202_v51 = vpop.permute.xlu2 %1201 }
 0x20c   :  { %v1616_v60 = vpack.c.b16 %v1552_v29, %v1552_v29  ;;  %v1617_v10 = vpack.c.b16 %v1553_v20, %v1553_v20  ;;  %v1398_v40 = vsel %vm1348_vm5, %v5651_v11, %v1202_v51 }
 0x20e   :  { %1745 = vst.msk [vmem:[#allocation2 + $0xa8] sm:$0xf] %vm1702_vm6, %v1616_v60  ;;  %v4312_v60 = vld [vmem:[#allocation2 + $0x78] sm:$0xff] }
 0x20f   :  { %1746 = vst.msk [vmem:[#allocation2 + $0xac] sm:$0xf] %vm1702_vm6, %v1617_v10  ;;  %4008 = vmatmul.msk.bf16.gmra.mxu0 %vm2012_vm7, %v4277_v45  ;;  %4049 = vmatmul.msk.bf16.gmra.mxu1 %vm2012_vm7, %v4277_v45 }
 0x210   :  { %v1329_v15 = vpop.permute.xlu0 %1328  ;;  %4211 = vmatmul.msk.bf16.gmra.mxu2 %vm2012_vm7, %v4310_v19 }
 0x211   :  { %v1459_v62 = vsel %vm1413_vm4, %v1394_v48, %v1329_v15 }
 0x212   :  { %v1554_v22 = vunpack.c.l.b16 %v1459_v62  ;;  %v1555_v17 = vunpack.c.h.b16 %v1459_v62 }
 0x213   :  { %v1204_v63 = vpop.permute.xlu2 %1203 }
 0x214   :  { %v1618_v54 = vpack.c.b16 %v1554_v22, %v1554_v22  ;;  %v1619_v16 = vpack.c.b16 %v1555_v17, %v1555_v17  ;;  %v1400_v11 = vsel %vm1348_vm5, %v5682_v13, %v1204_v63 }
 0x216   :  { %1747 = vst.msk [vmem:[#allocation2 + $0xb0] sm:$0xf] %vm1702_vm6, %v1618_v54 }
 0x217   :  { %1748 = vst.msk [vmem:[#allocation2 + $0xb4] sm:$0xf] %vm1702_vm6, %v1619_v16 }
 0x218   :  { %v1331_v33 = vpop.permute.xlu0 %1330 }
 0x219   :  { %v1461_v5 = vsel %vm1413_vm4, %v1396_v9, %v1331_v33 }
 0x21a   :  { %v1556_v56 = vunpack.c.l.b16 %v1461_v5  ;;  %v1557_v3 = vunpack.c.h.b16 %v1461_v5 }
 0x21b   :  { %v1206_v12 = vpop.permute.xlu2 %1205 }
 0x21c   :  { %v1620_v32 = vpack.c.b16 %v1556_v56, %v1556_v56  ;;  %v1621_v59 = vpack.c.b16 %v1557_v3, %v1557_v3  ;;  %v2147_v37 = vpop.f32.mrf.mxu0  ;;  %v5988_v4 = vpop.f32.mrf.mxu1  ;;  %v1402_v10 = vsel %vm1348_vm5, %v5725_v30, %v1206_v12 }
 0x21d   :  { %v2337_v19 = vadd.f32 %v5971_v25, %v2147_v37 }
 0x21e   :  { %1749 = vst.msk [vmem:[#allocation2 + $0xb8] sm:$0xf] %vm1702_vm6, %v1620_v32 }
 0x21f   :  { %1750 = vst.msk [vmem:[#allocation2 + $0xbc] sm:$0xf] %vm1702_vm6, %v1621_v59  ;;  %4009 = vmatmul.msk.bf16.gmra.mxu0 %vm2012_vm7, %v4278_v2  ;;  %4050 = vmatmul.msk.bf16.gmra.mxu1 %vm2012_vm7, %v4278_v2 }
 0x220   :  { %4212 = vmatmul.msk.bf16.gmra.mxu2 %vm2012_vm7, %v4311_v42 }
 0x222   :  { %v1333_v6 = vpop.permute.xlu0 %1332 }
 0x223   :  { %v2835_v47 = vpop.f32.mrf.mxu2  ;;  %v1463_v53 = vsel %vm1413_vm4, %v1398_v40, %v1333_v6  ;;  %v1208_v26 = vpop.permute.xlu2 %1207 }
 0x224   :  { %v2983_v44 = vadd.f32 %v2835_v47, %v2332_v49  ;;  %v2149_v18 = vpop.f32.mrf.mxu0  ;;  %v5999_v23 = vpop.f32.mrf.mxu1  ;;  %v1558_v57 = vunpack.c.l.b16 %v1463_v53  ;;  %v1559_v0 = vunpack.c.h.b16 %v1463_v53  ;;  %v1404_v25 = vsel %vm1348_vm5, %v5761_v34, %v1208_v26  ;;  %v4280_v47 = vld [vmem:[#allocation2 + $0x80] sm:$0xff] }
 0x225   :  { %v2339_v56 = vadd.f32 %v5981_v14, %v2149_v18  ;;  %v4313_v18 = vld [vmem:[#allocation2 + $0x80] sm:$0xff] }
 0x226   :  { %3284 = vrot.lane.b32.xlu2 %v2983_v44, %s4665_s2  ;;  %v1622_v1 = vpack.c.b16 %v1558_v57, %v1558_v57  ;;  %v1623_v46 = vpack.c.b16 %v1559_v0, %v1559_v0  ;;  %v3051_v50 = vadd.f32 %v6011_v27, %v2983_v44 }
 0x228   :  { %1751 = vst.msk [vmem:[#allocation2 + $0xc0] sm:$0xf] %vm1702_vm6, %v1622_v1  ;;  %v3115_v51 = vmax.f32 %v3051_v50, 0.0 }
 0x229   :  { %1752 = vst.msk [vmem:[#allocation2 + $0xc4] sm:$0xf] %vm1702_vm6, %v1623_v46 }
 0x22a   :  { %v1335_v38 = vpop.permute.xlu0 %1334 }
 0x22b   :  { %v2837_v41 = vpop.f32.mrf.mxu2  ;;  %v1465_v39 = vsel %vm1413_vm4, %v1400_v11, %v1335_v38  ;;  %v1341_v48 = vpop.permute.xlu2 %1340 }
 0x22c   :  { %v2984_v28 = vadd.f32 %v2837_v41, %v2334_v36  ;;  %v6014_v7 = vpop.f32.mrf.mxu0  ;;  %v6016_v13 = vpop.f32.mrf.mxu1  ;;  %v1560_v21 = vunpack.c.l.b16 %v1465_v39  ;;  %v1561_v52 = vunpack.c.h.b16 %v1465_v39 }
 0x22d   :  { %v6018_v55 = vpop.f32.mrf.mxu3  ;;  %v2342_v26 = vadd.f32 %v5988_v4, %v6014_v7 }
 0x22e   :  { %v3052_v29 = vadd.f32 %v6011_v27, %v2984_v28  ;;  %3286 = vrot.lane.b32.xlu0 %v2984_v28, %s4665_s2  ;;  %v1624_v20 = vpack.c.b16 %v1560_v21, %v1560_v21  ;;  %v1625_v24 = vpack.c.b16 %v1561_v52, %v1561_v52 }
 0x22f   :  { %4010 = vmatmul.msk.bf16.gmra.mxu0 %vm2012_vm7, %v4279_v8  ;;  %4051 = vmatmul.msk.bf16.gmra.mxu1 %vm2012_vm7, %v4279_v8 }
 0x230   :  { %v3116_v45 = vmax.f32 %v3052_v29, 0.0  ;;  %1753 = vst.msk [vmem:[#allocation2 + $0xc8] sm:$0xf] %vm1702_vm6, %v1624_v20  ;;  %4213 = vmatmul.msk.bf16.gmra.mxu2 %vm2012_vm7, %v4312_v60 }
 0x231   :  { %1754 = vst.msk [vmem:[#allocation2 + $0xcc] sm:$0xf] %vm1702_vm6, %v1625_v24 }
 0x232   :  { %v3175_v15 = vpack.c.bf16 %v3116_v45, %v3115_v51  ;;  %v1337_v62 = vpop.permute.xlu0 %1336 }
 0x233   :  { %v2840_v22 = vpop.f32.mrf.mxu2  ;;  %v1467_v17 = vsel %vm1413_vm4, %v1402_v10, %v1337_v62 }
 0x234   :  { %v2985_v54 = vadd.f32 %v2840_v22, %v2337_v19  ;;  %4236 = vmatmul.msk.bf16.gmra.mxu3 %vm1348_vm5, %v3175_v15  ;;  %v2154_v30 = vpop.f32.mrf.mxu0  ;;  %v6032_v16 = vpop.f32.mrf.mxu1  ;;  %v1562_v63 = vunpack.c.l.b16 %v1467_v17  ;;  %v1563_v58 = vunpack.c.h.b16 %v1467_v17 }
 0x235   :  { %v6034_v9 = vpop.f32.mrf.mxu3  ;;  %v2344_v29 = vadd.f32 %v5999_v23, %v2154_v30 }
 0x236   :  { %3288 = vrot.lane.b32.xlu1 %v2985_v54, %s4665_s2  ;;  %v1626_v33 = vpack.c.b16 %v1562_v63, %v1562_v63  ;;  %v1627_v5 = vpack.c.b16 %v1563_v58, %v1563_v58  ;;  %v3053_v37 = vadd.f32 %v6011_v27, %v2985_v54  ;;  %v4281_v63 = vld [vmem:[#allocation2 + $0x88] sm:$0xff] }
 0x238   :  { %1755 = vst.msk [vmem:[#allocation2 + $0xd0] sm:$0xf] %vm1702_vm6, %v1626_v33  ;;  %v3117_v57 = vmax.f32 %v3053_v37, 0.0 }
 0x239   :  { %1756 = vst.msk [vmem:[#allocation2 + $0xd4] sm:$0xf] %vm1702_vm6, %v1627_v5  ;;  %v4314_v5 = vld [vmem:[#allocation2 + $0x88] sm:$0xff] }
 0x23a   :  { %v1339_v12 = vpop.permute.xlu0 %1338 }
 0x23b   :  { %v6042_v3 = vpop.permute.xlu2 %1213  ;;  %v2842_v32 = vpop.f32.mrf.mxu2  ;;  %v1469_v59 = vsel %vm1413_vm4, %v1404_v25, %v1339_v12 }
 0x23c   :  { %v2986_v2 = vadd.f32 %v2842_v32, %v2339_v56  ;;  %v6046_v42 = vpop.f32.mrf.mxu0  ;;  %v6048_v40 = vpop.f32.mrf.mxu1  ;;  %v1564_v34 = vunpack.c.l.b16 %v1469_v59  ;;  %v1565_v49 = vunpack.c.h.b16 %v1469_v59  ;;  %v1410_v25 = vsel %vm1348_vm5, %v5869_v43, %v6042_v3 }
 0x23d   :  { %v3573_v6 = vpop.f32.mrf.mxu3  ;;  %v2347_v32 = vadd.f32 %v6016_v13, %v6046_v42 }
 0x23e   :  { %v3054_v53 = vadd.f32 %v6011_v27, %v2986_v2  ;;  %3290 = vrot.lane.b32.xlu2 %v2986_v2, %s4665_s2  ;;  %v1628_v14 = vpack.c.b16 %v1564_v34, %v1564_v34  ;;  %v1629_v44 = vpack.c.b16 %v1565_v49, %v1565_v49 }
 0x23f   :  { %4011 = vmatmul.msk.bf16.gmra.mxu0 %vm2012_vm7, %v4280_v47  ;;  %4052 = vmatmul.msk.bf16.gmra.mxu1 %vm2012_vm7, %v4280_v47 }
 0x240   :  { %v3118_v0 = vmax.f32 %v3054_v53, 0.0  ;;  %1757 = vst.msk [vmem:[#allocation2 + $0xd8] sm:$0xf] %vm1702_vm6, %v1628_v14  ;;  %4214 = vmatmul.msk.bf16.gmra.mxu2 %vm2012_vm7, %v4313_v18 }
 0x241   :  { %1758 = vst.msk [vmem:[#allocation2 + $0xdc] sm:$0xf] %vm1702_vm6, %v1629_v44 }
 0x242   :  { %v3176_v11 = vpack.c.bf16 %v3118_v0, %v3117_v57 }
 0x243   :  { %v6059_v1 = vpop.permute.xlu2 %1346  ;;  %v1210_v46 = vpop.permute.xlu1 %1209 }
 0x244   :  { %v2845_v36 = vpop.f32.mrf.mxu2  ;;  %v1406_v38 = vsel %vm1348_vm5, %v5801_v31, %v1210_v46  ;;  %4237 = vmatmul.msk.bf16.gmra.mxu3 %vm1348_vm5, %v3176_v11  ;;  %v6065_v50 = vpop.f32.mrf.mxu0  ;;  %v6076_v31 = vld [vmem:[%s6690_s5] ss:$0 sm:$0xff] }
 0x245   :  { %v2987_v41 = vadd.f32 %v2845_v36, %v2342_v26  ;;  %v1471_v39 = vsel %vm1413_vm4, %v1406_v38, %v1341_v48  ;;  %v6067_v28 = vpop.f32.mrf.mxu1  ;;  %v6069_v4 = vpop.f32.mrf.mxu3  ;;  %v2349_v38 = vadd.f32 %v6032_v16, %v6065_v50 }
 0x246   :  { %v1566_v21 = vunpack.c.l.b16 %v1471_v39  ;;  %v1567_v52 = vunpack.c.h.b16 %v1471_v39 }
 0x247   :  { %3292 = vrot.lane.b32.xlu0 %v2987_v41, %s4665_s2  ;;  %v3055_v48 = vadd.f32 %v6011_v27, %v2987_v41 }
 0x248   :  { %v1630_v7 = vpack.c.b16 %v1566_v21, %v1566_v21  ;;  %v1631_v8 = vpack.c.b16 %v1567_v52, %v1567_v52 }
 0x249   :  { %v3119_v56 = vmax.f32 %v3055_v48, 0.0 }
 0x24a   :  { %1759 = vst.msk [vmem:[#allocation2 + $0xe0] sm:$0xf] %vm1702_vm6, %v1630_v7 }
 0x24b   :  { %1760 = vst.msk [vmem:[#allocation2 + $0xe4] sm:$0xf] %vm1702_vm6, %v1631_v8  ;;  %v3273_v20 = vpop.permute.xlu2 %3272  ;;  %v1212_v24 = vpop.permute.xlu0 %1211 }
 0x24c   :  { %v3574_v60 = vadd.f32 %v3573_v6, %v3273_v20  ;;  %v1408_v10 = vsel %vm1348_vm5, %v5842_v35, %v1212_v24  ;;  %v2847_v51 = vpop.f32.mrf.mxu2  ;;  %v1343_v45 = vpop.permute.xlu1 %1342 }
 0x24d   :  { %v2988_v19 = vadd.f32 %v2847_v51, %v2344_v29  ;;  %v1473_v15 = vsel %vm1413_vm4, %v1408_v10, %v1343_v45  ;;  %v6084_v62 = vpop.f32.mrf.mxu0  ;;  %v6086_v22 = vpop.f32.mrf.mxu1 }
 0x24e   :  { %v3734_v23 = vadd.f32 %v6076_v31, %v3574_v60  ;;  %v1568_v17 = vunpack.c.l.b16 %v1473_v15  ;;  %v1569_v54 = vunpack.c.h.b16 %v1473_v15  ;;  %v6089_v30 = vpop.f32.mrf.mxu3  ;;  %v4315_v60 = vld [vmem:[#allocation2 + $0x90] sm:$0xff] }
 0x24f   :  { %v3056_v35 = vadd.f32 %v6011_v27, %v2988_v19  ;;  %3294 = vrot.lane.b32.xlu1 %v2988_v19, %s4665_s2  ;;  %4012 = vmatmul.msk.bf16.gmra.mxu0 %vm2012_vm7, %v4281_v63  ;;  %v2352_v19 = vadd.f32 %v6048_v40, %v6084_v62 }
 0x250   :  { %3798 = vst.msk [vmem:[%s6691_s6 + $0x10] sm:$0xff] %vm1348_vm5, %v3734_v23  ;;  %v1632_v58 = vpack.c.b16 %v1568_v17, %v1568_v17  ;;  %v1633_v33 = vpack.c.b16 %v1569_v54, %v1569_v54  ;;  %4053 = vmatmul.msk.bf16.gmra.mxu1 %vm2012_vm7, %v4281_v63  ;;  %4215 = vmatmul.msk.bf16.gmra.mxu2 %vm2012_vm7, %v4314_v5 }
 0x251   :  { %v3120_v12 = vmax.f32 %v3056_v35, 0.0 }
 0x252   :  { %1761 = vst.msk [vmem:[#allocation2 + $0xe8] sm:$0xf] %vm1702_vm6, %v1632_v58 }
 0x253   :  { %1762 = vst.msk [vmem:[#allocation2 + $0xec] sm:$0xf] %vm1702_vm6, %v1633_v33  ;;  %v1345_v59 = vpop.permute.xlu0 %1344  ;;  %v3177_v37 = vpack.c.bf16 %v3120_v12, %v3119_v56  ;;  %v3279_v42 = vpop.permute.xlu2 %3278 }
 0x254   :  { %v1475_v2 = vsel %vm1413_vm4, %v1410_v25, %v1345_v59  ;;  %v2850_v34 = vpop.f32.mrf.mxu2 }
 0x255   :  { %v1570_v49 = vunpack.c.l.b16 %v1475_v2  ;;  %v1571_v6 = vunpack.c.h.b16 %v1475_v2  ;;  %v2989_v47 = vadd.f32 %v2850_v34, %v2347_v32  ;;  %v1216_v43 = vpop.permute.xlu1 %1215  ;;  %4238 = vmatmul.msk.bf16.gmra.mxu3 %vm1348_vm5, %v3177_v37  ;;  %v2164_v3 = vpop.f32.mrf.mxu0 }
 0x256   :  { %v1412_v53 = vsel %vm1348_vm5, %v5895_v61, %v1216_v43  ;;  %v6111_v14 = vpop.f32.mrf.mxu1  ;;  %v3580_v13 = vpop.f32.mrf.mxu3  ;;  %v2354_v62 = vadd.f32 %v6067_v28, %v2164_v3 }
 0x257   :  { %v1634_v44 = vpack.c.b16 %v1570_v49, %v1570_v49  ;;  %v1635_v18 = vpack.c.b16 %v1571_v6, %v1571_v6  ;;  %v1477_v57 = vsel %vm1413_vm4, %v1412_v53, %v6059_v1  ;;  %3296 = vrot.lane.b32.xlu2 %v2989_v47, %s4665_s2  ;;  %v3581_v46 = vadd.f32 %v3580_v13, %v3279_v42  ;;  %v4283_v49 = vld [vmem:[#allocation2 + $0x98] sm:$0xff] }
 0x258   :  { %v1572_v0 = vunpack.c.l.b16 %v1477_v57  ;;  %v1573_v26 = vunpack.c.h.b16 %v1477_v57  ;;  %v3057_v21 = vadd.f32 %v6011_v27, %v2989_v47  ;;  %v4316_v47 = vld [vmem:[#allocation2 + $0x98] sm:$0xff] }
 0x259   :  { %1763 = vst.msk [vmem:[#allocation2 + $0xf0] sm:$0xf] %vm1702_vm6, %v1634_v44  ;;  %v3737_v36 = vadd.f32 %v6076_v31, %v3581_v46 }
 0x25a   :  { %1764 = vst.msk [vmem:[#allocation2 + $0xf4] sm:$0xf] %vm1702_vm6, %v1635_v18  ;;  %v1636_v11 = vpack.c.b16 %v1572_v0, %v1572_v0  ;;  %v1637_v61 = vpack.c.b16 %v1573_v26, %v1573_v26 }
 0x25b   :  { %v3269_v41 = vpop.permute.xlu0 %3268  ;;  %3801 = vst.msk [vmem:[%s6691_s6 + $0x28] sm:$0xff] %vm1348_vm5, %v3737_v36 }
 0x25c   :  { %1765 = vst.msk [vmem:[#allocation2 + $0xf8] sm:$0xf] %vm1702_vm6, %v1636_v11  ;;  %v3569_v1 = vadd.f32 %v6018_v55, %v3269_v41  ;;  %v2852_v39 = vpop.f32.mrf.mxu2  ;;  %v4282_v55 = vld [vmem:[#allocation2 + $0x90] sm:$0xff]  ;;  %v4317_v41 = vld [vmem:[#allocation2 + $0xa0] sm:$0xff] }
 0x25d   :  { %1766 = vst.msk [vmem:[#allocation2 + $0xfc] sm:$0xf] %vm1702_vm6, %v1637_v61  ;;  %v2990_v52 = vadd.f32 %v2852_v39, %v2349_v38  ;;  %v3271_v7 = vpop.permute.xlu1 %3270  ;;  %v2167_v8 = vpop.f32.mrf.mxu0  ;;  %v4284_v38 = vld [vmem:[#allocation2 + $0xa0] sm:$0xff] }
 0x25e   :  { %v3732_v16 = vadd.f32 %v6076_v31, %v3569_v1  ;;  %v3571_v50 = vadd.f32 %v6034_v9, %v3271_v7  ;;  %v6131_v29 = vpop.f32.mrf.mxu1  ;;  %v3121_v9 = vmax.f32 %v3057_v21, 0.0  ;;  %v3583_v51 = vpop.f32.mrf.mxu3  ;;  %v2357_v53 = vadd.f32 %v6086_v22, %v2167_v8 }
 0x25f   :  { %v3058_v20 = vadd.f32 %v6011_v27, %v2990_v52  ;;  %3298 = vrot.lane.b32.xlu0 %v2990_v52, %s4665_s2  ;;  %4013 = vmatmul.msk.bf16.gmra.mxu0 %vm2012_vm7, %v4282_v55 }
 0x260   :  { %3796 = vst.msk [vmem:[%s6691_s6] sm:$0xff] %vm1348_vm5, %v3732_v16  ;;  %v3733_v24 = vadd.f32 %v6076_v31, %v3571_v50  ;;  %4054 = vmatmul.msk.bf16.gmra.mxu1 %vm2012_vm7, %v4282_v55  ;;  %4216 = vmatmul.msk.bf16.gmra.mxu2 %vm2012_vm7, %v4315_v60 }
 0x261   :  { %v3122_v10 = vmax.f32 %v3058_v20, 0.0 }
 0x262   :  { %3797 = vst.msk [vmem:[%s6691_s6 + $0x8] sm:$0xff] %vm1348_vm5, %v3733_v24 }
 0x263   :  { %v3275_v45 = vpop.permute.xlu0 %3274  ;;  %v3178_v48 = vpack.c.bf16 %v3122_v10, %v3121_v9  ;;  %v4285_v10 = vld [vmem:[#allocation2 + $0xa8] sm:$0xff] }
 0x264   :  { %v3576_v15 = vadd.f32 %v6069_v4, %v3275_v45  ;;  %v2855_v23 = vpop.f32.mrf.mxu2 }
 0x265   :  { %v3277_v17 = vpop.permute.xlu1 %3276  ;;  %4239 = vmatmul.msk.bf16.gmra.mxu3 %vm1348_vm5, %v3178_v48  ;;  %v2991_v63 = vadd.f32 %v2855_v23, %v2352_v19  ;;  %v2169_v58 = vpop.f32.mrf.mxu0 }
 0x266   :  { %v3735_v54 = vadd.f32 %v6076_v31, %v3576_v15  ;;  %v3579_v35 = vadd.f32 %v6089_v30, %v3277_v17  ;;  %v2363_v33 = vpop.f32.mrf.mxu1  ;;  %v3585_v30 = vpop.f32.mrf.mxu3  ;;  %v2359_v0 = vadd.f32 %v6111_v14, %v2169_v58 }
 0x267   :  { %3300 = vrot.lane.b32.xlu1 %v2991_v63, %s4665_s2  ;;  %v3059_v12 = vadd.f32 %v6011_v27, %v2991_v63 }
 0x268   :  { %3799 = vst.msk [vmem:[%s6691_s6 + $0x18] sm:$0xff] %vm1348_vm5, %v3735_v54  ;;  %v3736_v40 = vadd.f32 %v6076_v31, %v3579_v35 }
 0x269   :  { %v3123_v43 = vmax.f32 %v3059_v12, 0.0 }
 0x26a   :  { %3800 = vst.msk [vmem:[%s6691_s6 + $0x20] sm:$0xff] %vm1348_vm5, %v3736_v40 }
 0x26b   :  { %v3281_v4 = vpop.permute.xlu0 %3280 }
 0x26c   :  { %v3584_v5 = vadd.f32 %v3583_v51, %v3281_v4  ;;  %v2857_v25 = vpop.f32.mrf.mxu2 }
 0x26d   :  { %v3283_v56 = vpop.permute.xlu1 %3282  ;;  %v2992_v59 = vadd.f32 %v2857_v25, %v2354_v62  ;;  %v2172_v2 = vpop.f32.mrf.mxu0  ;;  %v4319_v25 = vld [vmem:[#allocation2 + $0xb0] sm:$0xff] }
 0x26e   :  { %v3738_v32 = vadd.f32 %v6076_v31, %v3584_v5  ;;  %v3586_v37 = vadd.f32 %v3585_v30, %v3283_v56  ;;  %v2366_v34 = vpop.f32.mrf.mxu1  ;;  %v2362_v14 = vadd.f32 %v6131_v29, %v2172_v2  ;;  %v4318_v29 = vld [vmem:[#allocation2 + $0xa8] sm:$0xff]  ;;  %v4286_v30 = vld [vmem:[#allocation2 + $0xb0] sm:$0xff] }
 0x26f   :  { %v3060_v28 = vadd.f32 %v6011_v27, %v2992_v59  ;;  %3302 = vrot.lane.b32.xlu2 %v2992_v59, %s4665_s2  ;;  %4014 = vmatmul.msk.bf16.gmra.mxu0 %vm2012_vm7, %v4283_v49 }
 0x270   :  { %3802 = vst.msk [vmem:[%s6691_s6 + $0x30] sm:$0xff] %vm1348_vm5, %v3738_v32  ;;  %v3739_v6 = vadd.f32 %v6076_v31, %v3586_v37  ;;  %4055 = vmatmul.msk.bf16.gmra.mxu1 %vm2012_vm7, %v4283_v49  ;;  %4217 = vmatmul.msk.bf16.gmra.mxu2 %vm2012_vm7, %v4316_v47 }
 0x271   :  { %v3124_v3 = vmax.f32 %v3060_v28, 0.0 }
 0x272   :  { %3803 = vst.msk [vmem:[%s6691_s6 + $0x38] sm:$0xff] %vm1348_vm5, %v3739_v6 }
 0x273   :  { %v3179_v13 = vpack.c.bf16 %v3124_v3, %v3123_v43 }
 0x274   :  { %v2860_v42 = vpop.f32.mrf.mxu2 }
 0x275   :  { %v2993_v44 = vadd.f32 %v2860_v42, %v2357_v53  ;;  %4240 = vmatmul.msk.bf16.gmra.mxu3 %vm1348_vm5, %v3179_v13  ;;  %v2174_v18 = vpop.f32.mrf.mxu0  ;;  %v4287_v13 = vld [vmem:[#allocation2 + $0xb8] sm:$0xff] }
 0x276   :  { %v2368_v57 = vpop.f32.mrf.mxu1  ;;  %v2364_v50 = vadd.f32 %v2363_v33, %v2174_v18 }
 0x277   :  { %3304 = vrot.lane.b32.xlu0 %v2993_v44, %s4665_s2  ;;  %v3061_v46 = vadd.f32 %v6011_v27, %v2993_v44  ;;  %v4320_v44 = vld [vmem:[#allocation2 + $0xb8] sm:$0xff] }
 0x279   :  { %v3125_v1 = vmax.f32 %v3061_v46, 0.0 }
 0x27c   :  { %v2862_v26 = vpop.f32.mrf.mxu2 }
 0x27d   :  { %v2994_v11 = vadd.f32 %v2862_v26, %v2359_v0  ;;  %v2177_v61 = vpop.f32.mrf.mxu0 }
 0x27e   :  { %v2371_v36 = vpop.f32.mrf.mxu1  ;;  %v2367_v19 = vadd.f32 %v2366_v34, %v2177_v61 }
 0x27f   :  { %v3062_v22 = vadd.f32 %v6011_v27, %v2994_v11  ;;  %3306 = vrot.lane.b32.xlu1 %v2994_v11, %s4665_s2  ;;  %4015 = vmatmul.msk.bf16.gmra.mxu0 %vm2012_vm7, %v4284_v38 }
 0x280   :  { %4056 = vmatmul.msk.bf16.gmra.mxu1 %vm2012_vm7, %v4284_v38  ;;  %4218 = vmatmul.msk.bf16.gmra.mxu2 %vm2012_vm7, %v4317_v41  ;;  %v3285_v38 = vpop.permute.xlu2 %3284 }
 0x281   :  { %v3126_v39 = vmax.f32 %v3062_v22, 0.0 }
 0x283   :  { %v3180_v21 = vpack.c.bf16 %v3126_v39, %v3125_v1 }
 0x284   :  { %v2865_v52 = vpop.f32.mrf.mxu2 }
 0x285   :  { %v2995_v7 = vadd.f32 %v2865_v52, %v2362_v14  ;;  %4241 = vmatmul.msk.bf16.gmra.mxu3 %vm1348_vm5, %v3180_v21  ;;  %v2179_v8 = vpop.f32.mrf.mxu0 }
 0x286   :  { %v2373_v16 = vpop.f32.mrf.mxu1  ;;  %v2369_v35 = vadd.f32 %v2368_v57, %v2179_v8 }
 0x287   :  { %3308 = vrot.lane.b32.xlu2 %v2995_v7, %s4665_s2  ;;  %v3063_v20 = vadd.f32 %v6011_v27, %v2995_v7 }
 0x289   :  { %v3127_v45 = vmax.f32 %v3063_v20, 0.0 }
 0x28c   :  { %v2867_v55 = vpop.f32.mrf.mxu2 }
 0x28d   :  { %v2996_v24 = vadd.f32 %v2867_v55, %v2364_v50  ;;  %v2182_v60 = vpop.f32.mrf.mxu0 }
 0x28e   :  { %v2376_v9 = vpop.f32.mrf.mxu1  ;;  %v2372_v32 = vadd.f32 %v2371_v36, %v2182_v60 }
 0x28f   :  { %v3064_v51 = vadd.f32 %v6011_v27, %v2996_v24  ;;  %3310 = vrot.lane.b32.xlu0 %v2996_v24, %s4665_s2  ;;  %4016 = vmatmul.msk.bf16.gmra.mxu0 %vm2012_vm7, %v4285_v10  ;;  %v4321_v24 = vld [vmem:[#allocation2 + $0xc0] sm:$0xff] }
 0x290   :  { %4057 = vmatmul.msk.bf16.gmra.mxu1 %vm2012_vm7, %v4285_v10  ;;  %4219 = vmatmul.msk.bf16.gmra.mxu2 %vm2012_vm7, %v4318_v29 }
 0x291   :  { %v3128_v48 = vmax.f32 %v3064_v51, 0.0 }
 0x293   :  { %v3181_v15 = vpack.c.bf16 %v3128_v48, %v3127_v45 }
 0x294   :  { %v2870_v23 = vpop.f32.mrf.mxu2 }
 0x295   :  { %v2997_v17 = vadd.f32 %v2870_v23, %v2367_v19  ;;  %4242 = vmatmul.msk.bf16.gmra.mxu3 %vm1348_vm5, %v3181_v15  ;;  %v2184_v54 = vpop.f32.mrf.mxu0 }
 0x296   :  { %v2378_v63 = vpop.f32.mrf.mxu1  ;;  %v2374_v28 = vadd.f32 %v2373_v16, %v2184_v54  ;;  %v4288_v16 = vld [vmem:[#allocation2 + $0xc0] sm:$0xff] }
 0x297   :  { %3312 = vrot.lane.b32.xlu1 %v2997_v17, %s4665_s2  ;;  %v3065_v33 = vadd.f32 %v6011_v27, %v2997_v17 }
 0x299   :  { %v3129_v56 = vmax.f32 %v3065_v33, 0.0 }
 0x29c   :  { %v2872_v58 = vpop.f32.mrf.mxu2 }
 0x29d   :  { %v2998_v40 = vadd.f32 %v2872_v58, %v2369_v35  ;;  %v2187_v4 = vpop.f32.mrf.mxu0 }
 0x29e   :  { %v6202_v62 = vpop.f32.mrf.mxu1  ;;  %v2377_v0 = vadd.f32 %v2376_v9, %v2187_v4 }
 0x29f   :  { %v3066_v5 = vadd.f32 %v6011_v27, %v2998_v40  ;;  %3314 = vrot.lane.b32.xlu2 %v2998_v40, %s4665_s2  ;;  %4017 = vmatmul.msk.bf16.gmra.mxu0 %vm2012_vm7, %v4286_v30 }
 0x2a0   :  { %4058 = vmatmul.msk.bf16.gmra.mxu1 %vm2012_vm7, %v4286_v30  ;;  %4220 = vmatmul.msk.bf16.gmra.mxu2 %vm2012_vm7, %v4319_v25  ;;  %v3287_v50 = vpop.permute.xlu0 %3286  ;;  %v3291_v25 = vpop.permute.xlu2 %3290 }
 0x2a1   :  { %v3130_v12 = vmax.f32 %v3066_v5, 0.0  ;;  %v4289_v5 = vld [vmem:[#allocation2 + $0xc8] sm:$0xff] }
 0x2a3   :  { %v3182_v59 = vpack.c.bf16 %v3130_v12, %v3129_v56 }
 0x2a4   :  { %v2875_v37 = vpop.f32.mrf.mxu2 }
 0x2a5   :  { %v2999_v2 = vadd.f32 %v2875_v37, %v2372_v32  ;;  %4243 = vmatmul.msk.bf16.gmra.mxu3 %vm1348_vm5, %v3182_v59  ;;  %v2189_v34 = vpop.f32.mrf.mxu0  ;;  %v4322_v32 = vld [vmem:[#allocation2 + $0xc8] sm:$0xff] }
 0x2a6   :  { %v2383_v49 = vpop.f32.mrf.mxu1  ;;  %v2379_v39 = vadd.f32 %v2378_v63, %v2189_v34 }
 0x2a7   :  { %3316 = vrot.lane.b32.xlu0 %v2999_v2, %s4665_s2  ;;  %v3067_v47 = vadd.f32 %v6011_v27, %v2999_v2 }
 0x2a8   :  { %v3289_v17 = vpop.permute.xlu1 %3288 }
 0x2a9   :  { %v3131_v18 = vmax.f32 %v3067_v47, 0.0 }
 0x2ac   :  { %v2877_v6 = vpop.f32.mrf.mxu2 }
 0x2ad   :  { %v3000_v43 = vadd.f32 %v2877_v6, %v2374_v28  ;;  %v2192_v3 = vpop.f32.mrf.mxu0 }
 0x2ae   :  { %v6212_v53 = vpop.f32.mrf.mxu1  ;;  %v2382_v29 = vadd.f32 %v6202_v62, %v2192_v3 }
 0x2af   :  { %v3068_v42 = vadd.f32 %v6011_v27, %v3000_v43  ;;  %3318 = vrot.lane.b32.xlu1 %v3000_v43, %s4665_s2  ;;  %4018 = vmatmul.msk.bf16.gmra.mxu0 %vm2012_vm7, %v4287_v13 }
 0x2b0   :  { %4059 = vmatmul.msk.bf16.gmra.mxu1 %vm2012_vm7, %v4287_v13  ;;  %4221 = vmatmul.msk.bf16.gmra.mxu2 %vm2012_vm7, %v4320_v44 }
 0x2b1   :  { %v3132_v57 = vmax.f32 %v3068_v42, 0.0 }
 0x2b3   :  { %v3183_v26 = vpack.c.bf16 %v3132_v57, %v3131_v18 }
 0x2b4   :  { %v2880_v46 = vpop.f32.mrf.mxu2 }
 0x2b5   :  { %v3001_v11 = vadd.f32 %v2880_v46, %v2377_v0  ;;  %4244 = vmatmul.msk.bf16.gmra.mxu3 %vm1348_vm5, %v3183_v26  ;;  %v2194_v61 = vpop.f32.mrf.mxu0 }
 0x2b6   :  { %v6220_v36 = vpop.f32.mrf.mxu1  ;;  %v2384_v58 = vadd.f32 %v2383_v49, %v2194_v61  ;;  %v4290_v61 = vld [vmem:[#allocation2 + $0xd0] sm:$0xff] }
 0x2b7   :  { %3320 = vrot.lane.b32.xlu2 %v3001_v11, %s4665_s2  ;;  %v3588_v22 = vpop.f32.mrf.mxu3  ;;  %v3069_v21 = vadd.f32 %v6011_v27, %v3001_v11 }
 0x2b8   :  { %v3589_v41 = vadd.f32 %v3588_v22, %v3285_v38 }
 0x2b9   :  { %v3133_v9 = vmax.f32 %v3069_v21, 0.0  ;;  %v3293_v13 = vpop.permute.xlu0 %3292 }
 0x2ba   :  { %v3740_v1 = vadd.f32 %v6076_v31, %v3589_v41 }
 0x2bc   :  { %3804 = vst.msk [vmem:[%s6691_s6 + $0x40] sm:$0xff] %vm1348_vm5, %v3740_v1  ;;  %v2882_v14 = vpop.f32.mrf.mxu2 }
 0x2bd   :  { %v3002_v52 = vadd.f32 %v2882_v14, %v2379_v39  ;;  %v2197_v7 = vpop.f32.mrf.mxu0 }
 0x2be   :  { %v6229_v8 = vpop.f32.mrf.mxu1  ;;  %v2387_v49 = vadd.f32 %v6212_v53, %v2197_v7 }
 0x2bf   :  { %v3070_v55 = vadd.f32 %v6011_v27, %v3002_v52  ;;  %3322 = vrot.lane.b32.xlu0 %v3002_v52, %s4665_s2  ;;  %v3590_v20 = vpop.f32.mrf.mxu3  ;;  %4019 = vmatmul.msk.bf16.gmra.mxu0 %vm2012_vm7, %v4288_v16 }
 0x2c0   :  { %v3591_v60 = vadd.f32 %v3590_v20, %v3287_v50  ;;  %4060 = vmatmul.msk.bf16.gmra.mxu1 %vm2012_vm7, %v4288_v16  ;;  %4222 = vmatmul.msk.bf16.gmra.mxu2 %vm2012_vm7, %v4321_v24  ;;  %v3297_v24 = vpop.permute.xlu2 %3296 }
 0x2c1   :  { %v3134_v10 = vmax.f32 %v3070_v55, 0.0  ;;  %v3295_v38 = vpop.permute.xlu1 %3294 }
 0x2c2   :  { %v3741_v51 = vadd.f32 %v6076_v31, %v3591_v60 }
 0x2c3   :  { %v3184_v45 = vpack.c.bf16 %v3134_v10, %v3133_v9 }
 0x2c4   :  { %3805 = vst.msk [vmem:[%s6691_s6 + $0x48] sm:$0xff] %vm1348_vm5, %v3741_v51  ;;  %v2885_v48 = vpop.f32.mrf.mxu2 }
 0x2c5   :  { %v3003_v19 = vadd.f32 %v2885_v48, %v2382_v29  ;;  %4245 = vmatmul.msk.bf16.gmra.mxu3 %vm1348_vm5, %v3184_v45  ;;  %v2199_v15 = vpop.f32.mrf.mxu0 }
 0x2c6   :  { %v6243_v23 = vpop.f32.mrf.mxu1  ;;  %v2389_v18 = vadd.f32 %v6220_v36, %v2199_v15  ;;  %v4323_v36 = vld [vmem:[#allocation2 + $0xd0] sm:$0xff]  ;;  %v4291_v15 = vld [vmem:[#allocation2 + $0xd8] sm:$0xff] }
 0x2c7   :  { %3324 = vrot.lane.b32.xlu1 %v3003_v19, %s4665_s2  ;;  %v3593_v54 = vpop.f32.mrf.mxu3  ;;  %v3071_v40 = vadd.f32 %v6011_v27, %v3003_v19 }
 0x2c8   :  { %v3594_v63 = vadd.f32 %v3593_v54, %v3289_v17 }
 0x2c9   :  { %v3135_v37 = vmax.f32 %v3071_v40, 0.0 }
 0x2ca   :  { %v3742_v35 = vadd.f32 %v6076_v31, %v3594_v63 }
 0x2cc   :  { %3806 = vst.msk [vmem:[%s6691_s6 + $0x50] sm:$0xff] %vm1348_vm5, %v3742_v35  ;;  %v2887_v33 = vpop.f32.mrf.mxu2 }
 0x2cd   :  { %v3004_v4 = vadd.f32 %v2887_v33, %v2384_v58  ;;  %v2202_v62 = vpop.f32.mrf.mxu0 }
 0x2ce   :  { %v6252_v30 = vpop.f32.mrf.mxu1  ;;  %v2392_v52 = vadd.f32 %v6229_v8, %v2202_v62 }
 0x2cf   :  { %v3072_v56 = vadd.f32 %v6011_v27, %v3004_v4  ;;  %3326 = vrot.lane.b32.xlu2 %v3004_v4, %s4665_s2  ;;  %v3595_v12 = vpop.f32.mrf.mxu3  ;;  %4020 = vmatmul.msk.bf16.gmra.mxu0 %vm2012_vm7, %v4289_v5 }
 0x2d0   :  { %v3596_v59 = vadd.f32 %v3595_v12, %v3291_v25  ;;  %4061 = vmatmul.msk.bf16.gmra.mxu1 %vm2012_vm7, %v4289_v5  ;;  %4223 = vmatmul.msk.bf16.gmra.mxu2 %vm2012_vm7, %v4322_v32 }
 0x2d1   :  { %v3136_v2 = vmax.f32 %v3072_v56, 0.0  ;;  %v3299_v17 = vpop.permute.xlu0 %3298 }
 0x2d2   :  { %v3743_v34 = vadd.f32 %v6076_v31, %v3596_v59 }
 0x2d3   :  { %v3185_v28 = vpack.c.bf16 %v3136_v2, %v3135_v37 }
 0x2d4   :  { %3807 = vst.msk [vmem:[%s6691_s6 + $0x58] sm:$0xff] %vm1348_vm5, %v3743_v34  ;;  %v2890_v6 = vpop.f32.mrf.mxu2 }
 0x2d5   :  { %v3005_v47 = vadd.f32 %v2890_v6, %v2387_v49  ;;  %4246 = vmatmul.msk.bf16.gmra.mxu3 %vm1348_vm5, %v3185_v28  ;;  %v2204_v43 = vpop.f32.mrf.mxu0 }
 0x2d6   :  { %v6266_v3 = vpop.f32.mrf.mxu1  ;;  %v2394_v10 = vadd.f32 %v6243_v23, %v2204_v43  ;;  %v4324_v23 = vld [vmem:[#allocation2 + $0xd8] sm:$0xff]  ;;  %v4292_v43 = vld [vmem:[#allocation2 + $0xe0] sm:$0xff] }
 0x2d7   :  { %3328 = vrot.lane.b32.xlu0 %v3005_v47, %s4665_s2  ;;  %v3073_v0 = vadd.f32 %v6011_v27, %v3005_v47 }
 0x2d8   :  { %v3598_v42 = vpop.f32.mrf.mxu3 }
 0x2d9   :  { %v3599_v44 = vadd.f32 %v3598_v42, %v3293_v13  ;;  %v3137_v39 = vmax.f32 %v3073_v0, 0.0  ;;  %v3301_v32 = vpop.permute.xlu1 %3300  ;;  %v3303_v42 = vpop.permute.xlu2 %3302 }
 0x2db   :  { %v3744_v53 = vadd.f32 %v6076_v31, %v3599_v44 }
 0x2dc   :  { %v2892_v57 = vpop.f32.mrf.mxu2 }
 0x2dd   :  { %3808 = vst.msk [vmem:[%s6691_s6 + $0x60] sm:$0xff] %vm1348_vm5, %v3744_v53  ;;  %v3006_v26 = vadd.f32 %v2892_v57, %v2389_v18  ;;  %v2207_v46 = vpop.f32.mrf.mxu0 }
 0x2de   :  { %v6276_v11 = vpop.f32.mrf.mxu1  ;;  %v2397_v4 = vadd.f32 %v6252_v30, %v2207_v46 }
 0x2df   :  { %v3074_v22 = vadd.f32 %v6011_v27, %v3006_v26  ;;  %3330 = vrot.lane.b32.xlu1 %v3006_v26, %s4665_s2  ;;  %4021 = vmatmul.msk.bf16.gmra.mxu0 %vm2012_vm7, %v4290_v61 }
 0x2e0   :  { %v3600_v41 = vpop.f32.mrf.mxu3  ;;  %4062 = vmatmul.msk.bf16.gmra.mxu1 %vm2012_vm7, %v4290_v61  ;;  %4224 = vmatmul.msk.bf16.gmra.mxu2 %vm2012_vm7, %v4323_v36 }
 0x2e1   :  { %v3601_v1 = vadd.f32 %v3600_v41, %v3295_v38  ;;  %v3138_v14 = vmax.f32 %v3074_v22, 0.0 }
 0x2e3   :  { %v3745_v21 = vadd.f32 %v6076_v31, %v3601_v1  ;;  %v3186_v7 = vpack.c.bf16 %v3138_v14, %v3137_v39 }
 0x2e4   :  { %v2895_v16 = vpop.f32.mrf.mxu2 }
 0x2e5   :  { %3809 = vst.msk [vmem:[%s6691_s6 + $0x68] sm:$0xff] %vm1348_vm5, %v3745_v21  ;;  %v3007_v50 = vadd.f32 %v2895_v16, %v2392_v52  ;;  %4247 = vmatmul.msk.bf16.gmra.mxu3 %vm1348_vm5, %v3186_v7  ;;  %v2209_v55 = vpop.f32.mrf.mxu0 }
 0x2e6   :  { %v6290_v20 = vpop.f32.mrf.mxu1  ;;  %v2399_v30 = vadd.f32 %v6266_v3, %v2209_v55  ;;  %v4325_v3 = vld [vmem:[#allocation2 + $0xe0] sm:$0xff]  ;;  %v4293_v55 = vld [vmem:[#allocation2 + $0xe8] sm:$0xff] }
 0x2e7   :  { %3332 = vrot.lane.b32.xlu2 %v3007_v50, %s4665_s2  ;;  %v3075_v29 = vadd.f32 %v6011_v27, %v3007_v50 }
 0x2e8   :  { %v3603_v60 = vpop.f32.mrf.mxu3 }
 0x2e9   :  { %v3604_v9 = vadd.f32 %v3603_v60, %v3297_v24  ;;  %v3139_v58 = vmax.f32 %v3075_v29, 0.0  ;;  %v3305_v36 = vpop.permute.xlu0 %3304 }
 0x2eb   :  { %v3746_v8 = vadd.f32 %v6076_v31, %v3604_v9 }
 0x2ec   :  { %v2897_v51 = vpop.f32.mrf.mxu2 }
 0x2ed   :  { %3810 = vst.msk [vmem:[%s6691_s6 + $0x70] sm:$0xff] %vm1348_vm5, %v3746_v8  ;;  %v3008_v45 = vadd.f32 %v2897_v51, %v2394_v10  ;;  %v2212_v48 = vpop.f32.mrf.mxu0 }
 0x2ee   :  { %v6300_v19 = vpop.f32.mrf.mxu1  ;;  %v2402_v0 = vadd.f32 %v6276_v11, %v2212_v48 }
 0x2ef   :  { %v3076_v54 = vadd.f32 %v6011_v27, %v3008_v45  ;;  %3334 = vrot.lane.b32.xlu0 %v3008_v45, %s4665_s2  ;;  %4022 = vmatmul.msk.bf16.gmra.mxu0 %vm2012_vm7, %v4291_v15 }
 0x2f0   :  { %v3605_v63 = vpop.f32.mrf.mxu3  ;;  %4063 = vmatmul.msk.bf16.gmra.mxu1 %vm2012_vm7, %v4291_v15  ;;  %4225 = vmatmul.msk.bf16.gmra.mxu2 %vm2012_vm7, %v4324_v23 }
 0x2f1   :  { %v3606_v35 = vadd.f32 %v3605_v63, %v3299_v17  ;;  %v3140_v33 = vmax.f32 %v3076_v54, 0.0  ;;  %v3307_v60 = vpop.permute.xlu1 %3306  ;;  %v3309_v63 = vpop.permute.xlu2 %3308 }
 0x2f3   :  { %v3747_v40 = vadd.f32 %v6076_v31, %v3606_v35  ;;  %v3187_v62 = vpack.c.bf16 %v3140_v33, %v3139_v58 }
 0x2f4   :  { %v2900_v5 = vpop.f32.mrf.mxu2 }
 0x2f5   :  { %3811 = vst.msk [vmem:[%s6691_s6 + $0x78] sm:$0xff] %vm1348_vm5, %v3747_v40  ;;  %v3009_v25 = vadd.f32 %v2900_v5, %v2397_v4  ;;  %4248 = vmatmul.msk.bf16.gmra.mxu3 %vm1348_vm5, %v3187_v62  ;;  %v2214_v56 = vpop.f32.mrf.mxu0  ;;  %v6370_v40 = vld [vmem:[%s6688_s3] ss:$0 sm:$0xff] }
 0x2f6   :  { %v6314_v12 = vpop.f32.mrf.mxu1  ;;  %v2404_v39 = vadd.f32 %v6290_v20, %v2214_v56  ;;  %v4326_v20 = vld [vmem:[#allocation2 + $0xe8] sm:$0xff]  ;;  %v4294_v56 = vld [vmem:[#allocation2 + $0xf0] sm:$0xff] }
 0x2f7   :  { %3336 = vrot.lane.b32.xlu1 %v3009_v25, %s4665_s2  ;;  %v3077_v49 = vadd.f32 %v6011_v27, %v3009_v25 }
 0x2f8   :  { %v3608_v59 = vpop.f32.mrf.mxu3 }
 0x2f9   :  { %v3609_v37 = vadd.f32 %v3608_v59, %v3301_v32  ;;  %v3141_v53 = vmax.f32 %v3077_v49, 0.0  ;;  %v4327_v32 = vld [vmem:[#allocation2 + $0xf0] sm:$0xff] }
 0x2fb   :  { %v3748_v2 = vadd.f32 %v6076_v31, %v3609_v37 }
 0x2fc   :  { %v2902_v34 = vpop.f32.mrf.mxu2 }
 0x2fd   :  { %3812 = vst.msk [vmem:[%s6691_s6 + $0x80] sm:$0xff] %vm1348_vm5, %v3748_v2  ;;  %v3010_v28 = vadd.f32 %v2902_v34, %v2399_v30  ;;  %v2217_v6 = vpop.f32.mrf.mxu0 }
 0x2fe   :  { %v6324_v47 = vpop.f32.mrf.mxu1  ;;  %v2407_v29 = vadd.f32 %v6300_v19, %v2217_v6 }
 0x2ff   :  { %v3078_v13 = vadd.f32 %v6011_v27, %v3010_v28  ;;  %3338 = vrot.lane.b32.xlu2 %v3010_v28, %s4665_s2  ;;  %4023 = vmatmul.msk.bf16.gmra.mxu0 %vm2012_vm7, %v4292_v43 }
 0x300   :  { %v3610_v44 = vpop.f32.mrf.mxu3  ;;  %4064 = vmatmul.msk.bf16.gmra.mxu1 %vm2012_vm7, %v4292_v43  ;;  %4226 = vmatmul.msk.bf16.gmra.mxu2 %vm2012_vm7, %v4325_v3 }
 0x301   :  { %v3142_v18 = vmax.f32 %v3078_v13, 0.0  ;;  %v3611_v57 = vadd.f32 %v3610_v44, %v3303_v42  ;;  %v3311_v59 = vpop.permute.xlu0 %3310 }
 0x303   :  { %v3188_v26 = vpack.c.bf16 %v3142_v18, %v3141_v53  ;;  %v3749_v46 = vadd.f32 %v6076_v31, %v3611_v57 }
 0x304   :  { %v2905_v61 = vpop.f32.mrf.mxu2 }
 0x305   :  { %3813 = vst.msk [vmem:[%s6691_s6 + $0x88] sm:$0xff] %vm1348_vm5, %v3749_v46  ;;  %v3011_v38 = vadd.f32 %v2905_v61, %v2402_v0  ;;  %4249 = vmatmul.msk.bf16.gmra.mxu3 %vm1348_vm5, %v3188_v26  ;;  %v2219_v22 = vpop.f32.mrf.mxu0 }
 0x306   :  { %v6338_v41 = vpop.f32.mrf.mxu1  ;;  %v2409_v35 = vadd.f32 %v6314_v12, %v2219_v22 }
 0x307   :  { %3340 = vrot.lane.b32.xlu0 %v3011_v38, %s4665_s2  ;;  %v3079_v52 = vadd.f32 %v6011_v27, %v3011_v38  ;;  %v4295_v38 = vld [vmem:[#allocation2 + $0xf8] sm:$0xff] }
 0x308   :  { %v3613_v1 = vpop.f32.mrf.mxu3 }
 0x309   :  { %v3614_v11 = vadd.f32 %v3613_v1, %v3305_v36  ;;  %v3143_v8 = vmax.f32 %v3079_v52, 0.0  ;;  %v3313_v44 = vpop.permute.xlu1 %3312  ;;  %v3315_v1 = vpop.permute.xlu2 %3314 }
 0x30b   :  { %v3750_v14 = vadd.f32 %v6076_v31, %v3614_v11 }
 0x30c   :  { %v2907_v21 = vpop.f32.mrf.mxu2 }
 0x30d   :  { %3814 = vst.msk [vmem:[%s6691_s6 + $0x90] sm:$0xff] %vm1348_vm5, %v3750_v14  ;;  %v3012_v7 = vadd.f32 %v2907_v21, %v2404_v39  ;;  %v2222_v16 = vpop.f32.mrf.mxu0 }
 0x30e   :  { %v6348_v50 = vpop.f32.mrf.mxu1  ;;  %v2412_v49 = vadd.f32 %v6324_v47, %v2222_v16 }
 0x30f   :  { %v3080_v24 = vadd.f32 %v6011_v27, %v3012_v7  ;;  %3342 = vrot.lane.b32.xlu1 %v3012_v7, %s4665_s2  ;;  %4024 = vmatmul.msk.bf16.gmra.mxu0 %vm2012_vm7, %v4293_v55 }
 0x310   :  { %v3615_v9 = vpop.f32.mrf.mxu3  ;;  %4065 = vmatmul.msk.bf16.gmra.mxu1 %vm2012_vm7, %v4293_v55  ;;  %4227 = vmatmul.msk.bf16.gmra.mxu2 %vm2012_vm7, %v4326_v20 }
 0x311   :  { %v3144_v10 = vmax.f32 %v3080_v24, 0.0  ;;  %v3616_v51 = vadd.f32 %v3615_v9, %v3307_v60 }
 0x313   :  { %v3189_v45 = vpack.c.bf16 %v3144_v10, %v3143_v8  ;;  %v3751_v48 = vadd.f32 %v6076_v31, %v3616_v51 }
 0x314   :  { %v2910_v27 = vpop.f32.mrf.mxu2 }
 0x315   :  { %3815 = vst.msk [vmem:[%s6691_s6 + $0x98] sm:$0xff] %vm1348_vm5, %v3751_v48  ;;  %v3013_v15 = vadd.f32 %v2910_v27, %v2407_v29  ;;  %4250 = vmatmul.msk.bf16.gmra.mxu3 %vm1348_vm5, %v3189_v45  ;;  %v2224_v17 = vpop.f32.mrf.mxu0  ;;  %v4297_v29 = vld [vmem:[#allocation2 + $0x100] sm:$0xff] }
 0x316   :  { %v6362_v54 = vpop.f32.mrf.mxu1  ;;  %v2414_v18 = vadd.f32 %v6338_v41, %v2224_v17  ;;  %v4328_v41 = vld [vmem:[#allocation2 + $0xf8] sm:$0xff]  ;;  %v4329_v17 = vld [vmem:[#allocation2 + $0x100] sm:$0xff] }
 0x317   :  { %3344 = vrot.lane.b32.xlu2 %v3013_v15, %s4665_s2  ;;  %v3081_v4 = vadd.f32 %v6370_v40, %v3013_v15 }
 0x318   :  { %v3618_v23 = vpop.f32.mrf.mxu3 }
 0x319   :  { %v3619_v19 = vadd.f32 %v3618_v23, %v3309_v63  ;;  %v3145_v30 = vmax.f32 %v3081_v4, 0.0  ;;  %v3317_v60 = vpop.permute.xlu0 %3316 }
 0x31b   :  { %v3752_v58 = vadd.f32 %v6076_v31, %v3619_v19 }
 0x31c   :  { %v2912_v33 = vpop.f32.mrf.mxu2 }
 0x31d   :  { %3816 = vst.msk [vmem:[%s6691_s6 + $0xa0] sm:$0xff] %vm1348_vm5, %v3752_v58  ;;  %v3014_v62 = vadd.f32 %v2912_v33, %v2409_v35  ;;  %v2227_v5 = vpop.f32.mrf.mxu0 }
 0x31e   :  { %v6377_v25 = vpop.f32.mrf.mxu1  ;;  %v2417_v52 = vadd.f32 %v6348_v50, %v2227_v5 }
 0x31f   :  { %v3082_v12 = vadd.f32 %v6370_v40, %v3014_v62  ;;  %3346 = vrot.lane.b32.xlu0 %v3014_v62, %s4665_s2  ;;  %4025 = vmatmul.msk.bf16.gmra.mxu0 %vm2012_vm7, %v4294_v56  ;;  %v6433_v62 = vld [vmem:[%s6690_s5] ss:$0 sm:$0xff] }
 0x320   :  { %v3620_v37 = vpop.f32.mrf.mxu3  ;;  %4066 = vmatmul.msk.bf16.gmra.mxu1 %vm2012_vm7, %v4294_v56  ;;  %4228 = vmatmul.msk.bf16.gmra.mxu2 %vm2012_vm7, %v4327_v32 }
 0x321   :  { %v3146_v2 = vmax.f32 %v3082_v12, 0.0  ;;  %v3621_v34 = vadd.f32 %v3620_v37, %v3311_v59 }
 0x323   :  { %v3190_v28 = vpack.c.bf16 %v3146_v2, %v3145_v30  ;;  %v3753_v6 = vadd.f32 %v6076_v31, %v3621_v34 }
 0x324   :  { %v2915_v43 = vpop.f32.mrf.mxu2 }
 0x325   :  { %3817 = vst.msk [vmem:[%s6691_s6 + $0xa8] sm:$0xff] %vm1348_vm5, %v3753_v6  ;;  %v3015_v13 = vadd.f32 %v2915_v43, %v2412_v49  ;;  %4251 = vmatmul.msk.bf16.gmra.mxu3 %vm1348_vm5, %v3190_v28  ;;  %v2229_v3 = vpop.f32.mrf.mxu0 }
 0x326   :  { %v6391_v42 = vpop.f32.mrf.mxu1  ;;  %v2419_v10 = vadd.f32 %v6362_v54, %v2229_v3  ;;  %v3319_v54 = vpop.permute.xlu1 %3318 }
 0x327   :  { %3348 = vrot.lane.b32.xlu1 %v3015_v13, %s4665_s2  ;;  %v3083_v26 = vadd.f32 %v6370_v40, %v3015_v13  ;;  %v4330_v13 = vld [vmem:[#allocation2 + $0x108] sm:$0xff] }
 0x328   :  { %v3623_v53 = vpop.f32.mrf.mxu3 }
 0x329   :  { %v3624_v47 = vadd.f32 %v3623_v53, %v3313_v44  ;;  %v3147_v39 = vmax.f32 %v3083_v26, 0.0 }
 0x32b   :  { %v3754_v57 = vadd.f32 %v6076_v31, %v3624_v47 }
 0x32c   :  { %v2917_v0 = vpop.f32.mrf.mxu2 }
 0x32d   :  { %3818 = vst.msk [vmem:[%s6691_s6 + $0xb0] sm:$0xff] %vm1348_vm5, %v3754_v57  ;;  %v3016_v46 = vadd.f32 %v2917_v0, %v2414_v18  ;;  %v2232_v61 = vpop.f32.mrf.mxu0 }
 0x32e   :  { %v6402_v36 = vpop.f32.mrf.mxu1  ;;  %v2422_v58 = vadd.f32 %v6377_v25, %v2232_v61  ;;  %v3321_v25 = vpop.permute.xlu2 %3320 }
 0x32f   :  { %v3084_v22 = vadd.f32 %v6370_v40, %v3016_v46  ;;  %3350 = vrot.lane.b32.xlu2 %v3016_v46, %s4665_s2  ;;  %4026 = vmatmul.msk.bf16.gmra.mxu0 %vm2012_vm7, %v4295_v38 }
 0x330   :  { %v3625_v11 = vpop.f32.mrf.mxu3  ;;  %4067 = vmatmul.msk.bf16.gmra.mxu1 %vm2012_vm7, %v4295_v38  ;;  %4229 = vmatmul.msk.bf16.gmra.mxu2 %vm2012_vm7, %v4328_v41 }
 0x331   :  { %v3148_v14 = vmax.f32 %v3084_v22, 0.0  ;;  %v3626_v21 = vadd.f32 %v3625_v11, %v3315_v1  ;;  %v3323_v44 = vpop.permute.xlu0 %3322 }
 0x333   :  { %v3191_v7 = vpack.c.bf16 %v3148_v14, %v3147_v39  ;;  %v3755_v16 = vadd.f32 %v6076_v31, %v3626_v21 }
 0x334   :  { %v2920_v55 = vpop.f32.mrf.mxu2 }
 0x335   :  { %3819 = vst.msk [vmem:[%s6691_s6 + $0xb8] sm:$0xff] %vm1348_vm5, %v3755_v16  ;;  %v3017_v24 = vadd.f32 %v2920_v55, %v2417_v52  ;;  %4252 = vmatmul.msk.bf16.gmra.mxu3 %vm1348_vm5, %v3191_v7  ;;  %v2234_v20 = vpop.f32.mrf.mxu0 }
 0x336   :  { %v6416_v8 = vpop.f32.mrf.mxu1  ;;  %v2424_v30 = vadd.f32 %v6391_v42, %v2234_v20  ;;  %v3327_v55 = vpop.permute.xlu2 %3326 }
 0x337   :  { %3352 = vrot.lane.b32.xlu0 %v3017_v24, %s4665_s2  ;;  %v3085_v48 = vadd.f32 %v6370_v40, %v3017_v24 }
 0x338   :  { %v3628_v9 = vpop.f32.mrf.mxu3 }
 0x339   :  { %v3629_v50 = vadd.f32 %v3628_v9, %v3317_v60  ;;  %v3149_v23 = vmax.f32 %v3085_v48, 0.0  ;;  %v3325_v41 = vpop.permute.xlu1 %3324 }
 0x33b   :  { %v3756_v51 = vadd.f32 %v6076_v31, %v3629_v50 }
 0x33c   :  { %v2922_v45 = vpop.f32.mrf.mxu2 }
 0x33d   :  { %3820 = vst.msk [vmem:[%s6691_s6 + $0xc0] sm:$0xff] %vm1348_vm5, %v3756_v51  ;;  %v3018_v27 = vadd.f32 %v2922_v45, %v2419_v10  ;;  %v2237_v15 = vpop.f32.mrf.mxu0 }
 0x33e   :  { %v2431_v4 = vpop.f32.mrf.mxu1  ;;  %v2427_v57 = vadd.f32 %v6402_v36, %v2237_v15 }
 0x33f   :  { %v3086_v63 = vadd.f32 %v6370_v40, %v3018_v27  ;;  %3354 = vrot.lane.b32.xlu1 %v3018_v27, %s4665_s2  ;;  %4027 = vmatmul.msk.bf16.gmra.mxu0 %vm2012_vm7, %v4297_v29 }
 0x340   :  { %v3630_v31 = vpop.f32.mrf.mxu3  ;;  %4230 = vmatmul.msk.bf16.gmra.mxu2 %vm2012_vm7, %v4329_v17 }
 0x341   :  { %v3150_v19 = vmax.f32 %v3086_v63, 0.0  ;;  %v3631_v35 = vadd.f32 %v3630_v31, %v3319_v54 }
 0x343   :  { %v3192_v33 = vpack.c.bf16 %v3150_v19, %v3149_v23  ;;  %v3757_v5 = vadd.f32 %v6433_v62, %v3631_v35 }
 0x344   :  { %v2925_v56 = vpop.f32.mrf.mxu2 }
 0x345   :  { %3821 = vst.msk [vmem:[%s6691_s6 + $0xc8] sm:$0xff] %vm1348_vm5, %v3757_v5  ;;  %v3019_v12 = vadd.f32 %v2925_v56, %v2422_v58  ;;  %4253 = vmatmul.msk.bf16.gmra.mxu3 %vm1348_vm5, %v3192_v33  ;;  %v2239_v32 = vpop.f32.mrf.mxu0 }
 0x346   :  { %v2433_v28 = vpop.f32.mrf.mxu1  ;;  %v2429_v36 = vadd.f32 %v6416_v8, %v2239_v32 }
 0x347   :  { %3356 = vrot.lane.b32.xlu2 %v3019_v12, %s4665_s2  ;;  %v3087_v49 = vadd.f32 %v6370_v40, %v3019_v12 }
 0x348   :  { %v3633_v59 = vpop.f32.mrf.mxu3 }
 0x349   :  { %v3634_v37 = vadd.f32 %v3633_v59, %v3321_v25  ;;  %v3151_v53 = vmax.f32 %v3087_v49, 0.0  ;;  %v3329_v27 = vpop.permute.xlu0 %3328 }
 0x34b   :  { %v3758_v2 = vadd.f32 %v6433_v62, %v3634_v37 }
 0x34c   :  { %v2927_v34 = vpop.f32.mrf.mxu2 }
 0x34d   :  { %3822 = vst.msk [vmem:[%s6691_s6 + $0xd0] sm:$0xff] %vm1348_vm5, %v3758_v2  ;;  %v3020_v6 = vadd.f32 %v2927_v34, %v2424_v30  ;;  %v2242_v43 = vpop.f32.mrf.mxu0 }
 0x34e   :  { %v2436_v22 = vpop.f32.mrf.mxu1  ;;  %v2432_v50 = vadd.f32 %v2431_v4, %v2242_v43 }
 0x34f   :  { %v3088_v3 = vadd.f32 %v6370_v40, %v3020_v6  ;;  %3358 = vrot.lane.b32.xlu0 %v3020_v6, %s4665_s2 }
 0x350   :  { %v3635_v42 = vpop.f32.mrf.mxu3  ;;  %4231 = vmatmul.msk.bf16.gmra.mxu2 %vm2012_vm7, %v4330_v13 }
 0x351   :  { %v3152_v47 = vmax.f32 %v3088_v3, 0.0  ;;  %v3636_v18 = vadd.f32 %v3635_v42, %v3323_v44  ;;  %v3331_v4 = vpop.permute.xlu1 %3330 }
 0x353   :  { %v3193_v0 = vpack.c.bf16 %v3152_v47, %v3151_v53  ;;  %v3759_v26 = vadd.f32 %v6433_v62, %v3636_v18 }
 0x354   :  { %v2930_v46 = vpop.f32.mrf.mxu2 }
 0x355   :  { %3823 = vst.msk [vmem:[%s6691_s6 + $0xd8] sm:$0xff] %vm1348_vm5, %v3759_v26  ;;  %v3021_v61 = vadd.f32 %v2930_v46, %v2427_v57  ;;  %4254 = vmatmul.msk.bf16.gmra.mxu3 %vm1348_vm5, %v3193_v0  ;;  %v2244_v38 = vpop.f32.mrf.mxu0 }
 0x356   :  { %v2438_v60 = vpop.f32.mrf.mxu1  ;;  %v2434_v63 = vadd.f32 %v2433_v28, %v2244_v38  ;;  %v3333_v28 = vpop.permute.xlu2 %3332 }
 0x357   :  { %3360 = vrot.lane.b32.xlu1 %v3021_v61, %s4665_s2  ;;  %v3089_v21 = vadd.f32 %v6370_v40, %v3021_v61 }
 0x358   :  { %v3638_v1 = vpop.f32.mrf.mxu3 }
 0x359   :  { %v3639_v11 = vadd.f32 %v3638_v1, %v3325_v41  ;;  %v3153_v20 = vmax.f32 %v3089_v21, 0.0 }
 0x35b   :  { %v3760_v39 = vadd.f32 %v6433_v62, %v3639_v11 }
 0x35c   :  { %v2932_v14 = vpop.f32.mrf.mxu2 }
 0x35d   :  { %3824 = vst.msk [vmem:[%s6691_s6 + $0xe0] sm:$0xff] %vm1348_vm5, %v3760_v39  ;;  %v3022_v52 = vadd.f32 %v2932_v14, %v2429_v36  ;;  %v2247_v7 = vpop.f32.mrf.mxu0 }
 0x35e   :  { %v2441_v54 = vpop.f32.mrf.mxu1  ;;  %v2437_v25 = vadd.f32 %v2436_v22, %v2247_v7 }
 0x35f   :  { %v3090_v16 = vadd.f32 %v6370_v40, %v3022_v52  ;;  %3362 = vrot.lane.b32.xlu2 %v3022_v52, %s4665_s2 }
 0x360   :  { %v3640_v24 = vpop.f32.mrf.mxu3 }
 0x361   :  { %v3154_v9 = vmax.f32 %v3090_v16, 0.0  ;;  %v3641_v8 = vadd.f32 %v3640_v24, %v3327_v55  ;;  %v3335_v0 = vpop.permute.xlu0 %3334 }
 0x363   :  { %v3194_v10 = vpack.c.bf16 %v3154_v9, %v3153_v20  ;;  %v3761_v51 = vadd.f32 %v6433_v62, %v3641_v8  ;;  %v3339_v8 = vpop.permute.xlu2 %3338 }
 0x364   :  { %v2935_v29 = vpop.f32.mrf.mxu2 }
 0x365   :  { %3825 = vst.msk [vmem:[%s6691_s6 + $0xe8] sm:$0xff] %vm1348_vm5, %v3761_v51  ;;  %v3023_v45 = vadd.f32 %v2935_v29, %v2432_v50  ;;  %4255 = vmatmul.msk.bf16.gmra.mxu3 %vm1348_vm5, %v3194_v10  ;;  %v2249_v48 = vpop.f32.mrf.mxu0 }
 0x366   :  { %v2443_v2 = vpop.f32.mrf.mxu1  ;;  %v2439_v13 = vadd.f32 %v2438_v60, %v2249_v48 }
 0x367   :  { %3364 = vrot.lane.b32.xlu0 %v3023_v45, %s4665_s2  ;;  %v3091_v19 = vadd.f32 %v6370_v40, %v3023_v45 }
 0x368   :  { %v3643_v15 = vpop.f32.mrf.mxu3 }
 0x369   :  { %v3644_v17 = vadd.f32 %v3643_v15, %v3329_v27  ;;  %v3155_v56 = vmax.f32 %v3091_v19, 0.0  ;;  %v3337_v39 = vpop.permute.xlu1 %3336 }
 0x36b   :  { %v3762_v31 = vadd.f32 %v6433_v62, %v3644_v17 }
 0x36c   :  { %v2937_v23 = vpop.f32.mrf.mxu2 }
 0x36d   :  { %3826 = vst.msk [vmem:[%s6691_s6 + $0xf0] sm:$0xff] %vm1348_vm5, %v3762_v31  ;;  %v3024_v35 = vadd.f32 %v2937_v23, %v2434_v63  ;;  %v2252_v58 = vpop.f32.mrf.mxu0 }
 0x36e   :  { %v2446_v18 = vpop.f32.mrf.mxu1  ;;  %v2442_v22 = vadd.f32 %v2441_v54, %v2252_v58 }
 0x36f   :  { %v3092_v33 = vadd.f32 %v6370_v40, %v3024_v35  ;;  %3366 = vrot.lane.b32.xlu1 %v3024_v35, %s4665_s2 }
 0x370   :  { %v3645_v5 = vpop.f32.mrf.mxu3 }
 0x371   :  { %v3156_v12 = vmax.f32 %v3092_v33, 0.0  ;;  %v3646_v32 = vadd.f32 %v3645_v5, %v3331_v4 }
 0x373   :  { %v3195_v59 = vpack.c.bf16 %v3156_v12, %v3155_v56  ;;  %v3763_v37 = vadd.f32 %v6433_v62, %v3646_v32 }
 0x374   :  { %v2940_v30 = vpop.f32.mrf.mxu2 }
 0x375   :  { %3827 = vst.msk [vmem:[%s6691_s6 + $0xf8] sm:$0xff] %vm1348_vm5, %v3763_v37  ;;  %v3025_v34 = vadd.f32 %v2940_v30, %v2437_v25  ;;  %4256 = vmatmul.msk.bf16.gmra.mxu3 %vm1348_vm5, %v3195_v59  ;;  %v2254_v49 = vpop.f32.mrf.mxu0 }
 0x376   :  { %v2448_v52 = vpop.f32.mrf.mxu1  ;;  %v2444_v16 = vadd.f32 %v2443_v2, %v2254_v49 }
 0x377   :  { %3368 = vrot.lane.b32.xlu2 %v3025_v34, %s4665_s2  ;;  %v3093_v42 = vadd.f32 %v6370_v40, %v3025_v34 }
 0x378   :  { %v3648_v6 = vpop.f32.mrf.mxu3 }
 0x379   :  { %v3649_v43 = vadd.f32 %v3648_v6, %v3333_v28  ;;  %v3157_v46 = vmax.f32 %v3093_v42, 0.0  ;;  %v3341_v31 = vpop.permute.xlu0 %3340 }
 0x37b   :  { %v3764_v3 = vadd.f32 %v6433_v62, %v3649_v43 }
 0x37c   :  { %v2942_v44 = vpop.f32.mrf.mxu2 }
 0x37d   :  { %3828 = vst.msk [vmem:[%s6691_s6 + $0x100] sm:$0xff] %vm1348_vm5, %v3764_v3  ;;  %v3026_v53 = vadd.f32 %v2942_v44, %v2439_v13  ;;  %v2257_v47 = vpop.f32.mrf.mxu0  ;;  %v3345_v44 = vpop.permute.xlu2 %3344 }
 0x37e   :  { %v2447_v48 = vadd.f32 %v2446_v18, %v2257_v47  ;;  %v2451_v27 = vpop.f32.mrf.mxu1 }
 0x37f   :  { %v3094_v57 = vadd.f32 %v6370_v40, %v3026_v53  ;;  %3370 = vrot.lane.b32.xlu0 %v3026_v53, %s4665_s2 }
 0x380   :  { %v3650_v26 = vpop.f32.mrf.mxu3 }
 0x381   :  { %v3158_v61 = vmax.f32 %v3094_v57, 0.0  ;;  %v3651_v38 = vadd.f32 %v3650_v26, %v3335_v0  ;;  %v3343_v25 = vpop.permute.xlu1 %3342 }
 0x383   :  { %v3196_v41 = vpack.c.bf16 %v3158_v61, %v3157_v46  ;;  %v3765_v1 = vadd.f32 %v6433_v62, %v3651_v38 }
 0x384   :  { %v2945_v11 = vpop.f32.mrf.mxu2 }
 0x385   :  { %3829 = vst.msk [vmem:[%s6691_s6 + $0x108] sm:$0xff] %vm1348_vm5, %v3765_v1  ;;  %v3027_v36 = vadd.f32 %v2945_v11, %v2442_v22  ;;  %4257 = vmatmul.msk.bf16.gmra.mxu3 %vm1348_vm5, %v3196_v41  ;;  %v2259_v14 = vpop.f32.mrf.mxu0 }
 0x386   :  { %v2449_v35 = vadd.f32 %v2448_v52, %v2259_v14  ;;  %v2453_v5 = vpop.f32.mrf.mxu1 }
 0x387   :  { %3372 = vrot.lane.b32.xlu1 %v3027_v36, %s4665_s2  ;;  %v3095_v20 = vadd.f32 %v6370_v40, %v3027_v36 }
 0x388   :  { %v3653_v21 = vpop.f32.mrf.mxu3 }
 0x389   :  { %v3654_v7 = vadd.f32 %v3653_v21, %v3337_v39  ;;  %v3159_v10 = vmax.f32 %v3095_v20, 0.0 }
 0x38b   :  { %v3766_v55 = vadd.f32 %v6433_v62, %v3654_v7 }
 0x38c   :  { %v2947_v24 = vpop.f32.mrf.mxu2 }
 0x38d   :  { %3830 = vst.msk [vmem:[%s6691_s6 + $0x110] sm:$0xff] %vm1348_vm5, %v3766_v55  ;;  %v3028_v60 = vadd.f32 %v2947_v24, %v2444_v16  ;;  %v2262_v45 = vpop.f32.mrf.mxu0 }
 0x38e   :  { %v2452_v34 = vadd.f32 %v2451_v27, %v2262_v45  ;;  %v2456_v3 = vpop.f32.mrf.mxu1  ;;  %v3351_v45 = vpop.permute.xlu2 %3350 }
 0x38f   :  { %v3096_v9 = vadd.f32 %v6370_v40, %v3028_v60  ;;  %3374 = vrot.lane.b32.xlu2 %v3028_v60, %s4665_s2 }
 0x390   :  { %v3655_v50 = vpop.f32.mrf.mxu3 }
 0x391   :  { %v3160_v51 = vmax.f32 %v3096_v9, 0.0  ;;  %v3656_v29 = vadd.f32 %v3655_v50, %v3339_v8  ;;  %v3347_v46 = vpop.permute.xlu0 %3346 }
 0x393   :  { %v3197_v15 = vpack.c.bf16 %v3160_v51, %v3159_v10  ;;  %v3767_v17 = vadd.f32 %v6433_v62, %v3656_v29 }
 0x394   :  { %v2950_v63 = vpop.f32.mrf.mxu2 }
 0x395   :  { %3831 = vst.msk [vmem:[%s6691_s6 + $0x118] sm:$0xff] %vm1348_vm5, %v3767_v17  ;;  %v3029_v54 = vadd.f32 %v2950_v63, %v2447_v48  ;;  %4258 = vmatmul.msk.bf16.gmra.mxu3 %vm1348_vm5, %v3197_v15  ;;  %v2264_v33 = vpop.f32.mrf.mxu0 }
 0x396   :  { %v2454_v47 = vadd.f32 %v2453_v5, %v2264_v33  ;;  %v2458_v41 = vpop.f32.mrf.mxu1 }
 0x397   :  { %3376 = vrot.lane.b32.xlu0 %v3029_v54, %s4665_s2  ;;  %v3097_v56 = vadd.f32 %v6370_v40, %v3029_v54 }
 0x398   :  { %v3658_v23 = vpop.f32.mrf.mxu3 }
 0x399   :  { %v3659_v19 = vadd.f32 %v3658_v23, %v3341_v31  ;;  %v3161_v37 = vmax.f32 %v3097_v56, 0.0  ;;  %v3349_v16 = vpop.permute.xlu1 %3348 }
 0x39b   :  { %v3768_v58 = vadd.f32 %v6433_v62, %v3659_v19 }
 0x39c   :  { %v2952_v4 = vpop.f32.mrf.mxu2 }
 0x39d   :  { %3832 = vst.msk [vmem:[%s6691_s6 + $0x120] sm:$0xff] %vm1348_vm5, %v3768_v58  ;;  %v3030_v12 = vadd.f32 %v2952_v4, %v2449_v35  ;;  %v2267_v13 = vpop.f32.mrf.mxu0 }
 0x39e   :  { %v2457_v39 = vadd.f32 %v2456_v3, %v2267_v13  ;;  %v2461_v60 = vpop.f32.mrf.mxu1 }
 0x39f   :  { %v3098_v32 = vadd.f32 %v6370_v40, %v3030_v12  ;;  %3378 = vrot.lane.b32.xlu1 %v3030_v12, %s4665_s2 }
 0x3a0   :  { %v3660_v59 = vpop.f32.mrf.mxu3 }
 0x3a1   :  { %v3162_v30 = vmax.f32 %v3098_v32, 0.0  ;;  %v3661_v2 = vadd.f32 %v3660_v59, %v3343_v25 }
 0x3a3   :  { %v3198_v49 = vpack.c.bf16 %v3162_v30, %v3161_v37  ;;  %v3769_v28 = vadd.f32 %v6433_v62, %v3661_v2 }
 0x3a4   :  { %v2955_v6 = vpop.f32.mrf.mxu2 }
 0x3a5   :  { %3833 = vst.msk [vmem:[%s6691_s6 + $0x128] sm:$0xff] %vm1348_vm5, %v3769_v28  ;;  %v3031_v43 = vadd.f32 %v2955_v6, %v2452_v34  ;;  %4259 = vmatmul.msk.bf16.gmra.mxu3 %vm1348_vm5, %v3198_v49  ;;  %v2269_v38 = vpop.f32.mrf.mxu0 }
 0x3a6   :  { %v2459_v9 = vadd.f32 %v2458_v41, %v2269_v38  ;;  %v2463_v35 = vpop.f32.mrf.mxu1 }
 0x3a7   :  { %3380 = vrot.lane.b32.xlu2 %v3031_v43, %s4665_s2  ;;  %v3099_v0 = vadd.f32 %v6370_v40, %v3031_v43 }
 0x3a8   :  { %v3663_v42 = vpop.f32.mrf.mxu3 }
 0x3a9   :  { %v3664_v53 = vadd.f32 %v3663_v42, %v3345_v44  ;;  %v3163_v1 = vmax.f32 %v3099_v0, 0.0  ;;  %v3353_v33 = vpop.permute.xlu0 %3352 }
 0x3ab   :  { %v3770_v18 = vadd.f32 %v6433_v62, %v3664_v53 }
 0x3ac   :  { %v2957_v57 = vpop.f32.mrf.mxu2 }
 0x3ad   :  { %3834 = vst.msk [vmem:[%s6691_s6 + $0x130] sm:$0xff] %vm1348_vm5, %v3770_v18  ;;  %v3032_v26 = vadd.f32 %v2957_v57, %v2454_v47  ;;  %v2272_v20 = vpop.f32.mrf.mxu0  ;;  %v3357_v47 = vpop.permute.xlu2 %3356 }
 0x3ae   :  { %v2462_v63 = vadd.f32 %v2461_v60, %v2272_v20  ;;  %v2466_v30 = vpop.f32.mrf.mxu1 }
 0x3af   :  { %v3100_v61 = vadd.f32 %v6370_v40, %v3032_v26  ;;  %3382 = vrot.lane.b32.xlu0 %v3032_v26, %s4665_s2 }
 0x3b0   :  { %v3665_v22 = vpop.f32.mrf.mxu3 }
 0x3b1   :  { %v3164_v11 = vmax.f32 %v3100_v61, 0.0  ;;  %v3666_v36 = vadd.f32 %v3665_v22, %v3347_v46  ;;  %v3355_v34 = vpop.permute.xlu1 %3354 }
 0x3b3   :  { %v3199_v14 = vpack.c.bf16 %v3164_v11, %v3163_v1  ;;  %v3771_v21 = vadd.f32 %v6433_v62, %v3666_v36 }
 0x3b4   :  { %v2960_v52 = vpop.f32.mrf.mxu2 }
 0x3b5   :  { %3835 = vst.msk [vmem:[%s6691_s6 + $0x138] sm:$0xff] %vm1348_vm5, %v3771_v21  ;;  %v3033_v7 = vadd.f32 %v2960_v52, %v2457_v39  ;;  %4260 = vmatmul.msk.bf16.gmra.mxu3 %vm1348_vm5, %v3199_v14  ;;  %v2274_v23 = vpop.f32.mrf.mxu0 }
 0x3b6   :  { %v2464_v56 = vadd.f32 %v2463_v35, %v2274_v23  ;;  %v2468_v26 = vpop.f32.mrf.mxu1 }
 0x3b7   :  { %3384 = vrot.lane.b32.xlu1 %v3033_v7, %s4665_s2  ;;  %v3101_v10 = vadd.f32 %v6370_v40, %v3033_v7 }
 0x3b8   :  { %v3668_v55 = vpop.f32.mrf.mxu3 }
 0x3b9   :  { %v3669_v24 = vadd.f32 %v3668_v55, %v3349_v16  ;;  %v3165_v27 = vmax.f32 %v3101_v10, 0.0  ;;  %v3363_v20 = vpop.permute.xlu2 %3362 }
 0x3bb   :  { %v3772_v8 = vadd.f32 %v6433_v62, %v3669_v24 }
 0x3bc   :  { %v2962_v50 = vpop.f32.mrf.mxu2 }
 0x3bd   :  { %3836 = vst.msk [vmem:[%s6691_s6 + $0x140] sm:$0xff] %vm1348_vm5, %v3772_v8  ;;  %v3034_v51 = vadd.f32 %v2962_v50, %v2459_v9  ;;  %v2277_v37 = vpop.f32.mrf.mxu0 }
 0x3be   :  { %v2467_v13 = vadd.f32 %v2466_v30, %v2277_v37 }
 0x3bf   :  { %v3102_v29 = vadd.f32 %v6370_v40, %v3034_v51  ;;  %3386 = vrot.lane.b32.xlu2 %v3034_v51, %s4665_s2 }
 0x3c0   :  { %v3670_v48 = vpop.f32.mrf.mxu3 }
 0x3c1   :  { %v3166_v15 = vmax.f32 %v3102_v29, 0.0  ;;  %v3671_v17 = vadd.f32 %v3670_v48, %v3351_v45  ;;  %v3359_v11 = vpop.permute.xlu0 %3358 }
 0x3c3   :  { %v3200_v54 = vpack.c.bf16 %v3166_v15, %v3165_v27  ;;  %v3773_v31 = vadd.f32 %v6433_v62, %v3671_v17 }
 0x3c4   :  { %v2965_v19 = vpop.f32.mrf.mxu2 }
 0x3c5   :  { %3837 = vst.msk [vmem:[%s6691_s6 + $0x148] sm:$0xff] %vm1348_vm5, %v3773_v31  ;;  %v3035_v58 = vadd.f32 %v2965_v19, %v2462_v63  ;;  %4261 = vmatmul.msk.bf16.gmra.mxu3 %vm1348_vm5, %v3200_v54  ;;  %v2279_v18 = vpop.f32.mrf.mxu0 }
 0x3c6   :  { %v2469_v46 = vadd.f32 %v2468_v26, %v2279_v18 }
 0x3c7   :  { %3388 = vrot.lane.b32.xlu0 %v3035_v58, %s4665_s2  ;;  %v3103_v25 = vadd.f32 %v6370_v40, %v3035_v58 }
 0x3c8   :  { %v3673_v4 = vpop.f32.mrf.mxu3 }
 0x3c9   :  { %v3674_v5 = vadd.f32 %v3673_v4, %v3353_v33  ;;  %v3167_v28 = vmax.f32 %v3103_v25, 0.0  ;;  %v3361_v16 = vpop.permute.xlu1 %3360 }
 0x3cb   :  { %v3774_v12 = vadd.f32 %v6433_v62, %v3674_v5 }
 0x3cc   :  { %v2967_v32 = vpop.f32.mrf.mxu2 }
 0x3cd   :  { %3838 = vst.msk [vmem:[%s6691_s6 + $0x150] sm:$0xff] %vm1348_vm5, %v3774_v12  ;;  %v3036_v59 = vadd.f32 %v2967_v32, %v2464_v56 }
 0x3cf   :  { %v3104_v2 = vadd.f32 %v6370_v40, %v3036_v59  ;;  %3390 = vrot.lane.b32.xlu1 %v3036_v59, %s4665_s2 }
 0x3d0   :  { %v3675_v49 = vpop.f32.mrf.mxu3 }
 0x3d1   :  { %v3168_v6 = vmax.f32 %v3104_v2, 0.0  ;;  %v3676_v43 = vadd.f32 %v3675_v49, %v3355_v34  ;;  %v3369_v17 = vpop.permute.xlu2 %3368 }
 0x3d3   :  { %v3201_v3 = vpack.c.bf16 %v3168_v6, %v3167_v28  ;;  %v3775_v44 = vadd.f32 %v6433_v62, %v3676_v43 }
 0x3d4   :  { %v2970_v42 = vpop.f32.mrf.mxu2 }
 0x3d5   :  { %3839 = vst.msk [vmem:[%s6691_s6 + $0x158] sm:$0xff] %vm1348_vm5, %v3775_v44  ;;  %v3037_v53 = vadd.f32 %v2970_v42, %v2467_v13  ;;  %4262 = vmatmul.msk.bf16.gmra.mxu3 %vm1348_vm5, %v3201_v3 }
 0x3d7   :  { %3392 = vrot.lane.b32.xlu2 %v3037_v53, %s4665_s2  ;;  %v3105_v22 = vadd.f32 %v6370_v40, %v3037_v53 }
 0x3d8   :  { %v3678_v57 = vpop.f32.mrf.mxu3 }
 0x3d9   :  { %v3679_v0 = vadd.f32 %v3678_v57, %v3357_v47  ;;  %v3169_v39 = vmax.f32 %v3105_v22, 0.0  ;;  %v3365_v50 = vpop.permute.xlu0 %3364 }
 0x3db   :  { %v3776_v61 = vadd.f32 %v6433_v62, %v3679_v0 }
 0x3dc   :  { %v2972_v38 = vpop.f32.mrf.mxu2 }
 0x3dd   :  { %3840 = vst.msk [vmem:[%s6691_s6 + $0x160] sm:$0xff] %vm1348_vm5, %v3776_v61  ;;  %v3038_v41 = vadd.f32 %v2972_v38, %v2469_v46 }
 0x3df   :  { %v3106_v1 = vadd.f32 %v6370_v40, %v3038_v41  ;;  %3394 = vrot.lane.b32.xlu0 %v3038_v41, %s4665_s2 }
 0x3e0   :  { %v3680_v36 = vpop.f32.mrf.mxu3 }
 0x3e1   :  { %v3170_v14 = vmax.f32 %v3106_v1, 0.0  ;;  %v3681_v21 = vadd.f32 %v3680_v36, %v3359_v11  ;;  %v3367_v45 = vpop.permute.xlu1 %3366 }
 0x3e3   :  { %v3202_v52 = vpack.c.bf16 %v3170_v14, %v3169_v39  ;;  %v3777_v7 = vadd.f32 %v6433_v62, %v3681_v21 }
 0x3e5   :  { %3841 = vst.msk [vmem:[%s6691_s6 + $0x168] sm:$0xff] %vm1348_vm5, %v3777_v7  ;;  %4263 = vmatmul.msk.bf16.gmra.mxu3 %vm1348_vm5, %v3202_v52 }
 0x3e8   :  { %v3683_v55 = vpop.f32.mrf.mxu3 }
 0x3e9   :  { %v3684_v40 = vadd.f32 %v3683_v55, %v3361_v16  ;;  %v3375_v12 = vpop.permute.xlu2 %3374 }
 0x3eb   :  { %v3778_v24 = vadd.f32 %v6433_v62, %v3684_v40 }
 0x3ed   :  { %3842 = vst.msk [vmem:[%s6691_s6 + $0x170] sm:$0xff] %vm1348_vm5, %v3778_v24 }
 0x3f0   :  { %v3685_v60 = vpop.f32.mrf.mxu3 }
 0x3f1   :  { %v3686_v9 = vadd.f32 %v3685_v60, %v3363_v20  ;;  %v3371_v23 = vpop.permute.xlu0 %3370 }
 0x3f3   :  { %v3779_v8 = vadd.f32 %v6433_v62, %v3686_v9 }
 0x3f5   :  { %3843 = vst.msk [vmem:[%s6691_s6 + $0x178] sm:$0xff] %vm1348_vm5, %v3779_v8 }
 0x3f8   :  { %v3688_v10 = vpop.f32.mrf.mxu3 }
 0x3f9   :  { %v3689_v51 = vadd.f32 %v3688_v10, %v3365_v50  ;;  %v3373_v33 = vpop.permute.xlu1 %3372 }
 0x3fb   :  { %v3780_v29 = vadd.f32 %v6433_v62, %v3689_v51 }
 0x3fd   :  { %3844 = vst.msk [vmem:[%s6691_s6 + $0x180] sm:$0xff] %vm1348_vm5, %v3780_v29 }
 0x400   :  { %v3690_v48 = vpop.f32.mrf.mxu3 }
 0x401   :  { %v3691_v27 = vadd.f32 %v3690_v48, %v3367_v45  ;;  %v3381_v13 = vpop.permute.xlu2 %3380 }
 0x403   :  { %v3781_v15 = vadd.f32 %v6433_v62, %v3691_v27 }
 0x405   :  { %3845 = vst.msk [vmem:[%s6691_s6 + $0x188] sm:$0xff] %vm1348_vm5, %v3781_v15 }
 0x408   :  { %v3693_v63 = vpop.f32.mrf.mxu3 }
 0x409   :  { %v3694_v54 = vadd.f32 %v3693_v63, %v3369_v17  ;;  %v3377_v37 = vpop.permute.xlu0 %3376 }
 0x40b   :  { %v3782_v31 = vadd.f32 %v6433_v62, %v3694_v54 }
 0x40d   :  { %3846 = vst.msk [vmem:[%s6691_s6 + $0x190] sm:$0xff] %vm1348_vm5, %v3782_v31 }
 0x410   :  { %v3695_v19 = vpop.f32.mrf.mxu3 }
 0x411   :  { %v3696_v35 = vadd.f32 %v3695_v19, %v3371_v23  ;;  %v3379_v49 = vpop.permute.xlu1 %3378 }
 0x413   :  { %v3783_v58 = vadd.f32 %v6433_v62, %v3696_v35 }
 0x415   :  { %3847 = vst.msk [vmem:[%s6691_s6 + $0x198] sm:$0xff] %vm1348_vm5, %v3783_v58 }
 0x418   :  { %v3698_v4 = vpop.f32.mrf.mxu3 }
 0x419   :  { %v3699_v5 = vadd.f32 %v3698_v4, %v3373_v33  ;;  %v3387_v38 = vpop.permute.xlu2 %3386 }
 0x41b   :  { %v3784_v56 = vadd.f32 %v6433_v62, %v3699_v5 }
 0x41d   :  { %3848 = vst.msk [vmem:[%s6691_s6 + $0x1a0] sm:$0xff] %vm1348_vm5, %v3784_v56 }
 0x420   :  { %v3700_v32 = vpop.f32.mrf.mxu3 }
 0x421   :  { %v3701_v25 = vadd.f32 %v3700_v32, %v3375_v12  ;;  %v3383_v53 = vpop.permute.xlu0 %3382 }
 0x423   :  { %v3785_v59 = vadd.f32 %v6433_v62, %v3701_v25 }
 0x425   :  { %3849 = vst.msk [vmem:[%s6691_s6 + $0x1a8] sm:$0xff] %vm1348_vm5, %v3785_v59 }
 0x428   :  { %v3703_v30 = vpop.f32.mrf.mxu3 }
 0x429   :  { %v3704_v2 = vadd.f32 %v3703_v30, %v3377_v37  ;;  %v3385_v0 = vpop.permute.xlu1 %3384 }
 0x42b   :  { %v3786_v34 = vadd.f32 %v6433_v62, %v3704_v2 }
 0x42d   :  { %3850 = vst.msk [vmem:[%s6691_s6 + $0x1b0] sm:$0xff] %vm1348_vm5, %v3786_v34 }
 0x430   :  { %v3705_v28 = vpop.f32.mrf.mxu3 }
 0x431   :  { %v3706_v6 = vadd.f32 %v3705_v28, %v3379_v49  ;;  %v3393_v55 = vpop.permute.xlu2 %3392 }
 0x433   :  { %v3787_v43 = vadd.f32 %v6433_v62, %v3706_v6 }
 0x435   :  { %3851 = vst.msk [vmem:[%s6691_s6 + $0x1b8] sm:$0xff] %vm1348_vm5, %v3787_v43 }
 0x438   :  { %v3708_v3 = vpop.f32.mrf.mxu3 }
 0x439   :  { %v3709_v44 = vadd.f32 %v3708_v3, %v3381_v13  ;;  %v3389_v11 = vpop.permute.xlu0 %3388 }
 0x43b   :  { %v3788_v42 = vadd.f32 %v6433_v62, %v3709_v44 }
 0x43d   :  { %3852 = vst.msk [vmem:[%s6691_s6 + $0x1c0] sm:$0xff] %vm1348_vm5, %v3788_v42 }
 0x440   :  { %v3710_v47 = vpop.f32.mrf.mxu3 }
 0x441   :  { %v3711_v18 = vadd.f32 %v3710_v47, %v3383_v53  ;;  %v3391_v21 = vpop.permute.xlu1 %3390 }
 0x443   :  { %v3789_v57 = vadd.f32 %v6433_v62, %v3711_v18 }
 0x445   :  { %3853 = vst.msk [vmem:[%s6691_s6 + $0x1c8] sm:$0xff] %vm1348_vm5, %v3789_v57 }
 0x448   :  { %v3713_v26 = vpop.f32.mrf.mxu3 }
 0x449   :  { %v3714_v46 = vadd.f32 %v3713_v26, %v3385_v0 }
 0x44b   :  { %v3790_v61 = vadd.f32 %v6433_v62, %v3714_v46 }
 0x44d   :  { %3854 = vst.msk [vmem:[%s6691_s6 + $0x1d0] sm:$0xff] %vm1348_vm5, %v3790_v61 }
 0x450   :  { %v3715_v22 = vpop.f32.mrf.mxu3 }
 0x451   :  { %v3716_v41 = vadd.f32 %v3715_v22, %v3387_v38  ;;  %v3395_v60 = vpop.permute.xlu0 %3394 }
 0x453   :  { %v3791_v1 = vadd.f32 %v6433_v62, %v3716_v41 }
 0x455   :  { %3855 = vst.msk [vmem:[%s6691_s6 + $0x1d8] sm:$0xff] %vm1348_vm5, %v3791_v1 }
 0x458   :  { %v3718_v36 = vpop.f32.mrf.mxu3 }
 0x459   :  { %v3719_v39 = vadd.f32 %v3718_v36, %v3389_v11 }
 0x45b   :  { %v3792_v14 = vadd.f32 %v6433_v62, %v3719_v39 }
 0x45d   :  { %3856 = vst.msk [vmem:[%s6691_s6 + $0x1e0] sm:$0xff] %vm1348_vm5, %v3792_v14 }
 0x460   :  { %v3720_v52 = vpop.f32.mrf.mxu3 }
 0x461   :  { %v3721_v7 = vadd.f32 %v3720_v52, %v3391_v21 }
 0x463   :  { %v3793_v16 = vadd.f32 %v6433_v62, %v3721_v7 }
 0x465   :  { %3857 = vst.msk [vmem:[%s6691_s6 + $0x1e8] sm:$0xff] %vm1348_vm5, %v3793_v16 }
 0x468   :  { %v3723_v40 = vpop.f32.mrf.mxu3 }
 0x469   :  { %v3724_v24 = vadd.f32 %v3723_v40, %v3393_v55 }
 0x46b   :  { %v3794_v20 = vadd.f32 %v6433_v62, %v3724_v24 }
 0x46d   :  { %3858 = vst.msk [vmem:[%s6691_s6 + $0x1f0] sm:$0xff] %vm1348_vm5, %v3794_v20 }
 0x470   :  { %v3725_v9 = vpop.f32.mrf.mxu3 }
 0x471   :  { %v3726_v8 = vadd.f32 %v3725_v9, %v3395_v60 }
 0x473   :  { %v3795_v50 = vadd.f32 %v6433_v62, %v3726_v8 }
 0x475   :  { %3859 = vst.msk [vmem:[%s6691_s6 + $0x1f8] sm:$0xff] %vm1348_vm5, %v3795_v50 }

</bundles_post_ra>
